<compile_context>
chip_gen: v7x
topology: tpu7x:2x2x1
jax: 0.10.0
libtpu: 0.0.40
codegen_flags: <defaults>
</compile_context>

<pallas_src>
import functools
import math

import jax
import jax.numpy as jnp
from jax.experimental import pallas as pl
from jax.experimental.pallas import tpu as pltpu


def _round_up(x, m):
    return ((x + m - 1) // m) * m


def _cdiv(a, b):
    return -(-a // b)


def _vmem_capacity_bytes():
    """Physical VMEM per TensorCore (128 MiB v5e/v6e, 64 MiB v7x)."""
    try:
        cap = int(pltpu.get_tpu_info().vmem_capacity_bytes)
        if cap > 0:
            return cap
    except Exception:
        pass
    return 64 * 1024 * 1024          # conservative default (v7x per-TC)


def _vmem_limit_bytes(est_bytes, cap_bytes):
    limit = max(32 * 1024 * 1024, 2 * int(est_bytes))
    return int(min(limit, int(0.75 * cap_bytes)))


def _choose_row_tiling(m_valid, n_parallel, cout_blk):
    """Pick the output row-tile size.

    Bounds the f32 output/accumulator tile to ~128 KiB so it stays near the
    vreg file instead of spilling through the single vst slot, and makes sure
    there are >= 2 parallel grid items so both v7x TensorCores get work.
    """
    acc_budget = 128 * 1024
    cap = (acc_budget // (4 * cout_blk)) // 16 * 16
    cap = max(128, min(1024, cap))
    tm = max(16, min(cap, _round_up(m_valid, 16)))
    if n_parallel * (_round_up(m_valid, tm) // tm) < 2 and m_valid > 16:
        tm = max(16, _round_up(_cdiv(m_valid, 2), 16))
    m_pad = _round_up(m_valid, tm)
    return tm, m_pad // tm, m_pad


def _const_operand_spec(shape, index_map, single_buffer):
    """BlockSpec for a constant-index operand; single-buffered when possible."""
    if single_buffer:
        try:
            return pl.BlockSpec(shape, index_map, pipeline_mode=pl.Buffered(1))
        except Exception:
            pass
    return pl.BlockSpec(shape, index_map)


# ----------------------------- Pallas kernel --------------------------------
def _conv_matmul_relu_kernel(x_ref, w_ref, b_ref, o_ref, *,
                             tap_offsets, tm, num_row_tiles, resident_x):
    """One (tm, Cout_blk) output tile:  o = relu(bias + patches @ w).

    resident_x=True : x_ref = (R, Cin) flattened, spatially padded image of
        one batch element (VMEM-resident).  The k*k shifted (tm, Cin) windows
        are concatenated along the channel axis so the conv is a single matmul
        with K = k*k*Cin -- accumulation stays inside the MXU.
    resident_x=False: x_ref = (tm, K) im2col row tile streamed from HBM.
    w_ref: (K, Cout_blk) bf16;  b_ref: (1, Cout_blk) f32;  o_ref: (tm, Cout_blk) f32.
    """
    if resident_x:
        dynamic = num_row_tiles > 1
        row0 = pl.program_id(1) * tm if dynamic else 0
        pieces = []
        for off in tap_offsets:
            start = row0 + off
            if dynamic:
                # Wp is padded to a multiple of 8, tm to a multiple of 16, so
                # the kh*Wp component of every start is sublane-aligned.
                g = math.gcd(int(off), 8)
                if g > 1:
                    start = pl.multiple_of(start, g)
            pieces.append(x_ref[pl.ds(start, tm), :])
        patches = pieces[0] if len(pieces) == 1 else jnp.concatenate(pieces, axis=-1)
    else:
        patches = x_ref[...]

    acc = jnp.dot(patches, w_ref[...], preferred_element_type=jnp.float32)
    acc = acc + b_ref[...]                       # f32 bias + ReLU epilogue
    o_ref[...] = jnp.maximum(acc, 0.0).astype(o_ref.dtype)


def _tap_conv(x_in, w_in, b_in, *, tap_offsets, tm, num_tiles, resident_x,
              vmem_limit, flops, bytes_accessed):
    """x_in: (B, R, Cin) resident image  OR  (B, M_pad, K) im2col slab (bf16).
    w_in: (K, Cout_blk) bf16, b_in: (1, Cout_blk) f32.
    Returns (B, num_tiles*tm, Cout_blk) f32."""
    B = x_in.shape[0]
    Kdim, cout_blk = w_in.shape

    kernel = functools.partial(
        _conv_matmul_relu_kernel,
        tap_offsets=tuple(int(o) for o in tap_offsets),
        tm=tm, num_row_tiles=num_tiles, resident_x=resident_x)

    if resident_x:
        # Whole flattened image of one batch element stays VMEM-resident
        # across its row tiles (block index ignores the row-tile axis).
        x_spec = pl.BlockSpec((None, x_in.shape[1], x_in.shape[2]),
                              lambda n, t: (n, 0, 0))
    else:
        # Streamed: only a (tm, K) patch tile is VMEM-resident at a time.
        x_spec = pl.BlockSpec((None, tm, x_in.shape[2]),
                              lambda n, t: (n, t, 0))

    def build(single_buffer):
        in_specs = [
            x_spec,
            _const_operand_spec((Kdim, cout_blk), lambda n, t: (0, 0),
                                single_buffer),
            _const_operand_spec((1, cout_blk), lambda n, t: (0, 0),
                                single_buffer),
        ]
        return pl.pallas_call(
            kernel,
            out_shape=jax.ShapeDtypeStruct((B, num_tiles * tm, cout_blk),
                                           jnp.float32),
            grid=(B, num_tiles),
            in_specs=in_specs,
            out_specs=pl.BlockSpec((None, tm, cout_blk), lambda n, t: (n, t, 0)),
            compiler_params=pltpu.CompilerParams(
                dimension_semantics=("parallel", "parallel"),
                vmem_limit_bytes=int(vmem_limit)),
            cost_estimate=pl.CostEstimate(flops=int(flops), transcendentals=0,
                                          bytes_accessed=int(bytes_accessed)),
        )(x_in, w_in, b_in)

    try:
        # Single-buffer the constant-index weight/bias operands (VMEM saving,
        # mostly relevant on v7x's 64 MiB per-TC budget).
        return build(True)
    except Exception:
        return build(False)


# ----------------------------- ConvModule wrapper ----------------------------
class ConvModulePallas:
    """JAX/Pallas equivalent of the PyTorch ConvModule (Conv2d + ReLU)."""

    def __init__(self, in_features, out_features, stride, kernel_size=3,
                 padding=1, key=None):
        self.cin = in_features
        self.cout = out_features
        self.stride = stride
        self.k = kernel_size
        self.pad = padding

        if key is None:
            key = jax.random.PRNGKey(0)
        kw_, kb_ = jax.random.split(key)
        fan_in = in_features * kernel_size * kernel_size
        bound = 1.0 / jnp.sqrt(jnp.float32(fan_in))
        # PyTorch layout: (Cout, Cin, KH, KW); deterministic uniform init.
        self.weight = jax.random.uniform(
            kw_, (out_features, in_features, kernel_size, kernel_size),
            dtype=jnp.float32, minval=-bound, maxval=bound)
        self.bias = jax.random.uniform(
            kb_, (out_features,), dtype=jnp.float32, minval=-bound, maxval=bound)

    def __call__(self, x_nchw):
        N, C, H, W = x_nchw.shape
        assert C == self.cin
        k, s, p = self.k, self.stride, self.pad
        Ho = (H + 2 * p - k) // s + 1
        Wo = (W + 2 * p - k) // s + 1
        cin, cout = self.cin, self.cout
        K = k * k * cin

        # Lane-dense (128-multiple) output channels only when Cout is already
        # large; for small Cout an unpadded (masked-store) output is far
        # cheaper than 16x HBM write amplification.
        cout_blk = _round_up(cout, 128) if cout >= 128 else cout

        # Weights (Cout,Cin,KH,KW) -> (KH*KW*Cin, Cout_blk): taps folded into
        # the contraction dim so the kernel does ONE matmul per output tile.
        w_flat = jnp.transpose(self.weight, (2, 3, 1, 0)).reshape(K, cout)
        b_vec = self.bias
        if cout_blk != cout:
            w_flat = jnp.pad(w_flat, ((0, 0), (0, cout_blk - cout)))
            b_vec = jnp.pad(b_vec, (0, cout_blk - cout))
        w_flat = w_flat.astype(jnp.bfloat16)            # bf16 MXU inputs
        b_blk = b_vec.reshape(1, cout_blk).astype(jnp.float32)

        x = jnp.transpose(x_nchw, (0, 2, 3, 1)).astype(jnp.bfloat16)   # NHWC

        vmem_cap = _vmem_capacity_bytes()
        flops = 2 * N * Ho * Wo * K * cout
        bytes_accessed = (N * H * W * cin * 2 + K * cout * 2
                          + cout * 4 + N * Ho * Wo * cout * 4)

        use_fused = False
        if s == 1:
            Hp = H + 2 * p
            Wp = _round_up(W + 2 * p, 8)    # sublane-align the kh*Wp offsets
            m_valid = Ho * Wp
            tm, num_tiles, m_pad = _choose_row_tiling(m_valid, N, cout_blk)
            max_off = (k - 1) * Wp + (k - 1)
            R = max(Hp * Wp, m_pad + max_off)
            # VMEM estimate: resident image (x2) + weights + bias + output
            # tiles (x2) + concatenated patches + f32 accumulator.
            est = (2 * R * cin * 2 + K * cout_blk * 2 + 2 * cout_blk * 4
                   + 2 * tm * cout_blk * 4 + tm * K * 2 + tm * cout_blk * 4)
            use_fused = est <= int(0.6 * vmem_cap)

        if use_fused:
            # Fused path: conv = one K=k*k*Cin matmul per row tile over the
            # flattened padded image (no im2col ever materialized in HBM).
            xp = jnp.pad(x, ((0, 0), (p, p), (p, Wp - (W + p)), (0, 0)))
            x_flat = xp.reshape(N, Hp * Wp, cin)
            if R > Hp * Wp:                 # keep all tap slices in-bounds
                x_flat = jnp.pad(x_flat, ((0, 0), (0, R - Hp * Wp), (0, 0)))
            tap_offsets = tuple(kh * Wp + kw
                                for kh in range(k) for kw in range(k))
            out_full = _tap_conv(
                x_flat, w_flat, b_blk, tap_offsets=tap_offsets, tm=tm,
                num_tiles=num_tiles, resident_x=True,
                vmem_limit=_vmem_limit_bytes(est, vmem_cap),
                flops=flops, bytes_accessed=bytes_accessed)
            out = out_full[:, :m_valid, :cout].reshape(N, Ho, Wp, cout)
            out = out[:, :, :Wo, :]                     # drop halo columns
        else:
            # Streamed im2col path (stride != 1, or image too large for the
            # VMEM-resident fused path).  Row-tiled BlockSpec so only a
            # (tm, K) patch tile is VMEM-resident at a time.
            # TODO(synk): gather strided rows inside the kernel (pl.ds with a
            # stride) to avoid the k*k x HBM read amplification of im2col.
            xp = jnp.pad(x, ((0, 0), (p, p), (p, p), (0, 0)))
            taps = [xp[:, kh:kh + s * (Ho - 1) + 1:s,
                         kw:kw + s * (Wo - 1) + 1:s, :]
                    for kh in range(k) for kw in range(k)]
            patches = jnp.stack(taps, axis=3).reshape(N * Ho * Wo, K)
            m_valid = N * Ho * Wo
            tm, num_tiles, m_pad = _choose_row_tiling(m_valid, 1, cout_blk)
            patches = jnp.pad(patches, ((0, m_pad - m_valid), (0, 0)))[None]
            est = (2 * tm * K * 2 + K * cout_blk * 2 + 2 * cout_blk * 4
                   + 2 * tm * cout_blk * 4 + tm * cout_blk * 4)
            out_full = _tap_conv(
                patches, w_flat, b_blk, tap_offsets=(0,), tm=tm,
                num_tiles=num_tiles, resident_x=False,
                vmem_limit=_vmem_limit_bytes(est, vmem_cap),
                flops=flops, bytes_accessed=bytes_accessed)
            out = out_full[0, :m_valid, :cout].reshape(N, Ho, Wo, cout)

        # NHWC -> NCHW to match the PyTorch module's convention.
        return jnp.transpose(out, (0, 3, 1, 2))


# ----------------------------------- main ------------------------------------
if __name__ == "__main__":
    key = jax.random.PRNGKey(0)
    k_x, k_params = jax.random.split(key)

    N, Cin, H, W = 2, 4, 16, 16
    Cout = 8

    x = jax.random.normal(k_x, (N, Cin, H, W), dtype=jnp.float32)

    for stride in (1, 2):           # exercises fused path and streamed path
        module = ConvModulePallas(Cin, Cout, stride, kernel_size=3, padding=1,
                                  key=k_params)
        out = jax.block_until_ready(module(x))

        ref = jax.lax.conv_general_dilated(
            x, module.weight, window_strides=(stride, stride),
            padding=((1, 1), (1, 1)),
            dimension_numbers=("NCHW", "OIHW", "NCHW"))
        ref = jnp.maximum(ref + module.bias.reshape(1, Cout, 1, 1), 0.0)
        assert out.shape == ref.shape
        # bf16 MXU inputs with f32 accumulation -> relaxed tolerance.
        assert jnp.allclose(out, ref, atol=5e-2, rtol=5e-2)

    print("KERNEL_OK")
</pallas_src>

<mosaic_0001>
module attributes {stable_mosaic.version = 11 : i64} {
  func.func @_conv_matmul_relu_kernel(%arg0: i32, %arg1: i32, %arg2: memref<1x434x4xbf16, #tpu.memory_space<vmem>>, %arg3: memref<36x8xbf16, #tpu.memory_space<vmem>>, %arg4: memref<1x8xf32, #tpu.memory_space<vmem>>, %arg5: memref<1x384x8xf32, #tpu.memory_space<vmem>>) attributes {dimension_semantics = [#tpu.dimension_semantics<parallel>, #tpu.dimension_semantics<parallel>], iteration_bounds = array<i64: 2, 1>, scalar_prefetch = 0 : i64, scratch_operands = 0 : i64, tpu.core_type = #tpu.core_type<tc>, window_params = [{transform_indices = @transform_0, window_bounds = array<i64: 1, 434, 4>}, {pipeline_mode = #tpu.pipeline_mode<synchronous>, transform_indices = @transform_1, window_bounds = array<i64: 36, 8>}, {pipeline_mode = #tpu.pipeline_mode<synchronous>, transform_indices = @transform_2, window_bounds = array<i64: 1, 8>}, {transform_indices = @transform_3, window_bounds = array<i64: 1, 384, 8>}]} {
    %c0 = arith.constant 0 : index
    %c0_0 = arith.constant 0 : index
    %c0_1 = arith.constant 0 : index
    %0 = vector.load %arg2[%c0, %c0_0, %c0_1] : memref<1x434x4xbf16, #tpu.memory_space<vmem>>, vector<1x384x4xbf16>
    %1 = vector.shape_cast %0 : vector<1x384x4xbf16> to vector<384x4xbf16>
    %c0_2 = arith.constant 0 : index
    %c1 = arith.constant 1 : index
    %c0_3 = arith.constant 0 : index
    %2 = vector.load %arg2[%c0_2, %c1, %c0_3] : memref<1x434x4xbf16, #tpu.memory_space<vmem>>, vector<1x384x4xbf16>
    %3 = vector.shape_cast %2 : vector<1x384x4xbf16> to vector<384x4xbf16>
    %c0_4 = arith.constant 0 : index
    %c2 = arith.constant 2 : index
    %c0_5 = arith.constant 0 : index
    %4 = vector.load %arg2[%c0_4, %c2, %c0_5] : memref<1x434x4xbf16, #tpu.memory_space<vmem>>, vector<1x384x4xbf16>
    %5 = vector.shape_cast %4 : vector<1x384x4xbf16> to vector<384x4xbf16>
    %c0_6 = arith.constant 0 : index
    %c24 = arith.constant 24 : index
    %c0_7 = arith.constant 0 : index
    %6 = vector.load %arg2[%c0_6, %c24, %c0_7] : memref<1x434x4xbf16, #tpu.memory_space<vmem>>, vector<1x384x4xbf16>
    %7 = vector.shape_cast %6 : vector<1x384x4xbf16> to vector<384x4xbf16>
    %c0_8 = arith.constant 0 : index
    %c25 = arith.constant 25 : index
    %c0_9 = arith.constant 0 : index
    %8 = vector.load %arg2[%c0_8, %c25, %c0_9] : memref<1x434x4xbf16, #tpu.memory_space<vmem>>, vector<1x384x4xbf16>
    %9 = vector.shape_cast %8 : vector<1x384x4xbf16> to vector<384x4xbf16>
    %c0_10 = arith.constant 0 : index
    %c26 = arith.constant 26 : index
    %c0_11 = arith.constant 0 : index
    %10 = vector.load %arg2[%c0_10, %c26, %c0_11] : memref<1x434x4xbf16, #tpu.memory_space<vmem>>, vector<1x384x4xbf16>
    %11 = vector.shape_cast %10 : vector<1x384x4xbf16> to vector<384x4xbf16>
    %c0_12 = arith.constant 0 : index
    %c48 = arith.constant 48 : index
    %c0_13 = arith.constant 0 : index
    %12 = vector.load %arg2[%c0_12, %c48, %c0_13] : memref<1x434x4xbf16, #tpu.memory_space<vmem>>, vector<1x384x4xbf16>
    %13 = vector.shape_cast %12 : vector<1x384x4xbf16> to vector<384x4xbf16>
    %c0_14 = arith.constant 0 : index
    %c49 = arith.constant 49 : index
    %c0_15 = arith.constant 0 : index
    %14 = vector.load %arg2[%c0_14, %c49, %c0_15] : memref<1x434x4xbf16, #tpu.memory_space<vmem>>, vector<1x384x4xbf16>
    %15 = vector.shape_cast %14 : vector<1x384x4xbf16> to vector<384x4xbf16>
    %c0_16 = arith.constant 0 : index
    %c50 = arith.constant 50 : index
    %c0_17 = arith.constant 0 : index
    %16 = vector.load %arg2[%c0_16, %c50, %c0_17] : memref<1x434x4xbf16, #tpu.memory_space<vmem>>, vector<1x384x4xbf16>
    %17 = vector.shape_cast %16 : vector<1x384x4xbf16> to vector<384x4xbf16>
    %18 = tpu.concatenate %1, %3, %5, %7, %9, %11, %13, %15, %17 in 1 : vector<384x4xbf16>, vector<384x4xbf16>, vector<384x4xbf16>, vector<384x4xbf16>, vector<384x4xbf16>, vector<384x4xbf16>, vector<384x4xbf16>, vector<384x4xbf16>, vector<384x4xbf16> -> vector<384x36xbf16>
    %c0_18 = arith.constant 0 : index
    %c0_19 = arith.constant 0 : index
    %19 = vector.load %arg3[%c0_18, %c0_19] : memref<36x8xbf16, #tpu.memory_space<vmem>>, vector<36x8xbf16>
    %cst = arith.constant dense<0.000000e+00> : vector<384x8xf32>
    %20 = tpu.matmul %18, %19, %cst {dimension_numbers = #tpu.dot_dimension_numbers<[1], [0], [0], [1], [0, 0, 1, 1], [], []>} : vector<384x36xbf16>, vector<36x8xbf16>, vector<384x8xf32> -> vector<384x8xf32>
    %c0_20 = arith.constant 0 : index
    %c0_21 = arith.constant 0 : index
    %21 = vector.load %arg4[%c0_20, %c0_21] : memref<1x8xf32, #tpu.memory_space<vmem>>, vector<1x8xf32>
    %22 = vector.broadcast %21 : vector<1x8xf32> to vector<384x8xf32>
    %23 = arith.addf %20, %22 : vector<384x8xf32>
    %cst_22 = arith.constant 0.000000e+00 : f32
    %24 = vector.broadcast %cst_22 : f32 to vector<384x8xf32>
    %25 = arith.maximumf %23, %24 : vector<384x8xf32>
    %c0_23 = arith.constant 0 : index
    %c0_24 = arith.constant 0 : index
    %c0_25 = arith.constant 0 : index
    %26 = vector.load %arg5[%c0_23, %c0_24, %c0_25] : memref<1x384x8xf32, #tpu.memory_space<vmem>>, vector<1x384x8xf32>
    %27 = vector.shape_cast %26 : vector<1x384x8xf32> to vector<384x8xf32>
    %28 = vector.shape_cast %25 : vector<384x8xf32> to vector<1x384x8xf32>
    tpu.vector_store %arg5[%c0_23, %c0_24, %c0_25], %28 {strides = array<i32>} : memref<1x384x8xf32, #tpu.memory_space<vmem>>, vector<1x384x8xf32>,
    return
  }
  func.func @transform_0(%arg0: i32, %arg1: i32) -> (i32, i32, i32) {
    %c0_i32 = arith.constant 0 : i32
    %c0_i32_0 = arith.constant 0 : i32
    %c0_i32_1 = arith.constant 0 : i32
    return %arg0, %c0_i32, %c0_i32_0 : i32, i32, i32
  }
  func.func @transform_1(%arg0: i32, %arg1: i32) -> (i32, i32) {
    %c0_i32 = arith.constant 0 : i32
    %c0_i32_0 = arith.constant 0 : i32
    %c0_i32_1 = arith.constant 0 : i32
    return %c0_i32, %c0_i32_0 : i32, i32
  }
  func.func @transform_2(%arg0: i32, %arg1: i32) -> (i32, i32) {
    %c0_i32 = arith.constant 0 : i32
    %c0_i32_0 = arith.constant 0 : i32
    %c0_i32_1 = arith.constant 0 : i32
    return %c0_i32, %c0_i32_0 : i32, i32
  }
  func.func @transform_3(%arg0: i32, %arg1: i32) -> (i32, i32, i32) {
    %c0_i32 = arith.constant 0 : i32
    %c0_i32_0 = arith.constant 0 : i32
    return %arg0, %arg1, %c0_i32 : i32, i32, i32
  }
}

module attributes {stable_mosaic.version = 11 : i64} {
  func.func @_conv_matmul_relu_kernel(%arg0: i32, %arg1: i32, %arg2: memref<1x434x4xbf16, #tpu.memory_space<vmem>>, %arg3: memref<36x8xbf16, #tpu.memory_space<vmem>>, %arg4: memref<1x8xf32, #tpu.memory_space<vmem>>, %arg5: memref<1x384x8xf32, #tpu.memory_space<vmem>>) attributes {dimension_semantics = [#tpu.dimension_semantics<parallel>, #tpu.dimension_semantics<parallel>], iteration_bounds = array<i64: 2, 1>, scalar_prefetch = 0 : i64, scratch_operands = 0 : i64, tpu.core_type = #tpu.core_type<tc>, window_params = [{transform_indices = @transform_0, window_bounds = array<i64: 1, 434, 4>}, {pipeline_mode = #tpu.pipeline_mode<synchronous>, transform_indices = @transform_1, window_bounds = array<i64: 36, 8>}, {pipeline_mode = #tpu.pipeline_mode<synchronous>, transform_indices = @transform_2, window_bounds = array<i64: 1, 8>}, {transform_indices = @transform_3, window_bounds = array<i64: 1, 384, 8>}]} {
    %c0 = arith.constant 0 : index
    %c0_0 = arith.constant 0 : index
    %c0_1 = arith.constant 0 : index
    %0 = vector.load %arg2[%c0, %c0_0, %c0_1] : memref<1x434x4xbf16, #tpu.memory_space<vmem>>, vector<1x384x4xbf16>
    %1 = vector.shape_cast %0 : vector<1x384x4xbf16> to vector<384x4xbf16>
    %c0_2 = arith.constant 0 : index
    %c1 = arith.constant 1 : index
    %c0_3 = arith.constant 0 : index
    %2 = vector.load %arg2[%c0_2, %c1, %c0_3] : memref<1x434x4xbf16, #tpu.memory_space<vmem>>, vector<1x384x4xbf16>
    %3 = vector.shape_cast %2 : vector<1x384x4xbf16> to vector<384x4xbf16>
    %c0_4 = arith.constant 0 : index
    %c2 = arith.constant 2 : index
    %c0_5 = arith.constant 0 : index
    %4 = vector.load %arg2[%c0_4, %c2, %c0_5] : memref<1x434x4xbf16, #tpu.memory_space<vmem>>, vector<1x384x4xbf16>
    %5 = vector.shape_cast %4 : vector<1x384x4xbf16> to vector<384x4xbf16>
    %c0_6 = arith.constant 0 : index
    %c24 = arith.constant 24 : index
    %c0_7 = arith.constant 0 : index
    %6 = vector.load %arg2[%c0_6, %c24, %c0_7] : memref<1x434x4xbf16, #tpu.memory_space<vmem>>, vector<1x384x4xbf16>
    %7 = vector.shape_cast %6 : vector<1x384x4xbf16> to vector<384x4xbf16>
    %c0_8 = arith.constant 0 : index
    %c25 = arith.constant 25 : index
    %c0_9 = arith.constant 0 : index
    %8 = vector.load %arg2[%c0_8, %c25, %c0_9] : memref<1x434x4xbf16, #tpu.memory_space<vmem>>, vector<1x384x4xbf16>
    %9 = vector.shape_cast %8 : vector<1x384x4xbf16> to vector<384x4xbf16>
    %c0_10 = arith.constant 0 : index
    %c26 = arith.constant 26 : index
    %c0_11 = arith.constant 0 : index
    %10 = vector.load %arg2[%c0_10, %c26, %c0_11] : memref<1x434x4xbf16, #tpu.memory_space<vmem>>, vector<1x384x4xbf16>
    %11 = vector.shape_cast %10 : vector<1x384x4xbf16> to vector<384x4xbf16>
    %c0_12 = arith.constant 0 : index
    %c48 = arith.constant 48 : index
    %c0_13 = arith.constant 0 : index
    %12 = vector.load %arg2[%c0_12, %c48, %c0_13] : memref<1x434x4xbf16, #tpu.memory_space<vmem>>, vector<1x384x4xbf16>
    %13 = vector.shape_cast %12 : vector<1x384x4xbf16> to vector<384x4xbf16>
    %c0_14 = arith.constant 0 : index
    %c49 = arith.constant 49 : index
    %c0_15 = arith.constant 0 : index
    %14 = vector.load %arg2[%c0_14, %c49, %c0_15] : memref<1x434x4xbf16, #tpu.memory_space<vmem>>, vector<1x384x4xbf16>
    %15 = vector.shape_cast %14 : vector<1x384x4xbf16> to vector<384x4xbf16>
    %c0_16 = arith.constant 0 : index
    %c50 = arith.constant 50 : index
    %c0_17 = arith.constant 0 : index
    %16 = vector.load %arg2[%c0_16, %c50, %c0_17] : memref<1x434x4xbf16, #tpu.memory_space<vmem>>, vector<1x384x4xbf16>
    %17 = vector.shape_cast %16 : vector<1x384x4xbf16> to vector<384x4xbf16>
    %18 = tpu.concatenate %1, %3, %5, %7, %9, %11, %13, %15, %17 in 1 : vector<384x4xbf16>, vector<384x4xbf16>, vector<384x4xbf16>, vector<384x4xbf16>, vector<384x4xbf16>, vector<384x4xbf16>, vector<384x4xbf16>, vector<384x4xbf16>, vector<384x4xbf16> -> vector<384x36xbf16>
    %c0_18 = arith.constant 0 : index
    %c0_19 = arith.constant 0 : index
    %19 = vector.load %arg3[%c0_18, %c0_19] : memref<36x8xbf16, #tpu.memory_space<vmem>>, vector<36x8xbf16>
    %cst = arith.constant dense<0.000000e+00> : vector<384x8xf32>
    %20 = tpu.matmul %18, %19, %cst {dimension_numbers = #tpu.dot_dimension_numbers<[1], [0], [0], [1], [0, 0, 1, 1], [], []>} : vector<384x36xbf16>, vector<36x8xbf16>, vector<384x8xf32> -> vector<384x8xf32>
    %c0_20 = arith.constant 0 : index
    %c0_21 = arith.constant 0 : index
    %21 = vector.load %arg4[%c0_20, %c0_21] : memref<1x8xf32, #tpu.memory_space<vmem>>, vector<1x8xf32>
    %22 = vector.broadcast %21 : vector<1x8xf32> to vector<384x8xf32>
    %23 = arith.addf %20, %22 : vector<384x8xf32>
    %cst_22 = arith.constant 0.000000e+00 : f32
    %24 = vector.broadcast %cst_22 : f32 to vector<384x8xf32>
    %25 = arith.maximumf %23, %24 : vector<384x8xf32>
    %c0_23 = arith.constant 0 : index
    %c0_24 = arith.constant 0 : index
    %c0_25 = arith.constant 0 : index
    %26 = vector.load %arg5[%c0_23, %c0_24, %c0_25] : memref<1x384x8xf32, #tpu.memory_space<vmem>>, vector<1x384x8xf32>
    %27 = vector.shape_cast %26 : vector<1x384x8xf32> to vector<384x8xf32>
    %28 = vector.shape_cast %25 : vector<384x8xf32> to vector<1x384x8xf32>
    tpu.vector_store %arg5[%c0_23, %c0_24, %c0_25], %28 {strides = array<i32>} : memref<1x384x8xf32, #tpu.memory_space<vmem>>, vector<1x384x8xf32>,
    return
  }
  func.func @transform_0(%arg0: i32, %arg1: i32) -> (i32, i32, i32) {
    %c0_i32 = arith.constant 0 : i32
    %c0_i32_0 = arith.constant 0 : i32
    %c0_i32_1 = arith.constant 0 : i32
    return %arg0, %c0_i32, %c0_i32_0 : i32, i32, i32
  }
  func.func @transform_1(%arg0: i32, %arg1: i32) -> (i32, i32) {
    %c0_i32 = arith.constant 0 : i32
    %c0_i32_0 = arith.constant 0 : i32
    %c0_i32_1 = arith.constant 0 : i32
    return %c0_i32, %c0_i32_0 : i32, i32
  }
  func.func @transform_2(%arg0: i32, %arg1: i32) -> (i32, i32) {
    %c0_i32 = arith.constant 0 : i32
    %c0_i32_0 = arith.constant 0 : i32
    %c0_i32_1 = arith.constant 0 : i32
    return %c0_i32, %c0_i32_0 : i32, i32
  }
  func.func @transform_3(%arg0: i32, %arg1: i32) -> (i32, i32, i32) {
    %c0_i32 = arith.constant 0 : i32
    %c0_i32_0 = arith.constant 0 : i32
    return %arg0, %arg1, %c0_i32 : i32, i32, i32
  }
}

</mosaic_0001>

<bundles_post_ra>
// kernel: tpu_custom_call.1
= control target key start
LH: loop header
LB: loop body
LE: loop exit
PB: predicated region body
PF: predicated region fallthrough
CT: control target
= control target key end

     0   :  { %s2562_s12 = smov 0   ;;  %s2564_s13 = smov 0   ;;  %s4268_s0 = inlined_call_operand.vmem [shape: bf16[2,434,4], index: 0, kind: input, shape index: {}]   ;;  %s4269_s1 = inlined_call_operand.vmem [shape: bf16[36,8], index: 1, kind: input, shape index: {}]   ;;  %s4270_s2 = inlined_call_operand.vmem [shape: f32[1,8], index: 2, kind: input, shape index: {}]   ;;  %s4271_s3 = inlined_call_operand.vmem [shape: f32[2,384,8], index: 3, kind: output, shape index: {}]  }
   0x1   :  { %s2566_s14 = smov 0  }
   0x2 LB: > { %s25_s15 = sadd.s32 1, %s2528_s13  ;;  %p2225_p0 = scmp.ge.s32.totalorder %s2532_s14, 1  ;;  %s2532_s14 = sphi %s2566_s14, %s13_s14   ;;  %s2528_s13 = sphi %s2564_s13, %s4493_s13   ;;  %s2524_s12 = sphi %s2562_s12, %s4492_s12  }
   0x3   : > { %p27_p1 = scmp.ge.s32.totalorder %s25_s15, 2  ;;  %p151_p2 = scmp.lt.s32.totalorder %s2532_s14, 3 }
   0x5   : > { %s4495_s15 = smov (%p27_p1, %s25_s15), 0  ;;  %p152_p3 = pnand %p2225_p0, %p151_p2 }
   0x7   : > { %155 = sbr.rel (%p152_p3) target bundleno = 748 (0x2ec), region = 32 }
   0xe   : > { %p179_p4 = scmp.lt.s32.totalorder %s2524_s12, 1  ;;  %vm378_vm0 = vsmask.f32 7424  ;;  %s2534_s20 = smov 4   ;;  %vm626_vm1 = vcmask 1046528   ;;  %vm1815_vm2 = vcmask 1041408  }
   0xf   : > { %s2535_s21 = smov 8   ;;  %s2536_s22 = smov 12   ;;  %vm1347_vm3 = vcmask 31744   ;;  %vm1396_vm4 = vcmask 64512   ;;  %vm1445_vm5 = vcmask 97280   ;;  %vm1494_vm6 = vcmask 130048  }
  0x10   : > { %s4497_s12 = smov (!%p179_p4, %s2524_s12), 1  ;;  %s2537_s23 = smov 16   ;;  %vm1543_vm7 = vcmask 162816   ;;  %vm1592_vm8 = vcmask 195584   ;;  %vm1641_vm9 = vcmask 228352   ;;  %vm1690_vm10 = vcmask 261120  }
  0x11   : > { %s2404_s16 = smul.u32 220, %s4497_s12  ;;  %s2538_s24 = smov 20   ;;  %vm1766_vm11 = vcmask 293888  }
  0x12   : > { %s2539_s29 = smov 24   ;;  %s2540_s5 = smov 28  }
  0x13   : > { %s2586_s19 = scalar_lea.vmem %s4268_s0, %s2404_s16  ;;  %s2541_s6 = smov 32  }
  0x14   : > { %v2589_v0 = vld [vmem:[%s2586_s19 + $0x10] sm:$0xf]  ;;  %v200_v1 = vld [vmem:[%s2586_s19 + $0x14] sm:$0xf]  ;;  %v201_v2 = vld [vmem:[%s2586_s19 + $0x18] sm:$0xf] }
  0x15   : > { %v2594_v3 = vld [vmem:[%s2586_s19 + $0x1c] sm:$0xf]  ;;  %v2597_v4 = vcombine.low %v2589_v0, %v200_v1  ;;  %v195_v5 = vld [vmem:[%s2586_s19] sm:$0xf]  ;;  %v2601_v6 = vld [vmem:[%s2586_s19 + $0x4] sm:$0xf]  ;;  %v2603_v7 = vcombine.low %v200_v1, %v201_v2 }
  0x16   : > { %v2606_v8 = vcombine.low %v201_v2, %v2594_v3  ;;  %v197_v9 = vld [vmem:[%s2586_s19 + $0x8] sm:$0xf]  ;;  %v198_v10 = vld [vmem:[%s2586_s19 + $0xc] sm:$0xf]  ;;  %v2611_v11 = vcombine.low %v195_v5, %v2601_v6  ;;  %v2614_v12 = vld [vmem:[%s2586_s19 + $0x20] sm:$0xf] }
  0x17   : > { %4346 = vst [vmem:[#allocation2_spill] sm:$0xff] %v2597_v4  ;;  %v395_v13 = vshll.u32 %v2597_v4, 16  ;;  %v399_v14 = vshrl.u32 %v2597_v4, 16  ;;  %v2618_v15 = vcombine.low %v197_v9, %v198_v10  ;;  %v2621_v16 = vld [vmem:[%s2586_s19 + $0x24] sm:$0xf]  ;;  %v2627_v18 = vcombine.low %v198_v10, %v2589_v0  ;;  %s2405_s7 = smul.u32 384, %s4497_s12 }
  0x18   : > { %4347 = vst [vmem:[#allocation3_spill] sm:$0xff] %v2611_v11  ;;  %v2624_v17 = vld [vmem:[%s2586_s19 + $0x28] sm:$0xf]  ;;  %v403_v19 = vshll.u32 %v2606_v8, 16  ;;  %v380_v20 = vshrl.u32 %v2611_v11, 16  ;;  %v382_v21 = vshll.u32 %v2611_v11, 16  ;;  %v2634_v22 = vcombine.low %v2614_v12, %v2621_v16 }
  0x19   : > { %4348 = vst [vmem:[#allocation4_spill] sm:$0xff] %v2618_v15  ;;  %v2637_v23 = vld [vmem:[%s2586_s19 + $0x2c] sm:$0xf]  ;;  %v397_v24 = vrot.slane %v395_v13, 1  ;;  %v387_v25 = vshll.u32 %v2618_v15, 16  ;;  %v407_v26 = vshrl.u32 %v2606_v8, 16  ;;  %s4061_s12 = scalar_lea.vmem %s4271_s3, %s2405_s7 }
  0x1a   : > { %v391_v27 = vshrl.u32 %v2618_v15, 16  ;;  %v2643_v28 = vld [vmem:[%s2586_s19 + $0x30] sm:$0xf]  ;;  %v405_v29 = vrot.slane %v403_v19, 1  ;;  %v384_v30 = vrot.slane %v382_v21, 1  ;;  %v411_v31 = vshll.u32 %v2634_v22, 16 }
  0x1b   : > { %v2647_v32 = vld [vmem:[%s2586_s19 + $0x34] sm:$0xf]  ;;  %v2651_v33 = vcombine.low %v2624_v17, %v2637_v23  ;;  %v401_v34 = vor.u32 %v399_v14, %v397_v24  ;;  %v389_v35 = vrot.slane %v387_v25, 1  ;;  %v415_v37 = vshrl.u32 %v2634_v22, 16  ;;  %v2659_v38 = vld [vmem:[%s2586_s19 + $0x38] sm:$0xf] }
  0x1c   : > { %v2655_v36 = vcombine.low %v2643_v28, %v2647_v32  ;;  %v2662_v39 = vld [vmem:[%s2586_s19 + $0x3c] sm:$0xf]  ;;  %v385_v40 = vor.u32 %v384_v30, %v380_v20  ;;  %v409_v41 = vor.u32 %v407_v26, %v405_v29  ;;  %v413_v42 = vrot.slane %v411_v31, 1  ;;  %v2666_v44 = vld [vmem:[%s2586_s19 + $0x40] sm:$0xf] }
  0x1d   : > { %4349 = vst [vmem:[#allocation5_spill] sm:$0xff] %v2651_v33  ;;  %4351 = vst [vmem:[#allocation7_spill] sm:$0xff] %v2662_v39  ;;  %v419_v43 = vshll.u32 %v2651_v33, 16  ;;  %v2669_v45 = vld [vmem:[%s2586_s19 + $0x44] sm:$0xf]  ;;  %v406_v46 = vsel %vm378_vm0, %v401_v34, %v405_v29  ;;  %v393_v47 = vor.u32 %v391_v27, %v389_v35  ;;  %v423_v48 = vshrl.u32 %v2651_v33, 16 }
  0x1e   : > { %4350 = vst [vmem:[#allocation6_spill] sm:$0xff] %v2655_v36  ;;  %4352 = vst [vmem:[#allocation8_spill] sm:$0xff] %v2669_v45  ;;  %v427_v49 = vshll.u32 %v2655_v36, 16  ;;  %v2675_v50 = vld [vmem:[%s2586_s19 + $0x48] sm:$0xf]  ;;  %579 = vrot.lane.b32.xlu1 %v406_v46, %s2534_s20  ;;  %v390_v52 = vsel %vm378_vm0, %v385_v40, %v389_v35  ;;  %v417_v54 = vor.u32 %v415_v37, %v413_v42  ;;  %v431_v1 = vshrl.u32 %v2655_v36, 16 }
  0x1f   : > { %4353 = vst [vmem:[#allocation9_spill] sm:$0xff] %v2675_v50  ;;  %v214_v51 = vld [vmem:[%s2586_s19 + $0x4c] sm:$0xf]  ;;  %v421_v53 = vrot.slane %v419_v43, 1  ;;  %v215_v55 = vld [vmem:[%s2586_s19 + $0x50] sm:$0xf]  ;;  %575 = vrot.lane.b32.xlu0 %v390_v52, %s2534_s20  ;;  %v2684_v57 = vsel %vm378_vm0, %v409_v41, %v413_v42  ;;  %v2688_v59 = vcombine.low %v2659_v38, %v2662_v39  ;;  %v2692_v60 = vcombine.low %v2666_v44, %v2669_v45 }
  0x20   : > { %v216_v56 = vld [vmem:[%s2586_s19 + $0x54] sm:$0xf]  ;;  %4354 = vst [vmem:[#allocation10_spill] sm:$0xff] %v2684_v57  ;;  %v429_v58 = vrot.slane %v427_v49, 1  ;;  %v217_v61 = vld [vmem:[%s2586_s19 + $0x58] sm:$0xf]  ;;  %v398_v62 = vsel %vm378_vm0, %v393_v47, %v397_v24  ;;  %v2698_v2 = vcombine.low %v2675_v50, %v214_v51 }
  0x21   : > { %4355 = vst [vmem:[#allocation11_spill] sm:$0xff] %v2688_v59  ;;  %4356 = vst [vmem:[#allocation12_spill] sm:$0xff] %v2692_v60  ;;  %v425_v63 = vor.u32 %v423_v48, %v421_v53  ;;  %v218_v5 = vld [vmem:[%s2586_s19 + $0x5c] sm:$0xf]  ;;  %v219_v9 = vld [vmem:[%s2586_s19 + $0x60] sm:$0xf]  ;;  %v2705_v19 = vcombine.low %v215_v55, %v216_v56  ;;  %v2714_v24 = vsel %vm378_vm0, %v417_v54, %v421_v53 }
  0x22   : > { %4357 = vst [vmem:[#allocation13_spill] sm:$0xff] %v2698_v2  ;;  %v435_v10 = vshll.u32 %v2688_v59, 16  ;;  %v439_v13 = vshrl.u32 %v2688_v59, 16  ;;  %v443_v14 = vshll.u32 %v2692_v60, 16  ;;  %v220_v20 = vld [vmem:[%s2586_s19 + $0x64] sm:$0xf]  ;;  %581 = vrot.lane.b32.xlu1 %v2684_v57, %s2534_s20  ;;  %v433_v30 = vor.u32 %v431_v1, %v429_v58 }
  0x23   : > { %4358 = vst [vmem:[#allocation14_spill] sm:$0xff] %v2705_v19  ;;  %v2711_v21 = vsel %vm378_vm0, %v425_v63, %v429_v58  ;;  %4360 = vst [vmem:[#allocation16_spill] sm:$0xff] %v2714_v24  ;;  %v451_v25 = vshll.u32 %v2698_v2, 16  ;;  %v455_v26 = vshrl.u32 %v2698_v2, 16  ;;  %577 = vrot.lane.b32.xlu0 %v398_v62, %s2534_s20  ;;  %v459_v31 = vshll.u32 %v2705_v19, 16 }
  0x24   : > { %4359 = vst [vmem:[#allocation15_spill] sm:$0xff] %v2711_v21  ;;  %v437_v27 = vrot.slane %v435_v10, 1  ;;  %v445_v29 = vrot.slane %v443_v14, 1  ;;  %v447_v35 = vshrl.u32 %v2692_v60, 16  ;;  %v2721_v37 = vcombine.low %v217_v61, %v218_v5  ;;  %v221_v41 = vld [vmem:[%s2586_s19 + $0x68] sm:$0xf] }
  0x25   : > { %v453_v34 = vrot.slane %v451_v25, 1  ;;  %v2723_v40 = vcombine.low %v219_v9, %v220_v20  ;;  %v2727_v42 = vld [vmem:[%s2586_s19 + $0x6c] sm:$0xf]  ;;  %v2730_v46 = vld [vmem:[%s2586_s19 + $0x70] sm:$0xf]  ;;  %v461_v51 = vrot.slane %v459_v31, 1 }
  0x26   : > { %4361 = vst [vmem:[#allocation17_spill] sm:$0xff] %v2721_v37  ;;  %v441_v43 = vor.u32 %v439_v13, %v437_v27  ;;  %v2733_v47 = vld [vmem:[%s2586_s19 + $0x74] sm:$0xf]  ;;  %v2736_v48 = vld [vmem:[%s2586_s19 + $0x78] sm:$0xf]  ;;  %585 = vrot.lane.b32.xlu1 %v2711_v21, %s2534_s20  ;;  %v467_v52 = vshll.u32 %v2721_v37, 16  ;;  %v2753_v61 = vcombine.low %v221_v41, %v2727_v42  ;;  %v2762_v1 = vsel %vm378_vm0, %v433_v30, %v437_v27 }
  0x27   : > { %4362 = vst [vmem:[#allocation18_spill] sm:$0xff] %v2723_v40  ;;  %v457_v49 = vor.u32 %v455_v26, %v453_v34  ;;  %v475_v53 = vshll.u32 %v2723_v40, 16  ;;  %v2743_v54 = vld [vmem:[%s2586_s19 + $0x7c] sm:$0xf]  ;;  %583 = vrot.lane.b32.xlu0 %v2714_v24, %s2534_s20  ;;  %v471_v56 = vshrl.u32 %v2721_v37, 16  ;;  %v463_v58 = vshrl.u32 %v2705_v19, 16 }
  0x28   : > { %v2748_v55 = vsel %vm378_vm0, %v441_v43, %v445_v29  ;;  %4364 = vst [vmem:[#allocation20_spill] sm:$0xff] %v2753_v61  ;;  %v2756_v62 = vld [vmem:[%s2586_s19 + $0x80] sm:$0xf]  ;;  %v2759_v63 = vld [vmem:[%s2586_s19 + $0x84] sm:$0xf]  ;;  %4365 = vst [vmem:[#allocation21_spill] sm:$0xff] %v2762_v1  ;;  %v449_v5 = vor.u32 %v447_v35, %v445_v29  ;;  %v2766_v10 = vcombine.low %v2730_v46, %v2733_v47 }
  0x29   : > { %4363 = vst [vmem:[#allocation19_spill] sm:$0xff] %v2748_v55  ;;  %v469_v9 = vrot.slane %v467_v52, 1  ;;  %v483_v13 = vshll.u32 %v2753_v61, 16  ;;  %v2771_v14 = vcombine.low %v2736_v48, %v2743_v54  ;;  %v2774_v20 = vld [vmem:[%s2586_s19 + $0x88] sm:$0xf]  ;;  %v2779_v25 = vsel %vm378_vm0, %v457_v49, %v461_v51 }
  0x2a   : > { %589 = vrot.lane.b32.xlu1 %v2748_v55, %s2534_s20  ;;  %4367 = vst [vmem:[#allocation23_spill] sm:$0xff] %v2779_v25  ;;  %v477_v26 = vrot.slane %v475_v53, 1  ;;  %v487_v27 = vshrl.u32 %v2753_v61, 16  ;;  %v2784_v29 = vcombine.low %v2756_v62, %v2759_v63  ;;  %v2787_v30 = vld [vmem:[%s2586_s19 + $0x8c] sm:$0xf]  ;;  %v491_v43 = vshll.u32 %v2766_v10, 16 }
  0x2b   : > { %4366 = vst [vmem:[#allocation22_spill] sm:$0xff] %v2771_v14  ;;  %v2790_v31 = vld [vmem:[%s2586_s19 + $0x90] sm:$0xf]  ;;  %587 = vrot.lane.b32.xlu0 %v2762_v1, %s2534_s20  ;;  %v473_v35 = vor.u32 %v471_v56, %v469_v9  ;;  %v485_v41 = vrot.slane %v483_v13, 1  ;;  %v499_v49 = vshll.u32 %v2771_v14, 16  ;;  %v2800_v53 = vsel %vm378_vm0, %v449_v5, %v453_v34 }
  0x2c   : > { %4368 = vst [vmem:[#allocation24_spill] sm:$0xff] %v2784_v29  ;;  %v2797_v52 = vld [vmem:[%s2586_s19 + $0x94] sm:$0xf]  ;;  %4369 = vst [vmem:[#allocation25_spill] sm:$0xff] %v2800_v53  ;;  %v465_v37 = vor.u32 %v463_v58, %v461_v51  ;;  %v479_v19 = vshrl.u32 %v2723_v40, 16  ;;  %v503_v56 = vshrl.u32 %v2771_v14, 16  ;;  %v2810_v11 = vcombine.low %v2774_v20, %v2787_v30 }
  0x2d   : > { %v2804_v45 = vld [vmem:[%s2586_s19 + $0x98] sm:$0xf]  ;;  %v501_v50 = vrot.slane %v499_v49, 1  ;;  %v507_v13 = vshll.u32 %v2784_v29, 16  ;;  %v2813_v34 = vld [vmem:[%s2586_s19 + $0x9c] sm:$0xf]  ;;  %v2819_v51 = vcombine.low %v2790_v31, %v2797_v52  ;;  %v2824_v58 = vsel %vm378_vm0, %v473_v35, %v477_v26 }
  0x2e   : > { %4370 = vst [vmem:[#allocation26_spill] sm:$0xff] %v2810_v11  ;;  %593 = vrot.lane.b32.xlu1 %v2779_v25, %s2534_s20  ;;  %4372 = vst [vmem:[#allocation28_spill] sm:$0xff] %v2824_v58  ;;  %v489_v5 = vor.u32 %v487_v27, %v485_v41  ;;  %v493_v49 = vrot.slane %v491_v43, 1  ;;  %v515_v2 = vshll.u32 %v2810_v11, 16  ;;  %v2828_v55 = vld [vmem:[%s2586_s19 + $0xa8] sm:$0xf]  ;;  %v2834_v25 = vsel %vm378_vm0, %v465_v37, %v469_v9 }
  0x2f   : > { %4371 = vst [vmem:[#allocation27_spill] sm:$0xff] %v2819_v51  ;;  %591 = vrot.lane.b32.xlu0 %v2800_v53, %s2534_s20  ;;  %4373 = vst [vmem:[#allocation29_spill] sm:$0xff] %v2828_v55  ;;  %v2831_v60 = vld [vmem:[%s2586_s19 + $0xac] sm:$0xf]  ;;  %v481_v59 = vor.u32 %v479_v19, %v477_v26  ;;  %v495_v1 = vshrl.u32 %v2766_v10, 16  ;;  %v2845_v27 = vcombine.low %v2804_v45, %v2813_v34  ;;  %v509_v43 = vrot.slane %v507_v13, 1 }
  0x30   : > { %4374 = vst [vmem:[#allocation30_spill] sm:$0xff] %v2831_v60  ;;  %4375 = vst [vmem:[#allocation31_spill] sm:$0xff] %v2834_v25  ;;  %v2838_v21 = vld [vmem:[%s2586_s19 + $0xa0] sm:$0xf]  ;;  %v2841_v53 = vld [vmem:[%s2586_s19 + $0xa4] sm:$0xf]  ;;  %v505_v35 = vor.u32 %v503_v56, %v501_v50  ;;  %v2857_v26 = vcombine.low %v2828_v55, %v2831_v60  ;;  %v2862_v56 = vsel %vm378_vm0, %v489_v5, %v493_v49 }
  0x31   : > { %4376 = vst [vmem:[#allocation32_spill] sm:$0xff] %v2841_v53  ;;  %4377 = vst [vmem:[#allocation33_spill] sm:$0xff] %v2845_v27  ;;  %v2848_v24 = vld [vmem:[%s2586_s19 + $0xb0] sm:$0xf]  ;;  %v519_v19 = vshrl.u32 %v2810_v11, 16  ;;  %v523_v37 = vshll.u32 %v2819_v51, 16  ;;  %v2866_v57 = vcombine.low %v2838_v21, %v2841_v53  ;;  %v2870_v11 = vsel %vm378_vm0, %v481_v59, %v485_v41 }
  0x32   : > { %4378 = vst [vmem:[#allocation34_spill] sm:$0xff] %v2848_v24  ;;  %597 = vrot.lane.b32.xlu1 %v2824_v58, %s2534_s20  ;;  %v240_v9 = vld [vmem:[%s2586_s19 + $0xb4] sm:$0xf]  ;;  %4379 = vst [vmem:[#allocation35_spill] sm:$0xff] %v2857_v26  ;;  %v517_v13 = vrot.slane %v515_v2, 1  ;;  %v531_v58 = vshll.u32 %v2845_v27, 16  ;;  %v497_v14 = vor.u32 %v495_v1, %v493_v49 }
  0x33   : > { %595 = vrot.lane.b32.xlu0 %v2834_v25, %s2534_s20  ;;  %4380 = vst [vmem:[#allocation36_spill] sm:$0xff] %v2862_v56  ;;  %4381 = vst [vmem:[#allocation37_spill] sm:$0xff] %v2866_v57  ;;  %v511_v60 = vshrl.u32 %v2784_v29, 16  ;;  %v241_v55 = vld [vmem:[%s2586_s19 + $0xb8] sm:$0xf]  ;;  %v2876_v25 = vsel %vm378_vm0, %v505_v35, %v509_v43  ;;  %v527_v5 = vshrl.u32 %v2819_v51, 16  ;;  %v2883_v59 = vcombine.low %v2848_v24, %v240_v9 }
  0x34   : > { %4382 = vst [vmem:[#allocation38_spill] sm:$0xff] %v2870_v11  ;;  %v242_v39 = vld [vmem:[%s2586_s19 + $0xbc] sm:$0xf]  ;;  %v525_v2 = vrot.slane %v523_v37, 1  ;;  %v535_v53 = vshrl.u32 %v2845_v27, 16  ;;  %v547_v1 = vshll.u32 %v2857_v26, 16  ;;  %v521_v41 = vor.u32 %v519_v19, %v517_v13 }
  0x35   : > { %4383 = vst [vmem:[#allocation39_spill] sm:$0xff] %v2883_v59  ;;  %v533_v49 = vrot.slane %v531_v58, 1  ;;  %v539_v35 = vshll.u32 %v2866_v57, 16  ;;  %v2889_v51 = vcombine.low %v241_v55, %v242_v39  ;;  %v513_v37 = vor.u32 %v511_v60, %v509_v43 }
  0x36   : > { %601 = vrot.lane.b32.xlu1 %v2862_v56, %s2534_s20  ;;  %v2892_v56 = vsel %vm378_vm0, %v497_v14, %v501_v50  ;;  %v529_v9 = vor.u32 %v527_v5, %v525_v2  ;;  %v549_v24 = vrot.slane %v547_v1, 1  ;;  %v551_v27 = vshrl.u32 %v2857_v26, 16 }
  0x37   : > { %599 = vrot.lane.b32.xlu0 %v2870_v11, %s2534_s20  ;;  %4384 = vst [vmem:[#allocation40_spill] sm:$0xff] %v2889_v51  ;;  %4385 = vst [vmem:[#allocation41_spill] sm:$0xff] %v2892_v56  ;;  %v555_v29 = vshll.u32 %v2883_v59, 16  ;;  %v2462_v11 = vld [vmem:[%s2586_s19 + $0xc0] ss:$0 sps:$4 sm:$0x11]   ;;  %v2902_v39 = vsel %vm378_vm0, %v521_v41, %v525_v2  ;;  %v537_v55 = vor.u32 %v535_v53, %v533_v49 }
  0x38   : > { %v541_v50 = vrot.slane %v539_v35, 1  ;;  %v563_v60 = vshll.u32 %v2889_v51, 16  ;;  %v2906_v14 = vsel %vm378_vm0, %v513_v37, %v517_v13  ;;  %v543_v58 = vshrl.u32 %v2866_v57, 16 }
  0x39   : > { %v2912_v43 = vsel %vm378_vm0, %v529_v9, %v533_v49  ;;  %v553_v19 = vor.u32 %v551_v27, %v549_v24  ;;  %v557_v5 = vrot.slane %v555_v29, 1  ;;  %v571_v2 = vshll.u32 %v2462_v11, 16  ;;  %v244_v49 = vld [vmem:[%s2586_s19] sm:$0xe] }
  0x3a   : > { %605 = vrot.lane.b32.xlu1 %v2876_v25, %s2534_s20  ;;  %v2917_v53 = vsel %vm378_vm0, %v537_v55, %v541_v50  ;;  %v565_v1 = vrot.slane %v563_v60, 1  ;;  %v567_v13 = vshrl.u32 %v2889_v51, 16  ;;  %v808_v41 = vshll.u32 %v2627_v18, 16 }
  0x3b   : > { %603 = vrot.lane.b32.xlu0 %v2892_v56, %s2534_s20  ;;  %4386 = vst [vmem:[#allocation42_spill] sm:$0xff] %v2917_v53  ;;  %v545_v35 = vor.u32 %v543_v58, %v541_v50  ;;  %v559_v37 = vshrl.u32 %v2883_v59, 16  ;;  %v806_v27 = vshrl.u32 %v2627_v18, 16  ;;  %v813_v11 = vshll.u32 %v2603_v7, 16  ;;  %v249_v59 = vld [vmem:[%s2586_s19 + $0xc] sm:$0xe] }
  0x3c   : > { %v2928_v29 = vsel %vm378_vm0, %v553_v19, %v557_v5  ;;  %v573_v9 = vrot.slane %v571_v2, 1  ;;  %v810_v55 = vrot.slane %v808_v41, 1  ;;  %v2932_v50 = vor.u32 %v567_v13, %v565_v1 }
  0x3d   : > { %4387 = vst [vmem:[#allocation43_spill] sm:$0xff] %v2928_v29  ;;  %v815_v60 = vrot.slane %v813_v11, 1  ;;  %v2253_v58 = vcombine.low %v244_v49, %v2601_v6  ;;  %v2937_v56 = vcombine.low %v2594_v3, %v2614_v12  ;;  %v817_v51 = vshrl.u32 %v2603_v7, 16 }
  0x3e   : > { %609 = vrot.lane.b32.xlu1 %v2902_v39, %s2534_s20  ;;  %4388 = vst [vmem:[#allocation44_spill] sm:$0xff] %v2932_v50  ;;  %v2942_v19 = vsel %vm378_vm0, %v545_v35, %v549_v24  ;;  %v561_v2 = vor.u32 %v559_v37, %v557_v5  ;;  %v628_v41 = vrot.slane %v2618_v15, 1  ;;  %v811_v11 = vor.u32 %v810_v55, %v806_v27 }
  0x3f   : > { %607 = vrot.lane.b32.xlu0 %v2906_v14, %s2534_s20  ;;  %v630_v26 = vrot.slane %v2597_v4, 1  ;;  %v632_v13 = vrot.slane %v2606_v8, 1  ;;  %v821_v6 = vshll.u32 %v2937_v56, 16  ;;  %v2951_v12 = vrot.slane %v2634_v22, 1 }
  0x40   : > { %v2954_v24 = vsel %vm378_vm0, %v811_v11, %v815_v60  ;;  %v2279_v5 = vcombine.low %v249_v59, %v2589_v0  ;;  %v1053_v35 = vrot.slane %v2603_v7, 1  ;;  %v627_v37 = vrot.slane %v2253_v58, 1 }
  0x41   : > { %v823_v49 = vrot.slane %v821_v6, 1  ;;  %v2963_v27 = vsel %vm378_vm0, %v561_v2, %v565_v1  ;;  %v636_v11 = vrot.slane %v2651_v33, 1  ;;  %v635_v58 = vsel %vm626_vm1, %v632_v13, %v2951_v12 }
  0x42   : > { %613 = vrot.lane.b32.xlu1 %v2917_v53, %s2534_s20  ;;  %v819_v53 = vor.u32 %v817_v51, %v815_v60  ;;  %v574_v51 = vsel %vm378_vm0, %v2932_v50, %v573_v9  ;;  %4389 = vst [vmem:[#allocation45_spill] sm:$0xff] %v2963_v27  ;;  %v1052_v55 = vrot.slane %v2279_v5, 1  ;;  %v1055_v60 = vrot.slane %v2937_v56, 1 }
  0x43   : > { %611 = vrot.lane.b32.xlu0 %v2912_v43, %s2534_s20  ;;  %v631_v9 = vsel %vm626_vm1, %v628_v41, %v630_v26  ;;  %v629_v6 = vsel %vm626_vm1, %v627_v37, %v628_v41  ;;  %v2987_v5 = vcombine.low %v2759_v63, %v2774_v20  ;;  %v2997_v0 = vcombine.low %v2787_v30, %v2790_v31 }
  0x44   : > { %v2969_v59 = vsel %vm378_vm0, %v819_v53, %v823_v49  ;;  %v2976_v1 = vsel %vm626_vm1, %v1052_v55, %v1053_v35  ;;  %v2979_v2 = vsel %vm626_vm1, %v1053_v35, %v1055_v60  ;;  %v633_v53 = vsel %vm626_vm1, %v630_v26, %v632_v13 }
  0x45   : > { %v652_v55 = vrot.slane %v2753_v61, 1  ;;  %v825_v35 = vshrl.u32 %v2937_v56, 16  ;;  %v3001_v41 = vcombine.low %v2637_v23, %v2643_v28  ;;  %v925_v63 = vshll.u32 %v2987_v5, 16 }
  0x46   : > { %617 = vrot.lane.b32.xlu1 %v2928_v29, %s2534_s20  ;;  %v933_v30 = vshll.u32 %v2997_v0, 16 }
  0x47   : > { %615 = vrot.lane.b32.xlu0 %v2942_v19, %s2534_s20  ;;  %v827_v13 = vor.u32 %v825_v35, %v823_v49  ;;  %v3012_v23 = vrot.slane %v925_v63, 1  ;;  %v837_v37 = vshll.u32 %v3001_v41, 16  ;;  %v1059_v49 = vrot.slane %v3001_v41, 1 }
  0x48   : > { %v935_v50 = vrot.slane %v933_v30, 1  ;;  %v3021_v35 = vcombine.low %v2727_v42, %v2730_v46  ;;  %v3030_v30 = vcombine.low %v2733_v47, %v2736_v48  ;;  %v4392_v46 = vrot.slane %v2655_v36, 1 }
  0x49   : > { %v3048_v47 = vsel %vm626_vm1, %v2951_v12, %v636_v11 }
  0x4a   : > { %621 = vrot.lane.b32.xlu1 %v574_v51, %s2534_s20  ;;  %v2991_v51 = vcombine.low %v2621_v16, %v2624_v17  ;;  %v929_v16 = vshrl.u32 %v2987_v5, 16  ;;  %4390 = vst [vmem:[#allocation46_spill] sm:$0xff] %v3021_v35  ;;  %v839_v17 = vrot.slane %v837_v37, 1  ;;  %v3080_v37 = vcombine.low %v2647_v32, %v2659_v38 }
  0x4b   : > { %619 = vrot.lane.b32.xlu0 %v2963_v27, %s2534_s20  ;;  %v4391_v27 = vrot.slane %v2987_v5, 1  ;;  %v3094_v38 = vcombine.low %v2813_v34, %v2838_v21 }
  0x4c   : > { %v829_v20 = vshll.u32 %v2991_v51, 16  ;;  %v833_v31 = vshrl.u32 %v2991_v51, 16  ;;  %v1057_v4 = vrot.slane %v2991_v51, 1  ;;  %v931_v63 = vor.u32 %v929_v16, %v3012_v23 }
  0x4d   : > { %v3044_v16 = vsel %vm626_vm1, %v636_v11, %v4392_v46  ;;  %v3070_v11 = vcombine.low %v2797_v52, %v2804_v45  ;;  %v909_v45 = vshll.u32 %v3030_v30, 16  ;;  %v845_v32 = vshll.u32 %v3080_v37, 16 }
  0x4e   : > { %678 = vrot.lane.b32.xlu1 %v631_v9, %s2535_s21  ;;  %v831_v28 = vrot.slane %v829_v20, 1  ;;  %v1083_v9 = vrot.slane %v2997_v0, 1  ;;  %v3033_v26 = vsel %vm626_vm1, %v1055_v60, %v1057_v4  ;;  %v3051_v48 = vsel %vm378_vm0, %v931_v63, %v935_v50 }
  0x4f   : > { %676 = vrot.lane.b32.xlu0 %v629_v6, %s2535_s21  ;;  %v3054_v60 = vsel %vm626_vm1, %v1057_v4, %v1059_v49  ;;  %v941_v52 = vshll.u32 %v3070_v11, 16  ;;  %v849_v15 = vshrl.u32 %v3080_v37, 16  ;;  %v847_v61 = vrot.slane %v845_v32, 1 }
  0x50   : > { %v3024_v6 = vsel %vm378_vm0, %v827_v13, %v831_v28  ;;  %v835_v20 = vor.u32 %v833_v31, %v831_v28  ;;  %v3038_v42 = vsel %vm626_vm1, %v4391_v27, %v1083_v9  ;;  %v4393_v27 = vrot.slane %v2766_v10, 1 }
  0x51   : > { %v4395_v31 = vrot.slane %v2723_v40, 1  ;;  %v901_v28 = vshll.u32 %v3021_v35, 16  ;;  %v943_v46 = vrot.slane %v941_v52, 1  ;;  %v949_v40 = vshll.u32 %v3094_v38, 16 }
  0x52   : > { %682 = vrot.lane.b32.xlu1 %v635_v58, %s2535_s21  ;;  %v3059_v58 = vsel %vm626_vm1, %v652_v55, %v4393_v27  ;;  %v3066_v13 = vsel %vm378_vm0, %v835_v20, %v839_v17  ;;  %v945_v20 = vshrl.u32 %v3070_v11, 16  ;;  %v851_v32 = vor.u32 %v849_v15, %v847_v61 }
  0x53   : > { %680 = vrot.lane.b32.xlu0 %v633_v53, %s2535_s21  ;;  %4394 = vst [vmem:[#allocation47_spill] sm:$0xff] %v3059_v58  ;;  %v3063_v53 = vcombine.low %v2743_v54, %v2756_v62  ;;  %v3075_v4 = vsel %vm626_vm1, %v4395_v31, %v652_v55  ;;  %v937_v54 = vshrl.u32 %v2997_v0, 16  ;;  %v905_v62 = vshrl.u32 %v3021_v35, 16  ;;  %v4397_v31 = vld [vmem:[#allocation7_spill] sm:$0xff] }
  0x54   : > { %4396 = vst [vmem:[#allocation48_spill] sm:$0xff] %v3075_v4  ;;  %v841_v55 = vshrl.u32 %v3001_v41, 16  ;;  %v3099_v29 = vcombine.low %v4397_v31, %v2666_v44  ;;  %v3107_v21 = vrot.slane %v901_v28, 1 }
  0x55   : > { %v939_v63 = vor.u32 %v937_v54, %v935_v50  ;;  %v1085_v50 = vrot.slane %v3070_v11, 1  ;;  %v1061_v54 = vrot.slane %v3080_v37, 1 }
  0x56   : > { %686 = vrot.lane.b32.xlu1 %v3044_v16, %s2535_s21  ;;  %v843_v27 = vor.u32 %v841_v55, %v839_v17  ;;  %4398 = vst [vmem:[#allocation7_spill] sm:$0xff] %v3107_v21  ;;  %v947_v17 = vor.u32 %v945_v20, %v943_v46  ;;  %v853_v44 = vshll.u32 %v3099_v29, 16  ;;  %v3118_v55 = vrot.slane %v949_v40, 1 }
  0x57   : > { %684 = vrot.lane.b32.xlu0 %v3048_v47, %s2535_s21  ;;  %v3110_v34 = vsel %vm378_vm0, %v939_v63, %v943_v46  ;;  %v3121_v31 = vsel %vm626_vm1, %v1083_v9, %v1085_v50  ;;  %v3126_v63 = vsel %vm626_vm1, %v1059_v49, %v1061_v54  ;;  %v4331_v20 = vrot.slane %v3094_v38, 1 }
  0x58   : > { %v3116_v52 = vsel %vm378_vm0, %v843_v27, %v847_v61  ;;  %v3123_v28 = vrot.slane %v853_v44, 1  ;;  %v4330_v46 = vrot.slane %v3099_v29, 1  ;;  %v907_v9 = vor.u32 %v905_v62, %v3107_v21 }
  0x59   : > { %v3143_v40 = vsel %vm626_vm1, %v1085_v50, %v4331_v20  ;;  %v911_v49 = vrot.slane %v909_v45, 1  ;;  %v913_v27 = vshrl.u32 %v3030_v30, 16  ;;  %v4329_v62 = vrot.slane %v3021_v35, 1 }
  0x5a   : > { %702 = vrot.lane.b32.xlu1 %v3059_v58, %s2535_s21  ;;  %v3132_v58 = vsel %vm378_vm0, %v947_v17, %v3118_v55  ;;  %v3138_v15 = vsel %vm378_vm0, %v851_v32, %v3123_v28  ;;  %v3148_v61 = vsel %vm626_vm1, %v1061_v54, %v4330_v46  ;;  %v917_v17 = vshll.u32 %v3063_v53, 16  ;;  %v4422_v46 = vld [vmem:[#allocation11_spill] sm:$0xff] }
  0x5b   : > { %700 = vrot.lane.b32.xlu0 %v3075_v4, %s2535_s21  ;;  %v912_v50 = vsel %vm378_vm0, %v907_v9, %v911_v49  ;;  %v915_v54 = vor.u32 %v913_v27, %v911_v49  ;;  %v1077_v45 = vrot.slane %v3030_v30, 1  ;;  %v1079_v32 = vrot.slane %v3063_v53, 1  ;;  %v254_v9 = vld [vmem:[%s2586_s19 + $0x18] sm:$0xe]  ;;  %v4400_v49 = vld [vmem:[#allocation24_spill] sm:$0xff] }
  0x5c   : > { %v3160_v44 = vrot.slane %v917_v17, 1  ;;  %v2284_v17 = vcombine.low %v254_v9, %v2594_v3  ;;  %v4402_v3 = vld [vmem:[#allocation16_spill] sm:$0xff] }
  0x5e   : > { %778 = vrot.lane.b32.xlu1 %v3021_v35, %s2536_s22 }
  0x5f   : > { %754 = vrot.lane.b32.xlu0 %v2627_v18, %s2536_s22  ;;  %v920_v18 = vsel %vm378_vm0, %v915_v54, %v3160_v44 }
  0x62   : > { %780 = vrot.lane.b32.xlu1 %v3030_v30, %s2536_s22  ;;  %v4399_v30 = vld [vmem:[#allocation22_spill] sm:$0xff] }
  0x63   : > { %756 = vrot.lane.b32.xlu0 %v2603_v7, %s2536_s22  ;;  %v1078_v7 = vsel %vm626_vm1, %v4329_v62, %v1077_v45  ;;  %v656_v54 = vrot.slane %v4399_v30, 1 }
  0x66   : > { %1025 = vrot.lane.b32.xlu1 %v912_v50, %s2537_s23  ;;  %v4401_v50 = vld [vmem:[#allocation10_spill] sm:$0xff] }
  0x67   : > { %1001 = vrot.lane.b32.xlu0 %v2954_v24, %s2537_s23  ;;  %v1080_v24 = vsel %vm626_vm1, %v1077_v45, %v1079_v32  ;;  %v1289_v45 = vrot.slane %v2284_v17, 1 }
  0x6a   : > { %1027 = vrot.lane.b32.xlu1 %v920_v18, %s2537_s23  ;;  %v658_v18 = vrot.slane %v4400_v49, 1 }
  0x6b   : > { %1003 = vrot.lane.b32.xlu0 %v2969_v59, %s2537_s23  ;;  %v2480_v59 = vld [vmem:[%s4269_s1] sm:$0xff]  }
  0x6c   : > { %2342 = vmatprep.subr.bf16.mxu0 %v2480_v59  ;;  %2396 = vmatprep.subr.bf16.mxu1 %v2480_v59 }
  0x6d   : > { %2343 = vmatpush3.bf16.msra.mxu0 %v2480_v59  ;;  %2399 = vmatpush3.bf16.msra.mxu1 %v2480_v59 }
  0x6e   : > { %1125 = vrot.lane.b32.xlu1 %v1078_v7, %s2538_s24  ;;  %v659_v7 = vsel %vm626_vm1, %v656_v54, %v658_v18 }
  0x6f   : > { %1101 = vrot.lane.b32.xlu0 %v2976_v1, %s2538_s24  ;;  %v2481_v1 = vld [vmem:[%s4269_s1 + $0x8] sm:$0xff]  }
  0x70   : > { %2344 = vmatprep.subr.bf16.mxu0 %v2481_v1  ;;  %2397 = vmatprep.subr.bf16.mxu1 %v2481_v1 }
  0x71   : > { %2345 = vmatpush3.bf16.msra.mxu0 %v2481_v1  ;;  %2400 = vmatpush3.bf16.msra.mxu1 %v2481_v1 }
  0x72   : > { %1127 = vrot.lane.b32.xlu1 %v1080_v24, %s2538_s24  ;;  %v4403_v24 = vld [vmem:[#allocation26_spill] sm:$0xff] }
  0x73   : > { %1103 = vrot.lane.b32.xlu0 %v2979_v2, %s2538_s24  ;;  %v2482_v2 = vld [vmem:[%s4269_s1 + $0x10] ss:$0 sps:$4 sm:$0x33]   ;;  %v660_v59 = vrot.slane %v4403_v24, 1 }
  0x74   : > { %2402 = vmatprep.subr.msk.bf16.mxu0 %vm1815_vm2, %v2482_v2  ;;  %v1817_v27 = vsel %vm1815_vm2, %v2482_v2, 0  ;;  %2403 = vmatprep.subr.msk.bf16.mxu1 %vm1815_vm2, %v2482_v2 }
  0x75   : > { %2347 = vmatpush3.bf16.msra.mxu0 %v1817_v27  ;;  %2401 = vmatpush3.bf16.msra.mxu1 %v1817_v27  ;;  %v3221_v1 = vsel %vm626_vm1, %v658_v18, %v660_v59 }
  0x76   : > { %1182 = vrot.lane.b32.xlu1 %v4399_v30, %s2539_s29 }
  0x77   : > { %1158 = vrot.lane.b32.xlu0 %v2606_v8, %s2539_s29 }
  0x7a   : > { %1184 = vrot.lane.b32.xlu1 %v4400_v49, %s2539_s29 }
  0x7b   : > { %1160 = vrot.lane.b32.xlu0 %v2634_v22, %s2539_s29 }
  0x7e   : > { %1262 = vrot.lane.b32.xlu1 %v2876_v25, %s2540_s5  ;;  %v1290_v25 = vsel %vm626_vm1, %v1289_v45, %v2951_v12  ;;  %v921_v12 = vshrl.u32 %v3063_v53, 16 }
  0x7f   : > { %1238 = vrot.lane.b32.xlu0 %v4401_v50, %s2540_s5 }
  0x82   : > { %1264 = vrot.lane.b32.xlu1 %v2906_v14, %s2540_s5  ;;  %v4404_v14 = vrot.slane %v2766_v10, 1 }
  0x83   : > { %1240 = vrot.lane.b32.xlu0 %v4402_v3, %s2540_s5 }
  0x84   : > { %v3230_v9 = vsel %vm626_vm1, %v4404_v14, %v656_v54 }
  0x85   : > { %4405 = vst [vmem:[#allocation22_spill] sm:$0xff] %v3230_v9 }
  0x86   : > { %1323 = vrot.lane.b32.xlu1 %v659_v7, %s2541_s6 }
  0x87   : > { %1299 = vrot.lane.b32.xlu0 %v1290_v25, %s2541_s6  ;;  %v4416_v25 = vld [vmem:[#allocation15_spill] sm:$0xff] }
  0x8a   : > { %1325 = vrot.lane.b32.xlu1 %v3221_v1, %s2541_s6 }
  0x8b   : > { %1301 = vrot.lane.b32.xlu0 %v3048_v47, %s2541_s6  ;;  %v923_v47 = vor.u32 %v921_v12, %v3160_v44 }
  0x8d   : > { %v928_v54 = vsel %vm378_vm0, %v923_v47, %v3012_v23 }
  0x8e   : > { %706 = vrot.lane.b32.xlu1 %v659_v7, %s2535_s21 }
  0x8f   : > { %704 = vrot.lane.b32.xlu0 %v3230_v9, %s2535_s21  ;;  %v666_v9 = vrot.slane %v2866_v57, 1 }
  0x90   : > { %v3236_v2 = vpop.permute.xlu1 %579 }
  0x91   : > { %v3238_v27 = vpop.permute.xlu0 %575 }
  0x92   : > { %782 = vrot.lane.b32.xlu1 %v3063_v53, %s2536_s22 }
  0x93   : > { %758 = vrot.lane.b32.xlu0 %v2937_v56, %s2536_s22 }
  0x94   : > { %v3245_v17 = vpop.permute.xlu1 %581 }
  0x95   : > { %v3247_v50 = vpop.permute.xlu0 %577 }
  0x96   : > { %784 = vrot.lane.b32.xlu1 %v2987_v5, %s2536_s22 }
  0x97   : > { %760 = vrot.lane.b32.xlu0 %v2991_v51, %s2536_s22  ;;  %v4409_v51 = vrot.slane %v2987_v5, 1 }
  0x98   : > { %v3255_v18 = vpop.permute.xlu1 %585 }
  0x99   : > { %4406 = vst [vmem:[#allocation24_spill] sm:$0xff] %v3255_v18  ;;  %v3257_v45 = vpop.permute.xlu0 %583  ;;  %v1082_v23 = vsel %vm626_vm1, %v1079_v32, %v4409_v51  ;;  %v4414_v32 = vld [vmem:[#allocation27_spill] sm:$0xff] }
  0x9a   : > { %1029 = vrot.lane.b32.xlu1 %v928_v54, %s2537_s23  ;;  %v662_v14 = vrot.slane %v4414_v32, 1  ;;  %v4419_v54 = vld [vmem:[#allocation21_spill] sm:$0xff] }
  0x9b   : > { %1005 = vrot.lane.b32.xlu0 %v3024_v6, %s2537_s23 }
  0x9c   : > { %v3262_v56 = vpop.permute.xlu1 %589  ;;  %v663_v51 = vsel %vm626_vm1, %v660_v59, %v662_v14  ;;  %v4425_v59 = vrot.slane %v2655_v36, 1 }
  0x9d   : > { %4407 = vst [vmem:[#allocation10_spill] sm:$0xff] %v3262_v56  ;;  %v3264_v44 = vpop.permute.xlu0 %587  ;;  %v4431_v56 = vld [vmem:[#allocation25_spill] sm:$0xff] }
  0x9e   : > { %4408 = vst [vmem:[#allocation16_spill] sm:$0xff] %v3264_v44  ;;  %1031 = vrot.lane.b32.xlu1 %v3051_v48, %s2537_s23  ;;  %v4432_v44 = vld [vmem:[#allocation35_spill] sm:$0xff] }
  0x9f   : > { %1007 = vrot.lane.b32.xlu0 %v3066_v13, %s2537_s23 }
  0xa0   : > { %v3275_v3 = vpop.permute.xlu1 %593 }
  0xa1   : > { %4410 = vst [vmem:[#allocation49_spill] sm:$0xff] %v3275_v3  ;;  %v3277_v7 = vpop.permute.xlu0 %591 }
  0xa2   : > { %4411 = vst [vmem:[#allocation50_spill] sm:$0xff] %v3277_v7  ;;  %1129 = vrot.lane.b32.xlu1 %v1082_v23, %s2538_s24  ;;  %v4420_v23 = vld [vmem:[#allocation33_spill] sm:$0xff]  ;;  %v4429_v7 = vld [vmem:[#allocation42_spill] sm:$0xff] }
  0xa3   : > { %1105 = vrot.lane.b32.xlu0 %v3033_v26, %s2538_s24  ;;  %v664_v62 = vrot.slane %v4420_v23, 1 }
  0xa4   : > { %v3282_v6 = vpop.permute.xlu1 %597 }
  0xa5   : > { %4412 = vst [vmem:[#allocation51_spill] sm:$0xff] %v3282_v6  ;;  %v3284_v48 = vpop.permute.xlu0 %595 }
  0xa6   : > { %4413 = vst [vmem:[#allocation52_spill] sm:$0xff] %v3284_v48  ;;  %1131 = vrot.lane.b32.xlu1 %v3038_v42, %s2538_s24 }
  0xa7   : > { %1107 = vrot.lane.b32.xlu0 %v3054_v60, %s2538_s24 }
  0xa8   : > { %v3290_v5 = vpop.permute.xlu1 %601 }
  0xa9   : > { %v3292_v53 = vpop.permute.xlu0 %599 }
  0xaa   : > { %1186 = vrot.lane.b32.xlu1 %v4403_v24, %s2539_s29 }
  0xab   : > { %1162 = vrot.lane.b32.xlu0 %v2651_v33, %s2539_s29  ;;  %v4439_v33 = vld [vmem:[#allocation8_spill] sm:$0xff] }
  0xac   : > { %v3298_v26 = vpop.permute.xlu1 %605 }
  0xad   : > { %v3300_v13 = vpop.permute.xlu0 %603 }
  0xae   : > { %1188 = vrot.lane.b32.xlu1 %v4414_v32, %s2539_s29  ;;  %v4341_v32 = vrot.slane %v4432_v44, 1 }
  0xaf   : > { %1164 = vrot.lane.b32.xlu0 %v2655_v36, %s2539_s29  ;;  %v667_v36 = vsel %vm626_vm1, %v664_v62, %v666_v9 }
  0xb0   : > { %v3306_v42 = vpop.permute.xlu1 %609 }
  0xb1   : > { %4415 = vst [vmem:[#allocation53_spill] sm:$0xff] %v3306_v42  ;;  %v3308_v60 = vpop.permute.xlu0 %607  ;;  %v4438_v42 = vld [vmem:[#allocation9_spill] sm:$0xff] }
  0xb2   : > { %1266 = vrot.lane.b32.xlu1 %v2902_v39, %s2540_s5  ;;  %v3458_v18 = vcombine.low %v4439_v33, %v4438_v42 }
  0xb3   : > { %1242 = vrot.lane.b32.xlu0 %v4416_v25, %s2540_s5  ;;  %v640_v25 = vrot.slane %v4422_v46, 1 }
  0xb4   : > { %v3315_v12 = vpop.permute.xlu1 %613 }
  0xb5   : > { %4417 = vst [vmem:[#allocation15_spill] sm:$0xff] %v3315_v12  ;;  %v3317_v47 = vpop.permute.xlu0 %611 }
  0xb6   : > { %4418 = vst [vmem:[#allocation54_spill] sm:$0xff] %v3317_v47  ;;  %1268 = vrot.lane.b32.xlu1 %v2912_v43, %s2540_s5  ;;  %v3334_v43 = vsel %vm626_vm1, %v662_v14, %v664_v62 }
  0xb7   : > { %1244 = vrot.lane.b32.xlu0 %v4419_v54, %s2540_s5  ;;  %v3341_v54 = vsel %vm626_vm1, %v4425_v59, %v640_v25 }
  0xb8   : > { %v3325_v39 = vpop.permute.xlu1 %617 }
  0xb9   : > { %4421 = vst [vmem:[#allocation21_spill] sm:$0xff] %v3325_v39  ;;  %v3328_v20 = vpop.permute.xlu0 %615 }
  0xba   : > { %4423 = vst [vmem:[#allocation55_spill] sm:$0xff] %v3328_v20  ;;  %1327 = vrot.lane.b32.xlu1 %v663_v51, %s2541_s6  ;;  %v4430_v20 = vld [vmem:[#allocation19_spill] sm:$0xff] }
  0xbb   : > { %1303 = vrot.lane.b32.xlu0 %v3044_v16, %s2541_s6 }
  0xbc   : > { %v3336_v6 = vpop.permute.xlu1 %621 }
  0xbd   : > { %4424 = vst [vmem:[#allocation56_spill] sm:$0xff] %v3336_v6  ;;  %v3343_v48 = vpop.permute.xlu0 %619 }
  0xbe   : > { %4426 = vst [vmem:[#allocation57_spill] sm:$0xff] %v3343_v48  ;;  %1329 = vrot.lane.b32.xlu1 %v3334_v43, %s2541_s6 }
  0xbf   : > { %1305 = vrot.lane.b32.xlu0 %v3341_v54, %s2541_s6 }
  0xc0   : > { %v3349_v3 = vpop.permute.xlu1 %678 }
  0xc1   : > { %v3351_v16 = vpop.permute.xlu0 %676 }
  0xc2   : > { %710 = vrot.lane.b32.xlu1 %v663_v51, %s2535_s21 }
  0xc3   : > { %708 = vrot.lane.b32.xlu0 %v3221_v1, %s2535_s21 }
  0xc4   : > { %v3356_v14 = vpop.permute.xlu1 %682 }
  0xc5   : > { %v3358_v59 = vpop.permute.xlu0 %680 }
  0xc6   : > { %786 = vrot.lane.b32.xlu1 %v2997_v0, %s2536_s22 }
  0xc7   : > { %762 = vrot.lane.b32.xlu0 %v3001_v41, %s2536_s22 }
  0xc8   : > { %v3364_v48 = vpop.permute.xlu1 %686 }
  0xc9   : > { %4427 = vst [vmem:[#allocation58_spill] sm:$0xff] %v3364_v48  ;;  %v3366_v6 = vpop.permute.xlu0 %684 }
  0xca   : > { %788 = vrot.lane.b32.xlu1 %v3070_v11, %s2536_s22 }
  0xcb   : > { %764 = vrot.lane.b32.xlu0 %v3080_v37, %s2536_s22 }
  0xcc   : > { %v3372_v1 = vpop.permute.xlu1 %702 }
  0xcd   : > { %v701_v51 = vpop.permute.xlu0 %700 }
  0xce   : > { %1033 = vrot.lane.b32.xlu1 %v3110_v34, %s2537_s23 }
  0xcf   : > { %1009 = vrot.lane.b32.xlu0 %v3116_v52, %s2537_s23 }
  0xd0   : > { %v779_v0 = vpop.permute.xlu1 %778 }
  0xd1   : > { %v755_v41 = vpop.permute.xlu0 %754 }
  0xd2   : > { %1035 = vrot.lane.b32.xlu1 %v3132_v58, %s2537_s23 }
  0xd3   : > { %1011 = vrot.lane.b32.xlu0 %v3138_v15, %s2537_s23 }
  0xd4   : > { %v3382_v11 = vpop.permute.xlu1 %780 }
  0xd5   : > { %v3384_v37 = vpop.permute.xlu0 %756 }
  0xd6   : > { %1133 = vrot.lane.b32.xlu1 %v3121_v31, %s2538_s24 }
  0xd7   : > { %1109 = vrot.lane.b32.xlu0 %v3126_v63, %s2538_s24 }
  0xd8   : > { %v1026_v34 = vpop.permute.xlu1 %1025 }
  0xd9   : > { %v1002_v52 = vpop.permute.xlu0 %1001 }
  0xda   : > { %1135 = vrot.lane.b32.xlu1 %v3143_v40, %s2538_s24  ;;  %v4428_v40 = vld [vmem:[#allocation12_spill] sm:$0xff] }
  0xdb   : > { %1111 = vrot.lane.b32.xlu0 %v3148_v61, %s2538_s24  ;;  %v642_v12 = vrot.slane %v4428_v40, 1 }
  0xdc   : > { %v3394_v58 = vpop.permute.xlu1 %1027 }
  0xdd   : > { %v3396_v15 = vpop.permute.xlu0 %1003  ;;  %v643_v47 = vsel %vm626_vm1, %v640_v25, %v642_v12 }
  0xde   : > { %1190 = vrot.lane.b32.xlu1 %v4420_v23, %s2539_s29 }
  0xdf   : > { %1166 = vrot.lane.b32.xlu0 %v4422_v46, %s2539_s29 }
  0xe0   : > { %v1126_v31 = vpop.permute.xlu1 %1125 }
  0xe1   : > { %v1102_v63 = vpop.permute.xlu0 %1101 }
  0xe2   : > { %1192 = vrot.lane.b32.xlu1 %v2866_v57, %s2539_s29 }
  0xe3   : > { %1168 = vrot.lane.b32.xlu0 %v4428_v40, %s2539_s29  ;;  %v4434_v40 = vld [vmem:[#allocation18_spill] sm:$0xff] }
  0xe4   : > { %v3406_v39 = vpop.permute.xlu1 %1127  ;;  %v1373_v21 = vsel %vm1347_vm3, %v4434_v40, %v3292_v53 }
  0xe5   : > { %v3408_v61 = vpop.permute.xlu0 %1103  ;;  %v1422_v4 = vsel %vm1396_vm4, %v1373_v21, %v701_v51  ;;  %v4437_v21 = vld [vmem:[#allocation32_spill] sm:$0xff] }
  0xe6   : > { %1270 = vrot.lane.b32.xlu1 %v4429_v7, %s2540_s5  ;;  %v1471_v53 = vsel %vm1445_vm5, %v1422_v4, %v779_v0 }
  0xe7   : > { %1246 = vrot.lane.b32.xlu0 %v4430_v20, %s2540_s5  ;;  %v4433_v20 = vld [vmem:[#allocation13_spill] sm:$0xff]  ;;  %v1520_v24 = vsel %vm1494_vm6, %v1471_v53, %v1026_v34  ;;  %v4441_v34 = vld [vmem:[#allocation4_spill] sm:$0xff] }
  0xe8   : > { %v1183_v23 = vpop.permute.xlu1 %1182  ;;  %v4343_v35 = vrot.slane %v4433_v20, 1  ;;  %v1569_v0 = vsel %vm1543_vm7, %v1520_v24, %v1126_v31 }
  0xe9   : > { %v1159_v46 = vpop.permute.xlu0 %1158 }
  0xea   : > { %1272 = vrot.lane.b32.xlu1 %v2942_v19, %s2540_s5  ;;  %v3429_v19 = vsel %vm626_vm1, %v666_v9, %v4341_v32  ;;  %v3434_v62 = vsel %vm626_vm1, %v642_v12, %v4343_v35  ;;  %v4435_v9 = vld [vmem:[#allocation3_spill] sm:$0xff] }
  0xeb   : > { %1248 = vrot.lane.b32.xlu0 %v4431_v56, %s2540_s5  ;;  %v1349_v32 = vsel %vm1347_vm3, %v4435_v9, %v3238_v27  ;;  %v4436_v9 = vld [vmem:[#allocation29_spill] sm:$0xff] }
  0xec   : > { %v1185_v7 = vpop.permute.xlu1 %1184  ;;  %v1398_v12 = vsel %vm1396_vm4, %v1349_v32, %v3351_v16  ;;  %v3454_v51 = vcombine.low %v4437_v21, %v4436_v9  ;;  %v4440_v32 = vld [vmem:[#allocation20_spill] sm:$0xff] }
  0xed   : > { %v1161_v57 = vpop.permute.xlu0 %1160  ;;  %v1447_v48 = vsel %vm1445_vm5, %v1398_v12, %v755_v41  ;;  %v1375_v4 = vsel %vm1347_vm3, %v4440_v32, %v3290_v5  ;;  %v953_v41 = vshrl.u32 %v3094_v38, 16  ;;  %v1351_v12 = vsel %vm1347_vm3, %v4441_v34, %v3247_v50 }
  0xee   : > { %1331 = vrot.lane.b32.xlu1 %v667_v36, %s2541_s6  ;;  %v1496_v16 = vsel %vm1494_vm6, %v1447_v48, %v1002_v52  ;;  %v1424_v33 = vsel %vm1396_vm4, %v1375_v4, %v3372_v1  ;;  %v1618_v5 = vsel %vm1592_vm8, %v1569_v0, %v1183_v23  ;;  %v1400_v24 = vsel %vm1396_vm4, %v1351_v12, %v3349_v3 }
  0xef   : > { %1307 = vrot.lane.b32.xlu0 %v643_v47, %s2541_s6  ;;  %v1545_v42 = vsel %vm1543_vm7, %v1496_v16, %v1102_v63  ;;  %v1473_v48 = vsel %vm1445_vm5, %v1424_v33, %v3382_v11  ;;  %v1449_v1 = vsel %vm1445_vm5, %v1400_v24, %v3384_v37  ;;  %v957_v37 = vshll.u32 %v3454_v51, 16  ;;  %v2499_v16 = vld [vmem:[%s2586_s19 + $0x50] sm:$0xf] }
  0xf0   : > { %v1263_v56 = vpop.permute.xlu1 %1262  ;;  %v1522_v23 = vsel %vm1494_vm6, %v1473_v48, %v3394_v58  ;;  %v1498_v3 = vsel %vm1494_vm6, %v1449_v1, %v3396_v15  ;;  %v4442_v15 = vld [vmem:[#allocation34_spill] sm:$0xff]  ;;  %v861_v4 = vshll.u32 %v3458_v18, 16  ;;  %v865_v48 = vshrl.u32 %v3458_v18, 16 }
  0xf1   : > { %v1239_v25 = vpop.permute.xlu0 %1238  ;;  %v1667_v50 = vsel %vm1641_vm9, %v1618_v5, %v1263_v56  ;;  %v1547_v58 = vsel %vm1543_vm7, %v1498_v3, %v3408_v61  ;;  %v2498_v61 = vld [vmem:[%s2586_s19 + $0x4c] sm:$0xf]  ;;  %v1089_v3 = vrot.slane %v3454_v51, 1 }
  0xf2   : > { %1333 = vrot.lane.b32.xlu1 %v3429_v19, %s2541_s6  ;;  %v1596_v53 = vsel %vm1592_vm8, %v1547_v58, %v1161_v57  ;;  %v955_v57 = vor.u32 %v953_v41, %v3118_v55  ;;  %v863_v24 = vrot.slane %v861_v4, 1 }
  0xf3   : > { %1309 = vrot.lane.b32.xlu0 %v3434_v62, %s2541_s6 }
  0xf4   : > { %v1265_v35 = vpop.permute.xlu1 %1264 }
  0xf5   : > { %v1241_v27 = vpop.permute.xlu0 %1240 }
  0xf6   : > { %712 = vrot.lane.b32.xlu1 %v3334_v43, %s2535_s21  ;;  %v1594_v43 = vsel %vm1592_vm8, %v1545_v42, %v1159_v46  ;;  %v1571_v46 = vsel %vm1543_vm7, %v1522_v23, %v3406_v39  ;;  %v857_v39 = vshrl.u32 %v3099_v29, 16  ;;  %v867_v23 = vor.u32 %v865_v48, %v863_v24 }
  0xf7   : > { %688 = vrot.lane.b32.xlu0 %v3341_v54, %s2535_s21  ;;  %v1643_v31 = vsel %vm1641_vm9, %v1594_v43, %v1239_v25  ;;  %v1620_v56 = vsel %vm1592_vm8, %v1571_v46, %v1185_v7  ;;  %v4443_v25 = vld [vmem:[#allocation30_spill] sm:$0xff]  ;;  %v3512_v7 = vcombine.low %v2498_v61, %v2499_v16 }
  0xf8   : > { %v1324_v52 = vpop.permute.xlu1 %1323  ;;  %v1669_v9 = vsel %vm1641_vm9, %v1620_v56, %v1265_v35  ;;  %v959_v35 = vrot.slane %v957_v37, 1  ;;  %v859_v5 = vor.u32 %v857_v39, %v3123_v28  ;;  %v1065_v37 = vrot.slane %v3458_v18, 1 }
  0xf9   : > { %v1300_v54 = vpop.permute.xlu0 %1299  ;;  %v1716_v63 = vsel %vm1690_vm10, %v1667_v50, %v1324_v52  ;;  %v869_v43 = vshll.u32 %v3512_v7, 16  ;;  %v4444_v56 = vrot.slane %v3094_v38, 1 }
  0xfa   : > { %714 = vrot.lane.b32.xlu1 %v667_v36, %s2535_s21  ;;  %v1692_v11 = vsel %vm1690_vm10, %v1643_v31, %v1300_v54  ;;  %2372 = vmatprep.mubr.msk.bf16.mxu1 %vm1766_vm11, %v1716_v63  ;;  %v3505_v36 = vcombine.low %v4443_v25, %v4442_v15  ;;  %v960_v55 = vsel %vm378_vm0, %v955_v57, %v959_v35  ;;  %v4445_v25 = vrot.slane %v3099_v29, 1 }
  0xfb   : > { %690 = vrot.lane.b32.xlu0 %v643_v47, %s2535_s21  ;;  %2348 = vmatprep.mubr.msk.bf16.mxu0 %vm1766_vm11, %v1692_v11  ;;  %v1645_v47 = vsel %vm1641_vm9, %v1596_v53, %v1241_v27  ;;  %v961_v27 = vshrl.u32 %v3454_v51, 16  ;;  %v864_v28 = vsel %vm378_vm0, %v859_v5, %v863_v24  ;;  %v3541_v31 = vrot.slane %v869_v43, 1 }
  0xfc   : > { %v1326_v21 = vpop.permute.xlu1 %1325  ;;  %v965_v33 = vshll.u32 %v3505_v36, 16  ;;  %v1090_v39 = vsel %vm626_vm1, %v4444_v56, %v1089_v3  ;;  %v1091_v15 = vrot.slane %v3505_v36, 1  ;;  %v1066_v53 = vsel %vm626_vm1, %v4445_v25, %v1065_v37 }
  0xfd   : > { %v1718_v0 = vsel %vm1690_vm10, %v1669_v9, %v1326_v21  ;;  %v1302_v34 = vpop.permute.xlu0 %1301  ;;  %v963_v41 = vor.u32 %v961_v27, %v959_v35  ;;  %v872_v11 = vsel %vm378_vm0, %v867_v23, %v3541_v31  ;;  %v1067_v9 = vrot.slane %v3512_v7, 1  ;;  %v4448_v27 = vld [vmem:[#allocation43_spill] sm:$0xff] }
  0xfe   : > { %v1694_v12 = vsel %vm1690_vm10, %v1645_v47, %v1302_v34  ;;  %790 = vrot.lane.b32.xlu1 %v3094_v38, %s2536_s22  ;;  %2373 = vmatmul.mubr.msk.bf16.vlgmr.msra.gmra.mrb[0].mxu1 %vm1766_vm11, %v1718_v0  ;;  %v3538_v52 = vrot.slane %v965_v33, 1  ;;  %v1092_v38 = vsel %vm626_vm1, %v1089_v3, %v1091_v15  ;;  %v4446_v34 = vld [vmem:[#allocation39_spill] sm:$0xff] }
  0xff   : > { %766 = vrot.lane.b32.xlu0 %v3099_v29, %s2536_s22  ;;  %2349 = vmatmul.mubr.msk.bf16.vlgmr.msra.gmra.mrb[0].mxu0 %vm1766_vm11, %v1694_v12  ;;  %v1068_v4 = vsel %vm626_vm1, %v1065_v37, %v1067_v9  ;;  %v4447_v12 = vld [vmem:[#allocation14_spill] sm:$0xff]  ;;  %v4449_v33 = vld [vmem:[#allocation23_spill] sm:$0xff]  ;;  %v670_v5 = vrot.slane %v4446_v34, 1  ;;  %v4454_v37 = vrot.slane %v4433_v20, 1 }
 0x100   : > { %v3526_v42 = vpop.permute.xlu1 %706  ;;  %v968_v63 = vsel %vm378_vm0, %v963_v41, %v3538_v52  ;;  %v646_v48 = vrot.slane %v4447_v12, 1  ;;  %v4451_v41 = vld [vmem:[#allocation31_spill] sm:$0xff] }
 0x101   : > { %v3531_v50 = vpop.permute.xlu0 %704 }
 0x102   : > { %792 = vrot.lane.b32.xlu1 %v3454_v51, %s2536_s22  ;;  %v647_v56 = vsel %vm626_vm1, %v4454_v37, %v646_v48 }
 0x103   : > { %768 = vrot.lane.b32.xlu0 %v3458_v18, %s2536_s22 }
 0x104   : > { %v783_v1 = vpop.permute.xlu1 %782 }
 0x105   : > { %v759_v54 = vpop.permute.xlu0 %758 }
 0x106   : > { %1037 = vrot.lane.b32.xlu1 %v960_v55, %s2537_s23  ;;  %v4450_v55 = vld [vmem:[#allocation45_spill] sm:$0xff] }
 0x107   : > { %1013 = vrot.lane.b32.xlu0 %v864_v28, %s2537_s23  ;;  %v4452_v28 = vrot.slane %v4432_v44, 1 }
 0x108   : > { %v3548_v46 = vpop.permute.xlu1 %784 }
 0x109   : > { %v3553_v58 = vpop.permute.xlu0 %760  ;;  %v671_v23 = vsel %vm626_vm1, %v4452_v28, %v670_v5 }
 0x10a   : > { %1039 = vrot.lane.b32.xlu1 %v968_v63, %s2537_s23  ;;  %v4453_v63 = vld [vmem:[#allocation40_spill] sm:$0xff] }
 0x10b   : > { %1015 = vrot.lane.b32.xlu0 %v872_v11, %s2537_s23  ;;  %v3597_v3 = vrot.slane %v4453_v63, 1 }
 0x10c   : > { %v1030_v51 = vpop.permute.xlu1 %1029 }
 0x10d   : > { %v1006_v18 = vpop.permute.xlu0 %1005 }
 0x10e   : > { %1137 = vrot.lane.b32.xlu1 %v1090_v39, %s2538_s24  ;;  %v4455_v39 = vld [vmem:[#allocation17_spill] sm:$0xff] }
 0x10f   : > { %1113 = vrot.lane.b32.xlu0 %v1066_v53, %s2538_s24  ;;  %v648_v25 = vrot.slane %v4455_v39, 1 }
 0x110   : > { %v1032_v21 = vpop.permute.xlu1 %1031 }
 0x111   : > { %v1008_v61 = vpop.permute.xlu0 %1007  ;;  %v3623_v37 = vsel %vm626_vm1, %v646_v48, %v648_v25 }
 0x112   : > { %1139 = vrot.lane.b32.xlu1 %v1092_v38, %s2538_s24  ;;  %v1377_v38 = vsel %vm1347_vm3, %v2766_v10, %v3300_v13 }
 0x113   : > { %1115 = vrot.lane.b32.xlu0 %v1068_v4, %s2538_s24  ;;  %v4456_v4 = vld [vmem:[#allocation2_spill] sm:$0xff] }
 0x114   : > { %v1130_v29 = vpop.permute.xlu1 %1129 }
 0x115   : > { %v1106_v16 = vpop.permute.xlu0 %1105 }
 0x116   : > { %1194 = vrot.lane.b32.xlu1 %v4432_v44, %s2539_s29 }
 0x117   : > { %1170 = vrot.lane.b32.xlu0 %v4433_v20, %s2539_s29 }
 0x118   : > { %v1132_v47 = vpop.permute.xlu1 %1131 }
 0x119   : > { %v1108_v0 = vpop.permute.xlu0 %1107 }
 0x11a   : > { %1196 = vrot.lane.b32.xlu1 %v4446_v34, %s2539_s29 }
 0x11b   : > { %1172 = vrot.lane.b32.xlu0 %v4447_v12, %s2539_s29 }
 0x11c   : > { %v1187_v57 = vpop.permute.xlu1 %1186 }
 0x11d   : > { %v1163_v35 = vpop.permute.xlu0 %1162 }
 0x11e   : > { %1274 = vrot.lane.b32.xlu1 %v4448_v27, %s2540_s5  ;;  %v1353_v27 = vsel %vm1347_vm3, %v4456_v4, %v3236_v2 }
 0x11f   : > { %1250 = vrot.lane.b32.xlu0 %v4449_v33, %s2540_s5  ;;  %v1426_v33 = vsel %vm1396_vm4, %v1377_v38, %v3531_v50 }
 0x120   : > { %v1189_v24 = vpop.permute.xlu1 %1188  ;;  %v1475_v13 = vsel %vm1445_vm5, %v1426_v33, %v783_v1  ;;  %v1355_v1 = vsel %vm1347_vm3, %v2606_v8, %v3245_v17 }
 0x121   : > { %v1165_v43 = vpop.permute.xlu0 %1164  ;;  %v1524_v50 = vsel %vm1494_vm6, %v1475_v13, %v1030_v51  ;;  %v2503_v13 = vld [vmem:[%s2586_s19 + $0x58] sm:$0xf] }
 0x122   : > { %1276 = vrot.lane.b32.xlu1 %v4450_v55, %s2540_s5  ;;  %v3615_v55 = vsel %vm626_vm1, %v670_v5, %v3597_v3  ;;  %v1379_v5 = vsel %vm1347_vm3, %v4399_v30, %v3298_v26  ;;  %v1404_v30 = vsel %vm1396_vm4, %v1355_v1, %v3356_v14  ;;  %v873_v1 = vshrl.u32 %v3512_v7, 16 }
 0x123   : > { %1252 = vrot.lane.b32.xlu0 %v4451_v41, %s2540_s5  ;;  %v1402_v41 = vsel %vm1396_vm4, %v1353_v27, %v3358_v59  ;;  %v1573_v59 = vsel %vm1543_vm7, %v1524_v50, %v1130_v29 }
 0x124   : > { %v1267_v11 = vpop.permute.xlu1 %1266  ;;  %v1451_v2 = vsel %vm1445_vm5, %v1402_v41, %v759_v54  ;;  %v1428_v54 = vsel %vm1396_vm4, %v1379_v5, %v3526_v42  ;;  %v1622_v48 = vsel %vm1592_vm8, %v1573_v59, %v1187_v57  ;;  %v1453_v42 = vsel %vm1445_vm5, %v1404_v30, %v3553_v58  ;;  %v2502_v41 = vld [vmem:[%s2586_s19 + $0x54] sm:$0xf] }
 0x125   : > { %v1243_v53 = vpop.permute.xlu0 %1242  ;;  %v1500_v4 = vsel %vm1494_vm6, %v1451_v2, %v1006_v18  ;;  %v1477_v26 = vsel %vm1445_vm5, %v1428_v54, %v3548_v46  ;;  %v1671_v8 = vsel %vm1641_vm9, %v1622_v48, %v1267_v11  ;;  %v1502_v46 = vsel %vm1494_vm6, %v1453_v42, %v1008_v61  ;;  %v2500_v61 = vld [vmem:[%s2586_s19 + $0xb4] sm:$0xf]  ;;  %v2505_v54 = vld [vmem:[%s2586_s19 + $0x5c] sm:$0xf] }
 0x126   : > { %1335 = vrot.lane.b32.xlu1 %v671_v23, %s2541_s6  ;;  %v1549_v51 = vsel %vm1543_vm7, %v1500_v4, %v1106_v16  ;;  %v1526_v29 = vsel %vm1494_vm6, %v1477_v26, %v1032_v21  ;;  %v1551_v58 = vsel %vm1543_vm7, %v1502_v46, %v1108_v0  ;;  %v3673_v0 = vcombine.low %v2502_v41, %v2503_v13  ;;  %v2504_v4 = vld [vmem:[%s2586_s19 + $0xbc] sm:$0xf] }
 0x127   : > { %1311 = vrot.lane.b32.xlu0 %v647_v56, %s2541_s6  ;;  %v1598_v18 = vsel %vm1592_vm8, %v1549_v51, %v1163_v35  ;;  %v1575_v35 = vsel %vm1543_vm7, %v1526_v29, %v1132_v47  ;;  %v1600_v27 = vsel %vm1592_vm8, %v1551_v58, %v1165_v43  ;;  %v969_v43 = vshrl.u32 %v3505_v36, 16  ;;  %v2506_v51 = vld [vmem:[%s2586_s19 + $0x60] sm:$0xf] }
 0x128   : > { %v1269_v28 = vpop.permute.xlu1 %1268  ;;  %v1647_v16 = vsel %vm1641_vm9, %v1598_v18, %v1243_v53  ;;  %v1624_v21 = vsel %vm1592_vm8, %v1575_v35, %v1189_v24  ;;  %v2501_v53 = vld [vmem:[%s2586_s19 + $0xb8] sm:$0xf]  ;;  %v3676_v24 = vld [vmem:[%s2586_s19 + $0xc0] sm:$0xf]  ;;  %v3697_v48 = vcombine.low %v2505_v54, %v2506_v51  ;;  %v875_v42 = vor.u32 %v873_v1, %v3541_v31 }
 0x129   : > { %v1245_v38 = vpop.permute.xlu0 %1244  ;;  %v3667_v47 = vcombine.low %v2500_v61, %v2501_v53  ;;  %v1673_v33 = vsel %vm1641_vm9, %v1624_v21, %v1269_v28  ;;  %v971_v30 = vor.u32 %v969_v43, %v3538_v52  ;;  %v1069_v41 = vrot.slane %v3673_v0, 1 }
 0x12a   : > { %1337 = vrot.lane.b32.xlu1 %v3615_v55, %s2541_s6 }
 0x12b   : > { %1313 = vrot.lane.b32.xlu0 %v3623_v37, %s2541_s6  ;;  %v973_v28 = vshll.u32 %v3667_v47, 16  ;;  %v977_v18 = vshrl.u32 %v3667_v47, 16 }
 0x12c   : > { %v1328_v17 = vpop.permute.xlu1 %1327 }
 0x12d   : > { %v1720_v57 = vsel %vm1690_vm10, %v1671_v8, %v1328_v17  ;;  %v1304_v14 = vpop.permute.xlu0 %1303  ;;  %v975_v26 = vrot.slane %v973_v28, 1  ;;  %v3765_v28 = vld [vmem:[%s2586_s19 + $0xc8] sm:$0xf] }
 0x12e   : > { %v1696_v11 = vsel %vm1690_vm10, %v1647_v16, %v1304_v14  ;;  %716 = vrot.lane.b32.xlu1 %v3429_v19, %s2535_s21  ;;  %2376 = vmatprep.mubr.msk.bf16.mxu1 %vm1766_vm11, %v1720_v57  ;;  %v881_v16 = vshrl.u32 %v3673_v0, 16  ;;  %v885_v57 = vshll.u32 %v3697_v48, 16 }
 0x12f   : > { %692 = vrot.lane.b32.xlu0 %v3434_v62, %s2535_s21  ;;  %2352 = vmatprep.mubr.msk.bf16.mxu0 %vm1766_vm11, %v1696_v11  ;;  %v1649_v62 = vsel %vm1641_vm9, %v1600_v27, %v1245_v38  ;;  %v3689_v38 = vcombine.low %v2504_v4, %v3676_v24  ;;  %v976_v52 = vsel %vm378_vm0, %v971_v30, %v975_v26  ;;  %v1093_v27 = vrot.slane %v3667_v47, 1  ;;  %v250_v4 = vld [vmem:[%s2586_s19 + $0xcc] sm:$0xf] }
 0x130   : > { %v1330_v19 = vpop.permute.xlu1 %1329  ;;  %v979_v46 = vor.u32 %v977_v18, %v975_v26  ;;  %v3725_v21 = vrot.slane %v885_v57, 1  ;;  %v3771_v54 = vcombine.low %v3765_v28, %v250_v4 }
 0x131   : > { %v1722_v2 = vsel %vm1690_vm10, %v1673_v33, %v1330_v19  ;;  %v1306_v50 = vpop.permute.xlu0 %1305  ;;  %v981_v8 = vshll.u32 %v3689_v38, 16 }
 0x132   : > { %v1698_v5 = vsel %vm1690_vm10, %v1649_v62, %v1306_v50  ;;  %718 = vrot.lane.b32.xlu1 %v671_v23, %s2535_s21  ;;  %2377 = vmatmul.mubr.msk.bf16.gmra.mrb[4].mxu1 %vm1766_vm11, %v1722_v2  ;;  %v877_v23 = vshll.u32 %v3673_v0, 16  ;;  %v1094_v62 = vsel %vm626_vm1, %v1091_v15, %v1093_v27  ;;  %v1095_v2 = vrot.slane %v3689_v38, 1 }
 0x133   : > { %694 = vrot.lane.b32.xlu0 %v647_v56, %s2535_s21  ;;  %2353 = vmatmul.mubr.msk.bf16.gmra.mrb[4].mxu0 %vm1766_vm11, %v1698_v5  ;;  %v3720_v35 = vrot.slane %v981_v8, 1  ;;  %v1070_v50 = vsel %vm626_vm1, %v1067_v9, %v1069_v41  ;;  %v3750_v5 = vld [vmem:[%s2586_s19 + $0xc4] sm:$0xf]  ;;  %v1218_v18 = vshll.u32 %v3771_v54, 16  ;;  %v1293_v4 = vrot.slane %v3771_v54, 1 }
 0x134   : > { %v3691_v59 = vpop.permute.xlu1 %710  ;;  %v879_v29 = vrot.slane %v877_v23, 1  ;;  %v2280_v15 = vcombine.low %v3676_v24, %v3750_v5 }
 0x135   : > { %v3699_v56 = vpop.permute.xlu0 %708  ;;  %v984_v53 = vsel %vm378_vm0, %v979_v46, %v3720_v35 }
 0x136   : > { %794 = vrot.lane.b32.xlu1 %v3505_v36, %s2536_s22  ;;  %v880_v31 = vsel %vm378_vm0, %v875_v42, %v879_v29  ;;  %v883_v58 = vor.u32 %v881_v16, %v879_v29  ;;  %v1096_v36 = vsel %vm626_vm1, %v1093_v27, %v1095_v2  ;;  %v1210_v23 = vshll.u32 %v2280_v15, 16  ;;  %v4457_v29 = vld [vmem:[#allocation44_spill] sm:$0xff] }
 0x137   : > { %770 = vrot.lane.b32.xlu0 %v3512_v7, %s2536_s22  ;;  %v1214_v26 = vshrl.u32 %v2280_v15, 16  ;;  %v1291_v27 = vrot.slane %v2280_v15, 1 }
 0x138   : > { %v3708_v17 = vpop.permute.xlu1 %786  ;;  %v888_v19 = vsel %vm378_vm0, %v883_v58, %v3725_v21  ;;  %v1212_v24 = vrot.slane %v1210_v23, 1  ;;  %v4458_v58 = vld [vmem:[#allocation28_spill] sm:$0xff] }
 0x139   : > { %v3713_v14 = vpop.permute.xlu0 %762 }
 0x13a   : > { %796 = vrot.lane.b32.xlu1 %v3667_v47, %s2536_s22  ;;  %v1213_v16 = vsel %vm378_vm0, %v4457_v29, %v1212_v24  ;;  %v1216_v57 = vor.u32 %v1214_v26, %v1212_v24  ;;  %v4462_v29 = vld [vmem:[#allocation5_spill] sm:$0xff] }
 0x13b   : > { %772 = vrot.lane.b32.xlu0 %v3673_v0, %s2536_s22  ;;  %v1071_v0 = vrot.slane %v3697_v48, 1 }
 0x13c   : > { %v3722_v11 = vpop.permute.xlu1 %788 }
 0x13d   : > { %v3727_v61 = vpop.permute.xlu0 %764  ;;  %v1072_v9 = vsel %vm626_vm1, %v1069_v41, %v1071_v0 }
 0x13e   : > { %1041 = vrot.lane.b32.xlu1 %v976_v52, %s2537_s23  ;;  %v3783_v52 = vrot.slane %v1218_v18, 1  ;;  %v4461_v18 = vld [vmem:[#allocation24_spill] sm:$0xff] }
 0x13f   : > { %1017 = vrot.lane.b32.xlu0 %v880_v31, %s2537_s23 }
 0x140   : > { %v1034_v33 = vpop.permute.xlu1 %1033 }
 0x141   : > { %v1010_v13 = vpop.permute.xlu0 %1009 }
 0x142   : > { %1043 = vrot.lane.b32.xlu1 %v984_v53, %s2537_s23  ;;  %v1221_v53 = vsel %vm378_vm0, %v1216_v57, %v3783_v52  ;;  %v4464_v57 = vld [vmem:[#allocation26_spill] sm:$0xff] }
 0x143   : > { %1019 = vrot.lane.b32.xlu0 %v888_v19, %s2537_s23 }
 0x144   : > { %v3743_v47 = vpop.permute.xlu1 %1035 }
 0x145   : > { %v3752_v43 = vpop.permute.xlu0 %1011 }
 0x146   : > { %1141 = vrot.lane.b32.xlu1 %v1094_v62, %s2538_s24  ;;  %v1381_v62 = vsel %vm1347_vm3, %v4400_v49, %v3308_v60 }
 0x147   : > { %1117 = vrot.lane.b32.xlu0 %v1070_v50, %s2538_s24  ;;  %v1357_v50 = vsel %vm1347_vm3, %v2634_v22, %v3257_v45  ;;  %v4460_v22 = vrot.slane %v4434_v40, 1 }
 0x148   : > { %v1134_v7 = vpop.permute.xlu1 %1133  ;;  %v1406_v49 = vsel %vm1396_vm4, %v1357_v50, %v3366_v6  ;;  %v1359_v6 = vsel %vm1347_vm3, %v4462_v29, %v4461_v18  ;;  %v2508_v18 = vld [vmem:[%s2586_s19 + $0x64] sm:$0xf]  ;;  %v2509_v29 = vld [vmem:[%s2586_s19 + $0x68] sm:$0xf] }
 0x149   : > { %v1110_v1 = vpop.permute.xlu0 %1109  ;;  %v651_v45 = vsel %vm626_vm1, %v648_v25, %v4460_v22 }
 0x14a   : > { %1143 = vrot.lane.b32.xlu1 %v1096_v36, %s2538_s24  ;;  %v1430_v36 = vsel %vm1396_vm4, %v1381_v62, %v3699_v56  ;;  %v1455_v56 = vsel %vm1445_vm5, %v1406_v49, %v3713_v14  ;;  %v4465_v62 = vld [vmem:[#allocation58_spill] sm:$0xff] }
 0x14b   : > { %1119 = vrot.lane.b32.xlu0 %v1072_v9, %s2538_s24  ;;  %v4459_v9 = vld [vmem:[#allocation38_spill] sm:$0xff]  ;;  %v1479_v60 = vsel %vm1445_vm5, %v1430_v36, %v3708_v17 }
 0x14c   : > { %v1136_v51 = vpop.permute.xlu1 %1135  ;;  %v1528_v24 = vsel %vm1494_vm6, %v1479_v60, %v1034_v33  ;;  %v2507_v49 = vld [vmem:[%s2586_s19 + $0xc0] ss:$0 sps:$4 sm:$0x11]  }
 0x14d   : > { %v1112_v30 = vpop.permute.xlu0 %1111 }
 0x14e   : > { %1198 = vrot.lane.b32.xlu1 %v4453_v63, %s2539_s29 }
 0x14f   : > { %1174 = vrot.lane.b32.xlu0 %v4455_v39, %s2539_s29 }
 0x150   : > { %v1191_v8 = vpop.permute.xlu1 %1190 }
 0x151   : > { %v1167_v42 = vpop.permute.xlu0 %1166 }
 0x152   : > { %1200 = vrot.lane.b32.xlu1 %v2280_v15, %s2539_s29  ;;  %v1292_v15 = vsel %vm626_vm1, %v3597_v3, %v1291_v27 }
 0x153   : > { %1176 = vrot.lane.b32.xlu0 %v4434_v40, %s2539_s29  ;;  %v1504_v40 = vsel %vm1494_vm6, %v1455_v56, %v1010_v13  ;;  %v1408_v13 = vsel %vm1396_vm4, %v1359_v6, %v4465_v62  ;;  %v2265_v6 = vcombine.low %v2508_v18, %v2509_v29 }
 0x154   : > { %v1193_v46 = vpop.permute.xlu1 %1192  ;;  %v1553_v14 = vsel %vm1543_vm7, %v1504_v40, %v1110_v1 }
 0x155   : > { %v1169_v31 = vpop.permute.xlu0 %1168  ;;  %v1602_v50 = vsel %vm1592_vm8, %v1553_v14, %v1167_v42  ;;  %v897_v62 = vshrl.u32 %v2265_v6, 16 }
 0x156   : > { %1278 = vrot.lane.b32.xlu1 %v1213_v16, %s2540_s5  ;;  %v4463_v16 = vld [vmem:[#allocation53_spill] sm:$0xff] }
 0x157   : > { %1254 = vrot.lane.b32.xlu0 %v4458_v58, %s2540_s5  ;;  %v1383_v17 = vsel %vm1347_vm3, %v4464_v57, %v4463_v16  ;;  %v1577_v58 = vsel %vm1543_vm7, %v1528_v24, %v1134_v7  ;;  %v2495_v57 = vld [vmem:[%s2586_s19 + $0xcc] ss:$0 sps:$4 sm:$0x11]  }
 0x158   : > { %v1271_v19 = vpop.permute.xlu1 %1270  ;;  %v1432_v25 = vsel %vm1396_vm4, %v1383_v17, %v3691_v59  ;;  %v1626_v33 = vsel %vm1592_vm8, %v1577_v58, %v1191_v8  ;;  %v1457_v8 = vsel %vm1445_vm5, %v1408_v13, %v3727_v61 }
 0x159   : > { %v1247_v41 = vpop.permute.xlu0 %1246  ;;  %v1481_v7 = vsel %vm1445_vm5, %v1432_v25, %v3722_v11  ;;  %v1675_v59 = vsel %vm1641_vm9, %v1626_v33, %v1271_v19  ;;  %v1506_v11 = vsel %vm1494_vm6, %v1457_v8, %v3752_v43  ;;  %v674_v43 = vrot.slane %v2507_v49, 1 }
 0x15a   : > { %1280 = vrot.lane.b32.xlu1 %v1221_v53, %s2540_s5  ;;  %v1294_v53 = vsel %vm626_vm1, %v1291_v27, %v1293_v4  ;;  %v1530_v36 = vsel %vm1494_vm6, %v1481_v7, %v3743_v47  ;;  %v1651_v27 = vsel %vm1641_vm9, %v1602_v50, %v1247_v41  ;;  %v1555_v61 = vsel %vm1543_vm7, %v1506_v11, %v1112_v30  ;;  %v4466_v41 = vld [vmem:[#allocation48_spill] sm:$0xff] }
 0x15b   : > { %1256 = vrot.lane.b32.xlu0 %v4459_v9, %s2540_s5  ;;  %v1579_v42 = vsel %vm1543_vm7, %v1530_v36, %v1136_v51  ;;  %v1604_v51 = vsel %vm1592_vm8, %v1555_v61, %v1169_v31  ;;  %v675_v31 = vsel %vm626_vm1, %v3597_v3, %v674_v43  ;;  %v889_v3 = vshrl.u32 %v3697_v48, 16 }
 0x15c   : > { %v1273_v23 = vpop.permute.xlu1 %1272  ;;  %v1628_v47 = vsel %vm1592_vm8, %v1579_v42, %v1193_v46  ;;  %v997_v25 = vshll.u32 %v2495_v57, 16  ;;  %v1073_v42 = vrot.slane %v2265_v6, 1 }
 0x15d   : > { %v1249_v26 = vpop.permute.xlu0 %1248  ;;  %v1677_v60 = vsel %vm1641_vm9, %v1628_v47, %v1273_v23  ;;  %v2277_v23 = vcombine.low %v3750_v5, %v3765_v28  ;;  %v893_v5 = vshll.u32 %v2265_v6, 16  ;;  %v891_v33 = vor.u32 %v889_v3, %v3725_v21 }
 0x15e   : > { %1339 = vrot.lane.b32.xlu1 %v1292_v15, %s2541_s6  ;;  %v1653_v56 = vsel %vm1641_vm9, %v1604_v51, %v1249_v26  ;;  %v1099_v47 = vrot.slane %v2495_v57, 1  ;;  %v1074_v49 = vsel %vm626_vm1, %v1071_v0, %v1073_v42 }
 0x15f   : > { %1315 = vrot.lane.b32.xlu0 %v651_v45, %s2541_s6  ;;  %v993_v58 = vshrl.u32 %v2277_v23, 16 }
 0x160   : > { %v1332_v1 = vpop.permute.xlu1 %1331 }
 0x161   : > { %v1724_v9 = vsel %vm1690_vm10, %v1675_v59, %v1332_v1  ;;  %v1308_v15 = vpop.permute.xlu0 %1307  ;;  %v999_v59 = vrot.slane %v997_v25, 1 }
 0x162   : > { %v1700_v19 = vsel %vm1690_vm10, %v1651_v27, %v1308_v15  ;;  %1341 = vrot.lane.b32.xlu1 %v1294_v53, %s2541_s6  ;;  %2380 = vmatprep.mubr.msk.bf16.mxu1 %vm1766_vm11, %v1724_v9  ;;  %v895_v53 = vrot.slane %v893_v5, 1  ;;  %v1097_v27 = vrot.slane %v2277_v23, 1  ;;  %v4467_v15 = vld [vmem:[#allocation7_spill] sm:$0xff] }
 0x163   : > { %1317 = vrot.lane.b32.xlu0 %v4466_v41, %s2541_s6  ;;  %2356 = vmatprep.mubr.msk.bf16.mxu0 %vm1766_vm11, %v1700_v19 }
 0x164   : > { %v1334_v22 = vpop.permute.xlu1 %1333  ;;  %v896_v1 = vsel %vm378_vm0, %v891_v33, %v895_v53  ;;  %v899_v8 = vor.u32 %v897_v62, %v895_v53  ;;  %v1098_v61 = vsel %vm626_vm1, %v1095_v2, %v1097_v27  ;;  %v1100_v51 = vsel %vm626_vm1, %v1097_v27, %v1099_v47  ;;  %v4471_v53 = vld [vmem:[#allocation54_spill] sm:$0xff]  ;;  %v4472_v62 = vld [vmem:[#allocation27_spill] sm:$0xff] }
 0x165   : > { %v1726_v30 = vsel %vm1690_vm10, %v1677_v60, %v1334_v22  ;;  %v1310_v24 = vpop.permute.xlu0 %1309  ;;  %v2496_v60 = vld [vmem:[%s2586_s19 + $0xd0] sm:$0xff]   ;;  %v4468_v22 = vld [vmem:[#allocation46_spill] sm:$0xff] }
 0x166   : > { %v1702_v46 = vsel %vm1690_vm10, %v1653_v56, %v1310_v24  ;;  %720 = vrot.lane.b32.xlu1 %v3615_v55, %s2535_s21  ;;  %2381 = vmatmul.mubr.msk.bf16.gmra.mrb[8].mxu1 %vm1766_vm11, %v1726_v30  ;;  %v985_v55 = vshrl.u32 %v3689_v38, 16  ;;  %v904_v11 = vsel %vm378_vm0, %v899_v8, %v4467_v15  ;;  %v4469_v2 = vrot.slane %v4468_v22, 1  ;;  %v2497_v24 = vld [vmem:[%s2586_s19 + $0xd8] ss:$0 sps:$4 sm:$0x11]  }
 0x167   : > { %696 = vrot.lane.b32.xlu0 %v3623_v37, %s2535_s21  ;;  %2357 = vmatmul.mubr.msk.bf16.gmra.mrb[8].mxu0 %vm1766_vm11, %v1702_v46  ;;  %v989_v37 = vshll.u32 %v2277_v23, 16  ;;  %v1226_v0 = vshll.u32 %v2496_v60, 16  ;;  %v1230_v29 = vshrl.u32 %v2496_v60, 16  ;;  %v4475_v8 = vld [vmem:[#allocation41_spill] sm:$0xff]  ;;  %v1297_v27 = vrot.slane %v2497_v24, 1 }
 0x168   : > { %v3872_v26 = vpop.permute.xlu1 %712  ;;  %v987_v40 = vor.u32 %v985_v55, %v3720_v35  ;;  %v1076_v56 = vsel %vm626_vm1, %v1073_v42, %v4469_v2 }
 0x169   : > { %v3876_v16 = vpop.permute.xlu0 %688  ;;  %v1228_v18 = vrot.slane %v1226_v0, 1 }
 0x16a   : > { %722 = vrot.lane.b32.xlu1 %v675_v31, %s2535_s21 }
 0x16b   : > { %698 = vrot.lane.b32.xlu0 %v651_v45, %s2535_s21  ;;  %v991_v45 = vrot.slane %v989_v37, 1  ;;  %v1232_v3 = vor.u32 %v1230_v29, %v1228_v18 }
 0x16c   : > { %v3882_v17 = vpop.permute.xlu1 %714 }
 0x16d   : > { %v3885_v28 = vpop.permute.xlu0 %690  ;;  %v992_v7 = vsel %vm378_vm0, %v987_v40, %v991_v45  ;;  %v995_v50 = vor.u32 %v993_v58, %v991_v45  ;;  %v1295_v58 = vrot.slane %v2496_v60, 1 }
 0x16e   : > { %798 = vrot.lane.b32.xlu1 %v3689_v38, %s2536_s22 }
 0x16f   : > { %774 = vrot.lane.b32.xlu0 %v3697_v48, %s2536_s22  ;;  %v1000_v21 = vsel %vm378_vm0, %v995_v50, %v999_v59  ;;  %v1222_v48 = vshrl.u32 %v3771_v54, 16  ;;  %v4474_v50 = vld [vmem:[#allocation6_spill] sm:$0xff] }
 0x170   : > { %v3892_v14 = vpop.permute.xlu1 %790 }
 0x171   : > { %v3895_v13 = vpop.permute.xlu0 %766 }
 0x172   : > { %800 = vrot.lane.b32.xlu1 %v2277_v23, %s2536_s22  ;;  %v1224_v23 = vor.u32 %v1222_v48, %v3783_v52  ;;  %v1298_v48 = vsel %vm626_vm1, %v1295_v58, %v1297_v27 }
 0x173   : > { %776 = vrot.lane.b32.xlu0 %v2265_v6, %s2536_s22  ;;  %v1234_v6 = vshll.u32 %v2497_v24, 16 }
 0x174   : > { %v3900_v35 = vpop.permute.xlu1 %792  ;;  %v1229_v57 = vsel %vm378_vm0, %v1224_v23, %v1228_v18 }
 0x175   : > { %v3903_v36 = vpop.permute.xlu0 %768  ;;  %v1236_v5 = vrot.slane %v1234_v6, 1 }
 0x176   : > { %1045 = vrot.lane.b32.xlu1 %v992_v7, %s2537_s23  ;;  %v4473_v7 = vld [vmem:[#allocation16_spill] sm:$0xff] }
 0x177   : > { %1021 = vrot.lane.b32.xlu0 %v896_v1, %s2537_s23  ;;  %v1237_v52 = vsel %vm378_vm0, %v1232_v3, %v1236_v5  ;;  %v1361_v59 = vsel %vm1347_vm3, %v4474_v50, %v4473_v7 }
 0x178   : > { %v1038_v9 = vpop.permute.xlu1 %1037  ;;  %v1410_v15 = vsel %vm1396_vm4, %v1361_v59, %v3876_v16 }
 0x179   : > { %v1014_v19 = vpop.permute.xlu0 %1013 }
 0x17a   : > { %1047 = vrot.lane.b32.xlu1 %v1000_v21, %s2537_s23  ;;  %v1296_v21 = vsel %vm626_vm1, %v1293_v4, %v1295_v58  ;;  %v4479_v4 = vld [vmem:[#allocation33_spill] sm:$0xff] }
 0x17b   : > { %1023 = vrot.lane.b32.xlu0 %v904_v11, %s2537_s23 }
 0x17c   : > { %v3915_v41 = vpop.permute.xlu1 %1039 }
 0x17d   : > { %v3920_v43 = vpop.permute.xlu0 %1015 }
 0x17e   : > { %1145 = vrot.lane.b32.xlu1 %v1098_v61, %s2538_s24  ;;  %v1459_v61 = vsel %vm1445_vm5, %v1410_v15, %v3895_v13 }
 0x17f   : > { %1121 = vrot.lane.b32.xlu0 %v1074_v49, %s2538_s24  ;;  %v4476_v49 = vld [vmem:[#allocation10_spill] sm:$0xff]  ;;  %v1508_v16 = vsel %vm1494_vm6, %v1459_v61, %v1014_v19 }
 0x180   : > { %v1138_v38 = vpop.permute.xlu1 %1137 }
 0x181   : > { %v1114_v30 = vpop.permute.xlu0 %1113 }
 0x182   : > { %1147 = vrot.lane.b32.xlu1 %v1100_v51, %s2538_s24  ;;  %v4477_v51 = vld [vmem:[#allocation11_spill] sm:$0xff]  ;;  %v1557_v13 = vsel %vm1543_vm7, %v1508_v16, %v1114_v30 }
 0x183   : > { %1123 = vrot.lane.b32.xlu0 %v1076_v56, %s2538_s24  ;;  %v4480_v56 = vld [vmem:[#allocation47_spill] sm:$0xff] }
 0x184   : > { %v1140_v46 = vpop.permute.xlu1 %1139 }
 0x185   : > { %v1116_v31 = vpop.permute.xlu0 %1115 }
 0x186   : > { %1202 = vrot.lane.b32.xlu1 %v3771_v54, %s2539_s29  ;;  %v1363_v54 = vsel %vm1347_vm3, %v4477_v51, %v4476_v49  ;;  %v4482_v49 = vld [vmem:[#allocation55_spill] sm:$0xff]  ;;  %v4483_v51 = vld [vmem:[#allocation37_spill] sm:$0xff] }
 0x187   : > { %1178 = vrot.lane.b32.xlu0 %v4440_v32, %s2539_s29  ;;  %v4470_v32 = vld [vmem:[#allocation36_spill] sm:$0xff]  ;;  %v1412_v0 = vsel %vm1396_vm4, %v1363_v54, %v3885_v28  ;;  %v1389_v54 = vsel %vm1347_vm3, %v4483_v51, %v4482_v49 }
 0x188   : > { %v1195_v55 = vpop.permute.xlu1 %1194  ;;  %v1461_v30 = vsel %vm1445_vm5, %v1412_v0, %v3903_v36 }
 0x189   : > { %v1171_v37 = vpop.permute.xlu0 %1170  ;;  %v1510_v28 = vsel %vm1494_vm6, %v1461_v30, %v3920_v43 }
 0x18a   : > { %1204 = vrot.lane.b32.xlu1 %v2496_v60, %s2539_s29  ;;  %v4478_v60 = vld [vmem:[#allocation15_spill] sm:$0xff]  ;;  %v1559_v36 = vsel %vm1543_vm7, %v1510_v28, %v1116_v31  ;;  %v4041_v28 = vld [vmem:[%s4270_s2] ss:$0 sm:$0xff] }
 0x18b   : > { %1180 = vrot.lane.b32.xlu0 %v2766_v10, %s2539_s29  ;;  %v1385_v10 = vsel %vm1347_vm3, %v4472_v62, %v4471_v53  ;;  %v1387_v22 = vsel %vm1347_vm3, %v4479_v4, %v4478_v60  ;;  %v4484_v60 = vld [vmem:[#allocation50_spill] sm:$0xff]  ;;  %v4485_v4 = vld [vmem:[#allocation12_spill] sm:$0xff] }
 0x18c   : > { %v1197_v40 = vpop.permute.xlu1 %1196  ;;  %v1434_v1 = vsel %vm1396_vm4, %v1385_v10, %v3872_v26 }
 0x18d   : > { %v1173_v45 = vpop.permute.xlu0 %1172  ;;  %v1483_v11 = vsel %vm1445_vm5, %v1434_v1, %v3892_v14  ;;  %v1436_v14 = vsel %vm1396_vm4, %v1387_v22, %v3882_v17  ;;  %v1365_v22 = vsel %vm1347_vm3, %v4485_v4, %v4484_v60 }
 0x18e   : > { %1282 = vrot.lane.b32.xlu1 %v1229_v57, %s2540_s5  ;;  %v1532_v26 = vsel %vm1494_vm6, %v1483_v11, %v1038_v9  ;;  %v1485_v19 = vsel %vm1445_vm5, %v1436_v14, %v3900_v35  ;;  %v1608_v57 = vsel %vm1592_vm8, %v1559_v36, %v1173_v45 }
 0x18f   : > { %1258 = vrot.lane.b32.xlu0 %v4470_v32, %s2540_s5  ;;  %v1581_v2 = vsel %vm1543_vm7, %v1532_v26, %v1138_v38  ;;  %v1606_v38 = vsel %vm1592_vm8, %v1557_v13, %v1171_v37  ;;  %v1534_v23 = vsel %vm1494_vm6, %v1485_v19, %v3915_v41  ;;  %v4481_v37 = vld [vmem:[#allocation22_spill] sm:$0xff] }
 0x190   : > { %v1275_v25 = vpop.permute.xlu1 %1274  ;;  %v1630_v9 = vsel %vm1592_vm8, %v1581_v2, %v1195_v55  ;;  %v1583_v35 = vsel %vm1543_vm7, %v1534_v23, %v1140_v46 }
 0x191   : > { %v1251_v33 = vpop.permute.xlu0 %1250  ;;  %v1679_v24 = vsel %vm1641_vm9, %v1630_v9, %v1275_v25  ;;  %v1632_v41 = vsel %vm1592_vm8, %v1583_v35, %v1197_v40  ;;  %v4486_v9 = vld [vmem:[#allocation21_spill] sm:$0xff] }
 0x192   : > { %1284 = vrot.lane.b32.xlu1 %v1237_v52, %s2540_s5  ;;  %v1655_v18 = vsel %vm1641_vm9, %v1606_v38, %v1251_v33  ;;  %v4487_v38 = vld [vmem:[#allocation49_spill] sm:$0xff] }
 0x193   : > { %1260 = vrot.lane.b32.xlu0 %v4475_v8, %s2540_s5 }
 0x194   : > { %v1277_v42 = vpop.permute.xlu1 %1276 }
 0x195   : > { %v1253_v47 = vpop.permute.xlu0 %1252  ;;  %v1681_v43 = vsel %vm1641_vm9, %v1632_v41, %v1277_v42 }
 0x196   : > { %1343 = vrot.lane.b32.xlu1 %v1296_v21, %s2541_s6  ;;  %v1657_v3 = vsel %vm1641_vm9, %v1608_v57, %v1253_v47 }
 0x197   : > { %1319 = vrot.lane.b32.xlu0 %v4480_v56, %s2541_s6  ;;  %v1391_v56 = vsel %vm1347_vm3, %v4432_v44, %v4486_v9 }
 0x198   : > { %v1336_v17 = vpop.permute.xlu1 %1335 }
 0x199   : > { %v1728_v29 = vsel %vm1690_vm10, %v1679_v24, %v1336_v17  ;;  %v1312_v6 = vpop.permute.xlu0 %1311  ;;  %v1367_v24 = vsel %vm1347_vm3, %v4433_v20, %v4487_v38 }
 0x19a   : > { %v1704_v55 = vsel %vm1690_vm10, %v1655_v18, %v1312_v6  ;;  %1345 = vrot.lane.b32.xlu1 %v1298_v48, %s2541_s6  ;;  %2384 = vmatprep.mubr.msk.bf16.mxu1 %vm1766_vm11, %v1728_v29 }
 0x19b   : > { %1321 = vrot.lane.b32.xlu0 %v4481_v37, %s2541_s6  ;;  %2360 = vmatprep.mubr.msk.bf16.mxu0 %vm1766_vm11, %v1704_v55 }
 0x19c   : > { %v1338_v46 = vpop.permute.xlu1 %1337 }
 0x19d   : > { %v1730_v5 = vsel %vm1690_vm10, %v1681_v43, %v1338_v46  ;;  %v1314_v32 = vpop.permute.xlu0 %1313 }
 0x19e   : > { %v1706_v52 = vsel %vm1690_vm10, %v1657_v3, %v1314_v32  ;;  %2385 = vmatmul.mubr.msk.bf16.gmra.mrb[12].mxu1 %vm1766_vm11, %v1730_v5 }
 0x19f   : > { %2361 = vmatmul.mubr.msk.bf16.gmra.mrb[12].mxu0 %vm1766_vm11, %v1706_v52 }
 0x1a0   : > { %v717_v31 = vpop.permute.xlu1 %716 }
 0x1a1   : > { %v693_v40 = vpop.permute.xlu0 %692  ;;  %v1438_v16 = vsel %vm1396_vm4, %v1389_v54, %v717_v31 }
 0x1a2   : > { %v1414_v2 = vsel %vm1396_vm4, %v1365_v22, %v693_v40 }
 0x1a4   : > { %v719_v58 = vpop.permute.xlu1 %718 }
 0x1a5   : > { %v695_v25 = vpop.permute.xlu0 %694  ;;  %v1440_v17 = vsel %vm1396_vm4, %v1391_v56, %v719_v58 }
 0x1a6   : > { %v1416_v18 = vsel %vm1396_vm4, %v1367_v24, %v695_v25 }
 0x1a8   : > { %v795_v33 = vpop.permute.xlu1 %794 }
 0x1a9   : > { %v771_v45 = vpop.permute.xlu0 %770  ;;  %v1487_v14 = vsel %vm1445_vm5, %v1438_v16, %v795_v33 }
 0x1aa   : > { %v1463_v48 = vsel %vm1445_vm5, %v1414_v2, %v771_v45 }
 0x1ac   : > { %v797_v53 = vpop.permute.xlu1 %796 }
 0x1ad   : > { %v773_v62 = vpop.permute.xlu0 %772  ;;  %v1489_v29 = vsel %vm1445_vm5, %v1440_v17, %v797_v53 }
 0x1ae   : > { %v1465_v20 = vsel %vm1445_vm5, %v1416_v18, %v773_v62 }
 0x1b0   : > { %v1042_v10 = vpop.permute.xlu1 %1041 }
 0x1b1   : > { %v1018_v7 = vpop.permute.xlu0 %1017  ;;  %v1536_v0 = vsel %vm1494_vm6, %v1487_v14, %v1042_v10 }
 0x1b2   : > { %v1512_v30 = vsel %vm1494_vm6, %v1463_v48, %v1018_v7 }
 0x1b4   : > { %v1044_v50 = vpop.permute.xlu1 %1043 }
 0x1b5   : > { %v1020_v59 = vpop.permute.xlu0 %1019  ;;  %v1538_v35 = vsel %vm1494_vm6, %v1489_v29, %v1044_v50 }
 0x1b6   : > { %v1514_v37 = vsel %vm1494_vm6, %v1465_v20, %v1020_v59 }
 0x1b8   : > { %v1142_v1 = vpop.permute.xlu1 %1141 }
 0x1b9   : > { %v1118_v8 = vpop.permute.xlu0 %1117  ;;  %v1585_v23 = vsel %vm1543_vm7, %v1536_v0, %v1142_v1 }
 0x1ba   : > { %v1561_v44 = vsel %vm1543_vm7, %v1512_v30, %v1118_v8 }
 0x1bc   : > { %v1144_v21 = vpop.permute.xlu1 %1143 }
 0x1bd   : > { %v1120_v27 = vpop.permute.xlu0 %1119  ;;  %v1587_v57 = vsel %vm1543_vm7, %v1538_v35, %v1144_v21 }
 0x1be   : > { %v1563_v32 = vsel %vm1543_vm7, %v1514_v37, %v1120_v27 }
 0x1c0   : > { %v1199_v15 = vpop.permute.xlu1 %1198 }
 0x1c1   : > { %v1175_v11 = vpop.permute.xlu0 %1174  ;;  %v1634_v6 = vsel %vm1592_vm8, %v1585_v23, %v1199_v15 }
 0x1c2   : > { %v1610_v55 = vsel %vm1592_vm8, %v1561_v44, %v1175_v11 }
 0x1c4   : > { %v1201_v42 = vpop.permute.xlu1 %1200 }
 0x1c5   : > { %v1177_v61 = vpop.permute.xlu0 %1176  ;;  %v1636_v52 = vsel %vm1592_vm8, %v1587_v57, %v1201_v42  ;;  %v4488_v57 = vld [vmem:[#allocation52_spill] sm:$0xff] }
 0x1c6   : > { %v1612_v33 = vsel %vm1592_vm8, %v1563_v32, %v1177_v61 }
 0x1c8   : > { %v1279_v26 = vpop.permute.xlu1 %1278 }
 0x1c9   : > { %v1255_v47 = vpop.permute.xlu0 %1254  ;;  %v1683_v36 = vsel %vm1641_vm9, %v1634_v6, %v1279_v26 }
 0x1ca   : > { %v1659_v43 = vsel %vm1641_vm9, %v1610_v55, %v1255_v47 }
 0x1cc   : > { %v1281_v13 = vpop.permute.xlu1 %1280 }
 0x1cd   : > { %v1257_v19 = vpop.permute.xlu0 %1256  ;;  %v1685_v45 = vsel %vm1641_vm9, %v1636_v52, %v1281_v13 }
 0x1ce   : > { %v1661_v50 = vsel %vm1641_vm9, %v1612_v33, %v1257_v19 }
 0x1d0   : > { %v1340_v41 = vpop.permute.xlu1 %1339 }
 0x1d1   : > { %v1732_v46 = vsel %vm1690_vm10, %v1683_v36, %v1340_v41  ;;  %v1316_v3 = vpop.permute.xlu0 %1315  ;;  %v2374_v5 = vpop.f32.mrb[0].mxu1 }
 0x1d2   : > { %v1708_v31 = vsel %vm1690_vm10, %v1659_v43, %v1316_v3  ;;  %v2350_v40 = vpop.f32.mrb[0].mxu0  ;;  %v1958_v58 = vadd.f32 %v2374_v5, %v4041_v28  ;;  %v1949_v25 = vpop.f32.mrb[1].mxu1  ;;  %2388 = vmatprep.mubr.msk.bf16.mxu1 %vm1766_vm11, %v1732_v46  ;;  %v1369_v43 = vsel %vm1347_vm3, %v4447_v12, %v4488_v57  ;;  %v4489_v46 = vld [vmem:[#allocation56_spill] sm:$0xff]  ;;  %v4490_v5 = vld [vmem:[#allocation57_spill] sm:$0xff] }
 0x1d3   : > { %v1862_v53 = vadd.f32 %v2350_v40, %v4041_v28  ;;  %v1853_v62 = vpop.f32.mrb[1].mxu0  ;;  %2364 = vmatprep.mubr.msk.bf16.mxu0 %vm1766_vm11, %v1708_v31  ;;  %v1950_v10 = vadd.f32 %v4041_v28, %v1949_v25  ;;  %v2375_v7 = vpop.f32.mrb[2].mxu1  ;;  %v1395_v3 = vsel %vm1347_vm3, %v4453_v63, %v4489_v46  ;;  %v1393_v32 = vsel %vm1347_vm3, %v4446_v34, %v4490_v5  ;;  %v4491_v31 = vld [vmem:[#allocation51_spill] sm:$0xff] }
 0x1d4   : > { %v2070_v59 = vmax.f32 %v1958_v58, 0.0  ;;  %v1854_v1 = vadd.f32 %v4041_v28, %v1853_v62  ;;  %v2351_v8 = vpop.f32.mrb[2].mxu0  ;;  %v1961_v21 = vadd.f32 %v2375_v7, %v4041_v28  ;;  %v1342_v27 = vpop.permute.xlu1 %1341  ;;  %v1371_v40 = vsel %vm1347_vm3, %v4455_v39, %v4491_v31 }
 0x1d5   : > { %v2046_v15 = vmax.f32 %v1862_v53, 0.0  ;;  %v2068_v11 = vmax.f32 %v1950_v10, 0.0  ;;  %v1865_v42 = vadd.f32 %v2351_v8, %v4041_v28  ;;  %v1734_v61 = vsel %vm1690_vm10, %v1685_v45, %v1342_v27  ;;  %v1856_v26 = vpop.f32.mrb[3].mxu0  ;;  %v1952_v47 = vpop.f32.mrb[3].mxu1 }
 0x1d6   : > { %2118 = vst.msk [vmem:[%s4061_s12 + $0xd0] sm:$0xff] %vm1396_vm4, %v2070_v59  ;;  %v2044_v49 = vmax.f32 %v1854_v1, 0.0  ;;  %v2071_v51 = vmax.f32 %v1961_v21, 0.0  ;;  %v1857_v54 = vadd.f32 %v4041_v28, %v1856_v26  ;;  %v1953_v60 = vadd.f32 %v4041_v28, %v1952_v47  ;;  %v1318_v4 = vpop.permute.xlu0 %1317  ;;  %2389 = vmatmul.mubr.msk.bf16.gmra.mrb[16].mxu1 %vm1766_vm11, %v1734_v61 }
 0x1d7   : > { %2094 = vst.msk [vmem:[%s4061_s12 + $0x10] sm:$0xff] %vm1396_vm4, %v2046_v15  ;;  %2116 = vst.msk [vmem:[%s4061_s12 + $0xc0] sm:$0xff] %vm1396_vm4, %v2068_v11  ;;  %v2047_v22 = vmax.f32 %v1865_v42, 0.0  ;;  %v1710_v16 = vsel %vm1690_vm10, %v1661_v50, %v1318_v4 }
 0x1d8   : > { %2092 = vst.msk [vmem:[%s4061_s12] sm:$0xff] %vm1396_vm4, %v2044_v49  ;;  %2119 = vst.msk [vmem:[%s4061_s12 + $0xd8] sm:$0xff] %vm1396_vm4, %v2071_v51  ;;  %v2045_v2 = vmax.f32 %v1857_v54, 0.0  ;;  %v2069_v14 = vmax.f32 %v1953_v60, 0.0  ;;  %2365 = vmatmul.mubr.msk.bf16.gmra.mrb[16].mxu0 %vm1766_vm11, %v1710_v16  ;;  %v721_v13 = vpop.permute.xlu1 %720 }
 0x1d9   : > { %2095 = vst.msk [vmem:[%s4061_s12 + $0x18] sm:$0xff] %vm1396_vm4, %v2047_v22  ;;  %v1442_v58 = vsel %vm1396_vm4, %v1393_v32, %v721_v13 }
 0x1da   : > { %2093 = vst.msk [vmem:[%s4061_s12 + $0x8] sm:$0xff] %vm1396_vm4, %v2045_v2  ;;  %2117 = vst.msk [vmem:[%s4061_s12 + $0xc8] sm:$0xff] %vm1396_vm4, %v2069_v14  ;;  %v697_v9 = vpop.permute.xlu0 %696 }
 0x1db   : > { %v1418_v25 = vsel %vm1396_vm4, %v1369_v43, %v697_v9 }
 0x1dc   : > { %v723_v56 = vpop.permute.xlu1 %722 }
 0x1dd   : > { %v1444_v33 = vsel %vm1396_vm4, %v1395_v3, %v723_v56 }
 0x1de   : > { %v699_v48 = vpop.permute.xlu0 %698 }
 0x1df   : > { %v1420_v12 = vsel %vm1396_vm4, %v1371_v40, %v699_v48 }
 0x1e0   : > { %v799_v0 = vpop.permute.xlu1 %798 }
 0x1e1   : > { %v1491_v45 = vsel %vm1445_vm5, %v1442_v58, %v799_v0 }
 0x1e2   : > { %v775_v19 = vpop.permute.xlu0 %774 }
 0x1e3   : > { %v1467_v63 = vsel %vm1445_vm5, %v1418_v25, %v775_v19 }
 0x1e4   : > { %v801_v38 = vpop.permute.xlu1 %800 }
 0x1e5   : > { %v1493_v53 = vsel %vm1445_vm5, %v1444_v33, %v801_v38 }
 0x1e6   : > { %v777_v24 = vpop.permute.xlu0 %776 }
 0x1e7   : > { %v1469_v62 = vsel %vm1445_vm5, %v1420_v12, %v777_v24 }
 0x1e8   : > { %v1046_v17 = vpop.permute.xlu1 %1045 }
 0x1e9   : > { %v1540_v10 = vsel %vm1494_vm6, %v1491_v45, %v1046_v17 }
 0x1ea   : > { %v1022_v30 = vpop.permute.xlu0 %1021 }
 0x1eb   : > { %v1516_v39 = vsel %vm1494_vm6, %v1467_v63, %v1022_v30 }
 0x1ec   : > { %v1048_v23 = vpop.permute.xlu1 %1047 }
 0x1ed   : > { %v1542_v7 = vsel %vm1494_vm6, %v1493_v53, %v1048_v23 }
 0x1ee   : > { %v1024_v18 = vpop.permute.xlu0 %1023 }
 0x1ef   : > { %v1518_v59 = vsel %vm1494_vm6, %v1469_v62, %v1024_v18 }
 0x1f0   : > { %v1146_v29 = vpop.permute.xlu1 %1145 }
 0x1f1   : > { %v1589_v1 = vsel %vm1543_vm7, %v1540_v10, %v1146_v29 }
 0x1f2   : > { %v1122_v44 = vpop.permute.xlu0 %1121 }
 0x1f3   : > { %v1565_v8 = vsel %vm1543_vm7, %v1516_v39, %v1122_v44 }
 0x1f4   : > { %v1148_v6 = vpop.permute.xlu1 %1147 }
 0x1f5   : > { %v1591_v11 = vsel %vm1543_vm7, %v1542_v7, %v1148_v6 }
 0x1f6   : > { %v1124_v20 = vpop.permute.xlu0 %1123 }
 0x1f7   : > { %v1567_v6 = vsel %vm1543_vm7, %v1518_v59, %v1124_v20 }
 0x1f8   : > { %v1203_v35 = vpop.permute.xlu1 %1202 }
 0x1f9   : > { %v1638_v42 = vsel %vm1592_vm8, %v1589_v1, %v1203_v35 }
 0x1fa   : > { %v1179_v55 = vpop.permute.xlu0 %1178 }
 0x1fb   : > { %v1614_v61 = vsel %vm1592_vm8, %v1565_v8, %v1179_v55 }
 0x1fc   : > { %v1205_v36 = vpop.permute.xlu1 %1204 }
 0x1fd   : > { %v1640_v35 = vsel %vm1592_vm8, %v1591_v11, %v1205_v36 }
 0x1fe   : > { %v4092_v41 = vpop.permute.xlu0 %1180 }
 0x200   : > { %v1283_v37 = vpop.permute.xlu1 %1282 }
 0x201   : > { %v1687_v51 = vsel %vm1641_vm9, %v1638_v42, %v1283_v37  ;;  %v1616_v37 = vsel %vm1592_vm8, %v1567_v6, %v4092_v41 }
 0x202   : > { %v1259_v52 = vpop.permute.xlu0 %1258 }
 0x203   : > { %v1663_v2 = vsel %vm1641_vm9, %v1614_v61, %v1259_v52 }
 0x204   : > { %v1285_v34 = vpop.permute.xlu1 %1284 }
 0x205   : > { %v2378_v50 = vpop.f32.mrb[4].mxu1  ;;  %v1689_v57 = vsel %vm1641_vm9, %v1640_v35, %v1285_v34 }
 0x206   : > { %v1261_v21 = vpop.permute.xlu0 %1260  ;;  %v2354_v27 = vpop.f32.mrb[4].mxu0  ;;  %v1974_v15 = vadd.f32 %v2378_v50, %v4041_v28 }
 0x207   : > { %v1878_v26 = vadd.f32 %v2354_v27, %v4041_v28  ;;  %v1869_v47 = vpop.f32.mrb[5].mxu0  ;;  %v1965_v49 = vpop.f32.mrb[5].mxu1  ;;  %v1665_v36 = vsel %vm1641_vm9, %v1616_v37, %v1261_v21 }
 0x208   : > { %v2074_v54 = vmax.f32 %v1974_v15, 0.0  ;;  %v1870_v60 = vadd.f32 %v4041_v28, %v1869_v47  ;;  %v1966_v4 = vadd.f32 %v4041_v28, %v1965_v49  ;;  %v2355_v22 = vpop.f32.mrb[6].mxu0  ;;  %v2379_v16 = vpop.f32.mrb[6].mxu1 }
 0x209   : > { %v2050_v14 = vmax.f32 %v1878_v26, 0.0  ;;  %v1881_v13 = vadd.f32 %v2355_v22, %v4041_v28  ;;  %v1977_v9 = vadd.f32 %v2379_v16, %v4041_v28  ;;  %v1344_v56 = vpop.permute.xlu1 %1343  ;;  %v1872_v48 = vpop.f32.mrb[7].mxu0 }
 0x20a   : > { %2122 = vst.msk [vmem:[%s4061_s12 + $0xf0] sm:$0xff] %vm1396_vm4, %v2074_v54  ;;  %v2048_v0 = vmax.f32 %v1870_v60, 0.0  ;;  %v2072_v19 = vmax.f32 %v1966_v4, 0.0  ;;  %v1736_v38 = vsel %vm1690_vm10, %v1687_v51, %v1344_v56  ;;  %v1873_v24 = vadd.f32 %v4041_v28, %v1872_v48  ;;  %v1968_v17 = vpop.f32.mrb[7].mxu1  ;;  %v1320_v30 = vpop.permute.xlu0 %1319 }
 0x20b   : > { %2098 = vst.msk [vmem:[%s4061_s12 + $0x30] sm:$0xff] %vm1396_vm4, %v2050_v14  ;;  %v2051_v23 = vmax.f32 %v1881_v13, 0.0  ;;  %v2075_v18 = vmax.f32 %v1977_v9, 0.0  ;;  %v1969_v29 = vadd.f32 %v4041_v28, %v1968_v17  ;;  %v1712_v44 = vsel %vm1690_vm10, %v1663_v2, %v1320_v30  ;;  %2392 = vmatprep.mubr.msk.bf16.mxu1 %vm1766_vm11, %v1736_v38 }
 0x20c   : > { %2096 = vst.msk [vmem:[%s4061_s12 + $0x20] sm:$0xff] %vm1396_vm4, %v2048_v0  ;;  %2120 = vst.msk [vmem:[%s4061_s12 + $0xe0] sm:$0xff] %vm1396_vm4, %v2072_v19  ;;  %v2049_v55 = vmax.f32 %v1873_v24, 0.0  ;;  %2368 = vmatprep.mubr.msk.bf16.mxu0 %vm1766_vm11, %v1712_v44 }
 0x20d   : > { %2099 = vst.msk [vmem:[%s4061_s12 + $0x38] sm:$0xff] %vm1396_vm4, %v2051_v23  ;;  %2123 = vst.msk [vmem:[%s4061_s12 + $0xf8] sm:$0xff] %vm1396_vm4, %v2075_v18  ;;  %v2073_v20 = vmax.f32 %v1969_v29, 0.0  ;;  %v1346_v43 = vpop.permute.xlu1 %1345 }
 0x20e   : > { %2097 = vst.msk [vmem:[%s4061_s12 + $0x28] sm:$0xff] %vm1396_vm4, %v2049_v55  ;;  %v1738_v46 = vsel %vm1690_vm10, %v1689_v57, %v1346_v43  ;;  %v1322_v3 = vpop.permute.xlu0 %1321 }
 0x20f   : > { %2121 = vst.msk [vmem:[%s4061_s12 + $0xe8] sm:$0xff] %vm1396_vm4, %v2073_v20  ;;  %v1714_v5 = vsel %vm1690_vm10, %v1665_v36, %v1322_v3  ;;  %2393 = vmatmul.mubr.msk.bf16.gmra.mrb[20].mxu1 %vm1766_vm11, %v1738_v46 }
 0x210   : > { %2369 = vmatmul.mubr.msk.bf16.gmra.mrb[20].mxu0 %vm1766_vm11, %v1714_v5 }
 0x239   : > { %v2382_v41 = vpop.f32.mrb[8].mxu1 }
 0x23a   : > { %v2358_v32 = vpop.f32.mrb[8].mxu0  ;;  %v1990_v52 = vadd.f32 %v2382_v41, %v4041_v28  ;;  %v1981_v31 = vpop.f32.mrb[9].mxu1 }
 0x23b   : > { %v1894_v40 = vadd.f32 %v2358_v32, %v4041_v28  ;;  %v1885_v58 = vpop.f32.mrb[9].mxu0  ;;  %v1982_v25 = vadd.f32 %v4041_v28, %v1981_v31  ;;  %v2383_v33 = vpop.f32.mrb[10].mxu1 }
 0x23c   : > { %v2078_v12 = vmax.f32 %v1990_v52, 0.0  ;;  %v1886_v45 = vadd.f32 %v4041_v28, %v1885_v58  ;;  %v2359_v63 = vpop.f32.mrb[10].mxu0  ;;  %v1993_v53 = vadd.f32 %v2383_v33, %v4041_v28  ;;  %v1984_v34 = vpop.f32.mrb[11].mxu1 }
 0x23d   : > { %v2054_v62 = vmax.f32 %v1894_v40, 0.0  ;;  %v2076_v10 = vmax.f32 %v1982_v25, 0.0  ;;  %v1897_v39 = vadd.f32 %v2359_v63, %v4041_v28  ;;  %v1888_v7 = vpop.f32.mrb[11].mxu0  ;;  %v1985_v50 = vadd.f32 %v4041_v28, %v1984_v34 }
 0x23e   : > { %2126 = vst.msk [vmem:[%s4061_s12 + $0x110] sm:$0xff] %vm1396_vm4, %v2078_v12  ;;  %v2052_v59 = vmax.f32 %v1886_v45, 0.0  ;;  %v2079_v1 = vmax.f32 %v1993_v53, 0.0  ;;  %v1889_v8 = vadd.f32 %v4041_v28, %v1888_v7 }
 0x23f   : > { %2102 = vst.msk [vmem:[%s4061_s12 + $0x50] sm:$0xff] %vm1396_vm4, %v2054_v62  ;;  %2124 = vst.msk [vmem:[%s4061_s12 + $0x100] sm:$0xff] %vm1396_vm4, %v2076_v10  ;;  %v2055_v21 = vmax.f32 %v1897_v39, 0.0  ;;  %v2077_v27 = vmax.f32 %v1985_v50, 0.0 }
 0x240   : > { %2100 = vst.msk [vmem:[%s4061_s12 + $0x40] sm:$0xff] %vm1396_vm4, %v2052_v59  ;;  %2127 = vst.msk [vmem:[%s4061_s12 + $0x118] sm:$0xff] %vm1396_vm4, %v2079_v1  ;;  %v2053_v15 = vmax.f32 %v1889_v8, 0.0 }
 0x241   : > { %2103 = vst.msk [vmem:[%s4061_s12 + $0x58] sm:$0xff] %vm1396_vm4, %v2055_v21  ;;  %2125 = vst.msk [vmem:[%s4061_s12 + $0x108] sm:$0xff] %vm1396_vm4, %v2077_v27 }
 0x242   : > { %2101 = vst.msk [vmem:[%s4061_s12 + $0x48] sm:$0xff] %vm1396_vm4, %v2053_v15 }
 0x271   : > { %v2386_v11 = vpop.f32.mrb[12].mxu1 }
 0x272   : > { %v2362_v42 = vpop.f32.mrb[12].mxu0  ;;  %v2006_v61 = vadd.f32 %v2386_v11, %v4041_v28  ;;  %v1997_v26 = vpop.f32.mrb[13].mxu1 }
 0x273   : > { %v1910_v47 = vadd.f32 %v2362_v42, %v4041_v28  ;;  %v1901_v49 = vpop.f32.mrb[13].mxu0  ;;  %v1998_v51 = vadd.f32 %v4041_v28, %v1997_v26  ;;  %v2387_v54 = vpop.f32.mrb[14].mxu1 }
 0x274   : > { %v2082_v60 = vmax.f32 %v2006_v61, 0.0  ;;  %v1902_v4 = vadd.f32 %v4041_v28, %v1901_v49  ;;  %v2363_v22 = vpop.f32.mrb[14].mxu0  ;;  %v2009_v16 = vadd.f32 %v2387_v54, %v4041_v28  ;;  %v2000_v2 = vpop.f32.mrb[15].mxu1 }
 0x275   : > { %v2058_v14 = vmax.f32 %v1910_v47, 0.0  ;;  %v2080_v13 = vmax.f32 %v1998_v51, 0.0  ;;  %v1913_v9 = vadd.f32 %v2363_v22, %v4041_v28  ;;  %v1904_v56 = vpop.f32.mrb[15].mxu0  ;;  %v2001_v48 = vadd.f32 %v4041_v28, %v2000_v2 }
 0x276   : > { %2130 = vst.msk [vmem:[%s4061_s12 + $0x130] sm:$0xff] %vm1396_vm4, %v2082_v60  ;;  %v2056_v0 = vmax.f32 %v1902_v4, 0.0  ;;  %v2083_v19 = vmax.f32 %v2009_v16, 0.0  ;;  %v1905_v38 = vadd.f32 %v4041_v28, %v1904_v56 }
 0x277   : > { %2106 = vst.msk [vmem:[%s4061_s12 + $0x70] sm:$0xff] %vm1396_vm4, %v2058_v14  ;;  %2128 = vst.msk [vmem:[%s4061_s12 + $0x120] sm:$0xff] %vm1396_vm4, %v2080_v13  ;;  %v2059_v24 = vmax.f32 %v1913_v9, 0.0  ;;  %v2081_v17 = vmax.f32 %v2001_v48, 0.0 }
 0x278   : > { %2104 = vst.msk [vmem:[%s4061_s12 + $0x60] sm:$0xff] %vm1396_vm4, %v2056_v0  ;;  %2131 = vst.msk [vmem:[%s4061_s12 + $0x138] sm:$0xff] %vm1396_vm4, %v2083_v19  ;;  %v2057_v30 = vmax.f32 %v1905_v38, 0.0 }
 0x279   : > { %2107 = vst.msk [vmem:[%s4061_s12 + $0x78] sm:$0xff] %vm1396_vm4, %v2059_v24  ;;  %2129 = vst.msk [vmem:[%s4061_s12 + $0x128] sm:$0xff] %vm1396_vm4, %v2081_v17 }
 0x27a   : > { %2105 = vst.msk [vmem:[%s4061_s12 + $0x68] sm:$0xff] %vm1396_vm4, %v2057_v30 }
 0x2a9   : > { %v2390_v23 = vpop.f32.mrb[16].mxu1 }
 0x2aa   : > { %v2022_v18 = vadd.f32 %v2390_v23, %v4041_v28  ;;  %v2013_v29 = vpop.f32.mrb[17].mxu1 }
 0x2ab   : > { %v2366_v44 = vpop.f32.mrb[16].mxu0  ;;  %v2014_v6 = vadd.f32 %v4041_v28, %v2013_v29  ;;  %v2391_v35 = vpop.f32.mrb[18].mxu1 }
 0x2ac   : > { %v1926_v55 = vadd.f32 %v2366_v44, %v4041_v28  ;;  %v2086_v37 = vmax.f32 %v2022_v18, 0.0  ;;  %v1917_v57 = vpop.f32.mrb[17].mxu0  ;;  %v2025_v20 = vadd.f32 %v2391_v35, %v4041_v28  ;;  %v2016_v43 = vpop.f32.mrb[19].mxu1 }
 0x2ad   : > { %v1918_v36 = vadd.f32 %v4041_v28, %v1917_v57  ;;  %v2084_v46 = vmax.f32 %v2014_v6, 0.0  ;;  %v2367_v3 = vpop.f32.mrb[18].mxu0  ;;  %v2017_v5 = vadd.f32 %v4041_v28, %v2016_v43 }
 0x2ae   : > { %v2062_v41 = vmax.f32 %v1926_v55, 0.0  ;;  %2134 = vst.msk [vmem:[%s4061_s12 + $0x150] sm:$0xff] %vm1396_vm4, %v2086_v37  ;;  %v1929_v32 = vadd.f32 %v2367_v3, %v4041_v28  ;;  %v2087_v52 = vmax.f32 %v2025_v20, 0.0  ;;  %v1920_v31 = vpop.f32.mrb[19].mxu0 }
 0x2af   : > { %v2060_v40 = vmax.f32 %v1918_v36, 0.0  ;;  %2132 = vst.msk [vmem:[%s4061_s12 + $0x140] sm:$0xff] %vm1396_vm4, %v2084_v46  ;;  %v1921_v58 = vadd.f32 %v4041_v28, %v1920_v31  ;;  %v2085_v25 = vmax.f32 %v2017_v5, 0.0 }
 0x2b0   : > { %2110 = vst.msk [vmem:[%s4061_s12 + $0x90] sm:$0xff] %vm1396_vm4, %v2062_v41  ;;  %v2063_v33 = vmax.f32 %v1929_v32, 0.0  ;;  %2135 = vst.msk [vmem:[%s4061_s12 + $0x158] sm:$0xff] %vm1396_vm4, %v2087_v52 }
 0x2b1   : > { %2108 = vst.msk [vmem:[%s4061_s12 + $0x80] sm:$0xff] %vm1396_vm4, %v2060_v40  ;;  %v2061_v12 = vmax.f32 %v1921_v58, 0.0  ;;  %2133 = vst.msk [vmem:[%s4061_s12 + $0x148] sm:$0xff] %vm1396_vm4, %v2085_v25 }
 0x2b2   : > { %2111 = vst.msk [vmem:[%s4061_s12 + $0x98] sm:$0xff] %vm1396_vm4, %v2063_v33 }
 0x2b3   : > { %2109 = vst.msk [vmem:[%s4061_s12 + $0x88] sm:$0xff] %vm1396_vm4, %v2061_v12 }
 0x2e2   : > { %v2394_v45 = vpop.f32.mrb[20].mxu1 }
 0x2e3   : > { %v2370_v63 = vpop.f32.mrb[20].mxu0  ;;  %v2038_v53 = vadd.f32 %v2394_v45, %v4041_v28  ;;  %v2029_v34 = vpop.f32.mrb[21].mxu1 }
 0x2e4   : > { %v1942_v62 = vadd.f32 %v2370_v63, %v4041_v28  ;;  %v1933_v10 = vpop.f32.mrb[21].mxu0  ;;  %v2030_v39 = vadd.f32 %v4041_v28, %v2029_v34  ;;  %v2395_v7 = vpop.f32.mrb[22].mxu1 }
 0x2e5   : > { %v2090_v50 = vmax.f32 %v2038_v53, 0.0  ;;  %v1934_v59 = vadd.f32 %v4041_v28, %v1933_v10  ;;  %v2371_v1 = vpop.f32.mrb[22].mxu0  ;;  %v2041_v8 = vadd.f32 %v2395_v7, %v4041_v28  ;;  %v2032_v21 = vpop.f32.mrb[23].mxu1 }
 0x2e6   : > { %v2066_v27 = vmax.f32 %v1942_v62, 0.0  ;;  %v2088_v15 = vmax.f32 %v2030_v39, 0.0  ;;  %v1945_v11 = vadd.f32 %v2371_v1, %v4041_v28  ;;  %v1936_v42 = vpop.f32.mrb[23].mxu0  ;;  %v2033_v61 = vadd.f32 %v4041_v28, %v2032_v21 }
 0x2e7   : > { %2138 = vst.msk [vmem:[%s4061_s12 + $0x170] sm:$0xff] %vm1396_vm4, %v2090_v50  ;;  %v2064_v26 = vmax.f32 %v1934_v59, 0.0  ;;  %v2091_v47 = vmax.f32 %v2041_v8, 0.0  ;;  %v1937_v49 = vadd.f32 %v4041_v28, %v1936_v42 }
 0x2e8   : > { %2114 = vst.msk [vmem:[%s4061_s12 + $0xb0] sm:$0xff] %vm1396_vm4, %v2066_v27  ;;  %2136 = vst.msk [vmem:[%s4061_s12 + $0x160] sm:$0xff] %vm1396_vm4, %v2088_v15  ;;  %v2067_v51 = vmax.f32 %v1945_v11, 0.0  ;;  %v2089_v54 = vmax.f32 %v2033_v61, 0.0 }
 0x2e9   : > { %2112 = vst.msk [vmem:[%s4061_s12 + $0xa0] sm:$0xff] %vm1396_vm4, %v2064_v26  ;;  %2139 = vst.msk [vmem:[%s4061_s12 + $0x178] sm:$0xff] %vm1396_vm4, %v2091_v47  ;;  %v2065_v60 = vmax.f32 %v1937_v49, 0.0 }
 0x2ea   : > { %2115 = vst.msk [vmem:[%s4061_s12 + $0xb8] sm:$0xff] %vm1396_vm4, %v2067_v51  ;;  %2137 = vst.msk [vmem:[%s4061_s12 + $0x168] sm:$0xff] %vm1396_vm4, %v2089_v54 }
 0x2eb   : > { %2113 = vst.msk [vmem:[%s4061_s12 + $0xa8] sm:$0xff] %vm1396_vm4, %v2065_v60 }
 0x2ec PF: > { %s13_s14 = sadd.s32 1, %s2532_s14   ;;  %s4492_s12 = smov %s2528_s13 }
 0x2ed   : > { %p10_p5 = scmp.ge.s32.totalorder %s13_s14, 4   ;;  %s4493_s13 = smov %s4495_s15 }
 0x2ef   :  { %12 = sbr.rel (!%p10_p5) target bundleno = 2 (0x2), region = 62 }

// kernel: tpu_custom_call.1
= control target key start
LH: loop header
LB: loop body
LE: loop exit
PB: predicated region body
PF: predicated region fallthrough
CT: control target
= control target key end

     0   :  { %s2562_s12 = smov 0   ;;  %s2564_s13 = smov 0   ;;  %s4268_s0 = inlined_call_operand.vmem [shape: bf16[2,434,4], index: 0, kind: input, shape index: {}]   ;;  %s4269_s1 = inlined_call_operand.vmem [shape: bf16[36,8], index: 1, kind: input, shape index: {}]   ;;  %s4270_s2 = inlined_call_operand.vmem [shape: f32[1,8], index: 2, kind: input, shape index: {}]   ;;  %s4271_s3 = inlined_call_operand.vmem [shape: f32[2,384,8], index: 3, kind: output, shape index: {}]  }
   0x1   :  { %s2566_s14 = smov 0  }
   0x2 LB: > { %s25_s15 = sadd.s32 1, %s2528_s13  ;;  %p2225_p0 = scmp.ge.s32.totalorder %s2532_s14, 1  ;;  %s2532_s14 = sphi %s2566_s14, %s13_s14   ;;  %s2528_s13 = sphi %s2564_s13, %s4493_s13   ;;  %s2524_s12 = sphi %s2562_s12, %s4492_s12  }
   0x3   : > { %p27_p1 = scmp.ge.s32.totalorder %s25_s15, 2  ;;  %p151_p2 = scmp.lt.s32.totalorder %s2532_s14, 3 }
   0x5   : > { %s4495_s15 = smov (%p27_p1, %s25_s15), 0  ;;  %p152_p3 = pnand %p2225_p0, %p151_p2 }
   0x7   : > { %155 = sbr.rel (%p152_p3) target bundleno = 748 (0x2ec), region = 32 }
   0xe   : > { %p179_p4 = scmp.lt.s32.totalorder %s2524_s12, 1  ;;  %vm378_vm0 = vsmask.f32 7424  ;;  %s2534_s20 = smov 4   ;;  %vm626_vm1 = vcmask 1046528   ;;  %vm1815_vm2 = vcmask 1041408  }
   0xf   : > { %s2535_s21 = smov 8   ;;  %s2536_s22 = smov 12   ;;  %vm1347_vm3 = vcmask 31744   ;;  %vm1396_vm4 = vcmask 64512   ;;  %vm1445_vm5 = vcmask 97280   ;;  %vm1494_vm6 = vcmask 130048  }
  0x10   : > { %s4497_s12 = smov (!%p179_p4, %s2524_s12), 1  ;;  %s2537_s23 = smov 16   ;;  %vm1543_vm7 = vcmask 162816   ;;  %vm1592_vm8 = vcmask 195584   ;;  %vm1641_vm9 = vcmask 228352   ;;  %vm1690_vm10 = vcmask 261120  }
  0x11   : > { %s2404_s16 = smul.u32 220, %s4497_s12  ;;  %s2538_s24 = smov 20   ;;  %vm1766_vm11 = vcmask 293888  }
  0x12   : > { %s2539_s29 = smov 24   ;;  %s2540_s5 = smov 28  }
  0x13   : > { %s2586_s19 = scalar_lea.vmem %s4268_s0, %s2404_s16  ;;  %s2541_s6 = smov 32  }
  0x14   : > { %v2589_v0 = vld [vmem:[%s2586_s19 + $0x10] sm:$0xf]  ;;  %v200_v1 = vld [vmem:[%s2586_s19 + $0x14] sm:$0xf]  ;;  %v201_v2 = vld [vmem:[%s2586_s19 + $0x18] sm:$0xf] }
  0x15   : > { %v2594_v3 = vld [vmem:[%s2586_s19 + $0x1c] sm:$0xf]  ;;  %v2597_v4 = vcombine.low %v2589_v0, %v200_v1  ;;  %v195_v5 = vld [vmem:[%s2586_s19] sm:$0xf]  ;;  %v2601_v6 = vld [vmem:[%s2586_s19 + $0x4] sm:$0xf]  ;;  %v2603_v7 = vcombine.low %v200_v1, %v201_v2 }
  0x16   : > { %v2606_v8 = vcombine.low %v201_v2, %v2594_v3  ;;  %v197_v9 = vld [vmem:[%s2586_s19 + $0x8] sm:$0xf]  ;;  %v198_v10 = vld [vmem:[%s2586_s19 + $0xc] sm:$0xf]  ;;  %v2611_v11 = vcombine.low %v195_v5, %v2601_v6  ;;  %v2614_v12 = vld [vmem:[%s2586_s19 + $0x20] sm:$0xf] }
  0x17   : > { %4346 = vst [vmem:[#allocation2_spill] sm:$0xff] %v2597_v4  ;;  %v395_v13 = vshll.u32 %v2597_v4, 16  ;;  %v399_v14 = vshrl.u32 %v2597_v4, 16  ;;  %v2618_v15 = vcombine.low %v197_v9, %v198_v10  ;;  %v2621_v16 = vld [vmem:[%s2586_s19 + $0x24] sm:$0xf]  ;;  %v2627_v18 = vcombine.low %v198_v10, %v2589_v0  ;;  %s2405_s7 = smul.u32 384, %s4497_s12 }
  0x18   : > { %4347 = vst [vmem:[#allocation3_spill] sm:$0xff] %v2611_v11  ;;  %v2624_v17 = vld [vmem:[%s2586_s19 + $0x28] sm:$0xf]  ;;  %v403_v19 = vshll.u32 %v2606_v8, 16  ;;  %v380_v20 = vshrl.u32 %v2611_v11, 16  ;;  %v382_v21 = vshll.u32 %v2611_v11, 16  ;;  %v2634_v22 = vcombine.low %v2614_v12, %v2621_v16 }
  0x19   : > { %4348 = vst [vmem:[#allocation4_spill] sm:$0xff] %v2618_v15  ;;  %v2637_v23 = vld [vmem:[%s2586_s19 + $0x2c] sm:$0xf]  ;;  %v397_v24 = vrot.slane %v395_v13, 1  ;;  %v387_v25 = vshll.u32 %v2618_v15, 16  ;;  %v407_v26 = vshrl.u32 %v2606_v8, 16  ;;  %s4061_s12 = scalar_lea.vmem %s4271_s3, %s2405_s7 }
  0x1a   : > { %v391_v27 = vshrl.u32 %v2618_v15, 16  ;;  %v2643_v28 = vld [vmem:[%s2586_s19 + $0x30] sm:$0xf]  ;;  %v405_v29 = vrot.slane %v403_v19, 1  ;;  %v384_v30 = vrot.slane %v382_v21, 1  ;;  %v411_v31 = vshll.u32 %v2634_v22, 16 }
  0x1b   : > { %v2647_v32 = vld [vmem:[%s2586_s19 + $0x34] sm:$0xf]  ;;  %v2651_v33 = vcombine.low %v2624_v17, %v2637_v23  ;;  %v401_v34 = vor.u32 %v399_v14, %v397_v24  ;;  %v389_v35 = vrot.slane %v387_v25, 1  ;;  %v415_v37 = vshrl.u32 %v2634_v22, 16  ;;  %v2659_v38 = vld [vmem:[%s2586_s19 + $0x38] sm:$0xf] }
  0x1c   : > { %v2655_v36 = vcombine.low %v2643_v28, %v2647_v32  ;;  %v2662_v39 = vld [vmem:[%s2586_s19 + $0x3c] sm:$0xf]  ;;  %v385_v40 = vor.u32 %v384_v30, %v380_v20  ;;  %v409_v41 = vor.u32 %v407_v26, %v405_v29  ;;  %v413_v42 = vrot.slane %v411_v31, 1  ;;  %v2666_v44 = vld [vmem:[%s2586_s19 + $0x40] sm:$0xf] }
  0x1d   : > { %4349 = vst [vmem:[#allocation5_spill] sm:$0xff] %v2651_v33  ;;  %4351 = vst [vmem:[#allocation7_spill] sm:$0xff] %v2662_v39  ;;  %v419_v43 = vshll.u32 %v2651_v33, 16  ;;  %v2669_v45 = vld [vmem:[%s2586_s19 + $0x44] sm:$0xf]  ;;  %v406_v46 = vsel %vm378_vm0, %v401_v34, %v405_v29  ;;  %v393_v47 = vor.u32 %v391_v27, %v389_v35  ;;  %v423_v48 = vshrl.u32 %v2651_v33, 16 }
  0x1e   : > { %4350 = vst [vmem:[#allocation6_spill] sm:$0xff] %v2655_v36  ;;  %4352 = vst [vmem:[#allocation8_spill] sm:$0xff] %v2669_v45  ;;  %v427_v49 = vshll.u32 %v2655_v36, 16  ;;  %v2675_v50 = vld [vmem:[%s2586_s19 + $0x48] sm:$0xf]  ;;  %579 = vrot.lane.b32.xlu1 %v406_v46, %s2534_s20  ;;  %v390_v52 = vsel %vm378_vm0, %v385_v40, %v389_v35  ;;  %v417_v54 = vor.u32 %v415_v37, %v413_v42  ;;  %v431_v1 = vshrl.u32 %v2655_v36, 16 }
  0x1f   : > { %4353 = vst [vmem:[#allocation9_spill] sm:$0xff] %v2675_v50  ;;  %v214_v51 = vld [vmem:[%s2586_s19 + $0x4c] sm:$0xf]  ;;  %v421_v53 = vrot.slane %v419_v43, 1  ;;  %v215_v55 = vld [vmem:[%s2586_s19 + $0x50] sm:$0xf]  ;;  %575 = vrot.lane.b32.xlu0 %v390_v52, %s2534_s20  ;;  %v2684_v57 = vsel %vm378_vm0, %v409_v41, %v413_v42  ;;  %v2688_v59 = vcombine.low %v2659_v38, %v2662_v39  ;;  %v2692_v60 = vcombine.low %v2666_v44, %v2669_v45 }
  0x20   : > { %v216_v56 = vld [vmem:[%s2586_s19 + $0x54] sm:$0xf]  ;;  %4354 = vst [vmem:[#allocation10_spill] sm:$0xff] %v2684_v57  ;;  %v429_v58 = vrot.slane %v427_v49, 1  ;;  %v217_v61 = vld [vmem:[%s2586_s19 + $0x58] sm:$0xf]  ;;  %v398_v62 = vsel %vm378_vm0, %v393_v47, %v397_v24  ;;  %v2698_v2 = vcombine.low %v2675_v50, %v214_v51 }
  0x21   : > { %4355 = vst [vmem:[#allocation11_spill] sm:$0xff] %v2688_v59  ;;  %4356 = vst [vmem:[#allocation12_spill] sm:$0xff] %v2692_v60  ;;  %v425_v63 = vor.u32 %v423_v48, %v421_v53  ;;  %v218_v5 = vld [vmem:[%s2586_s19 + $0x5c] sm:$0xf]  ;;  %v219_v9 = vld [vmem:[%s2586_s19 + $0x60] sm:$0xf]  ;;  %v2705_v19 = vcombine.low %v215_v55, %v216_v56  ;;  %v2714_v24 = vsel %vm378_vm0, %v417_v54, %v421_v53 }
  0x22   : > { %4357 = vst [vmem:[#allocation13_spill] sm:$0xff] %v2698_v2  ;;  %v435_v10 = vshll.u32 %v2688_v59, 16  ;;  %v439_v13 = vshrl.u32 %v2688_v59, 16  ;;  %v443_v14 = vshll.u32 %v2692_v60, 16  ;;  %v220_v20 = vld [vmem:[%s2586_s19 + $0x64] sm:$0xf]  ;;  %581 = vrot.lane.b32.xlu1 %v2684_v57, %s2534_s20  ;;  %v433_v30 = vor.u32 %v431_v1, %v429_v58 }
  0x23   : > { %4358 = vst [vmem:[#allocation14_spill] sm:$0xff] %v2705_v19  ;;  %v2711_v21 = vsel %vm378_vm0, %v425_v63, %v429_v58  ;;  %4360 = vst [vmem:[#allocation16_spill] sm:$0xff] %v2714_v24  ;;  %v451_v25 = vshll.u32 %v2698_v2, 16  ;;  %v455_v26 = vshrl.u32 %v2698_v2, 16  ;;  %577 = vrot.lane.b32.xlu0 %v398_v62, %s2534_s20  ;;  %v459_v31 = vshll.u32 %v2705_v19, 16 }
  0x24   : > { %4359 = vst [vmem:[#allocation15_spill] sm:$0xff] %v2711_v21  ;;  %v437_v27 = vrot.slane %v435_v10, 1  ;;  %v445_v29 = vrot.slane %v443_v14, 1  ;;  %v447_v35 = vshrl.u32 %v2692_v60, 16  ;;  %v2721_v37 = vcombine.low %v217_v61, %v218_v5  ;;  %v221_v41 = vld [vmem:[%s2586_s19 + $0x68] sm:$0xf] }
  0x25   : > { %v453_v34 = vrot.slane %v451_v25, 1  ;;  %v2723_v40 = vcombine.low %v219_v9, %v220_v20  ;;  %v2727_v42 = vld [vmem:[%s2586_s19 + $0x6c] sm:$0xf]  ;;  %v2730_v46 = vld [vmem:[%s2586_s19 + $0x70] sm:$0xf]  ;;  %v461_v51 = vrot.slane %v459_v31, 1 }
  0x26   : > { %4361 = vst [vmem:[#allocation17_spill] sm:$0xff] %v2721_v37  ;;  %v441_v43 = vor.u32 %v439_v13, %v437_v27  ;;  %v2733_v47 = vld [vmem:[%s2586_s19 + $0x74] sm:$0xf]  ;;  %v2736_v48 = vld [vmem:[%s2586_s19 + $0x78] sm:$0xf]  ;;  %585 = vrot.lane.b32.xlu1 %v2711_v21, %s2534_s20  ;;  %v467_v52 = vshll.u32 %v2721_v37, 16  ;;  %v2753_v61 = vcombine.low %v221_v41, %v2727_v42  ;;  %v2762_v1 = vsel %vm378_vm0, %v433_v30, %v437_v27 }
  0x27   : > { %4362 = vst [vmem:[#allocation18_spill] sm:$0xff] %v2723_v40  ;;  %v457_v49 = vor.u32 %v455_v26, %v453_v34  ;;  %v475_v53 = vshll.u32 %v2723_v40, 16  ;;  %v2743_v54 = vld [vmem:[%s2586_s19 + $0x7c] sm:$0xf]  ;;  %583 = vrot.lane.b32.xlu0 %v2714_v24, %s2534_s20  ;;  %v471_v56 = vshrl.u32 %v2721_v37, 16  ;;  %v463_v58 = vshrl.u32 %v2705_v19, 16 }
  0x28   : > { %v2748_v55 = vsel %vm378_vm0, %v441_v43, %v445_v29  ;;  %4364 = vst [vmem:[#allocation20_spill] sm:$0xff] %v2753_v61  ;;  %v2756_v62 = vld [vmem:[%s2586_s19 + $0x80] sm:$0xf]  ;;  %v2759_v63 = vld [vmem:[%s2586_s19 + $0x84] sm:$0xf]  ;;  %4365 = vst [vmem:[#allocation21_spill] sm:$0xff] %v2762_v1  ;;  %v449_v5 = vor.u32 %v447_v35, %v445_v29  ;;  %v2766_v10 = vcombine.low %v2730_v46, %v2733_v47 }
  0x29   : > { %4363 = vst [vmem:[#allocation19_spill] sm:$0xff] %v2748_v55  ;;  %v469_v9 = vrot.slane %v467_v52, 1  ;;  %v483_v13 = vshll.u32 %v2753_v61, 16  ;;  %v2771_v14 = vcombine.low %v2736_v48, %v2743_v54  ;;  %v2774_v20 = vld [vmem:[%s2586_s19 + $0x88] sm:$0xf]  ;;  %v2779_v25 = vsel %vm378_vm0, %v457_v49, %v461_v51 }
  0x2a   : > { %589 = vrot.lane.b32.xlu1 %v2748_v55, %s2534_s20  ;;  %4367 = vst [vmem:[#allocation23_spill] sm:$0xff] %v2779_v25  ;;  %v477_v26 = vrot.slane %v475_v53, 1  ;;  %v487_v27 = vshrl.u32 %v2753_v61, 16  ;;  %v2784_v29 = vcombine.low %v2756_v62, %v2759_v63  ;;  %v2787_v30 = vld [vmem:[%s2586_s19 + $0x8c] sm:$0xf]  ;;  %v491_v43 = vshll.u32 %v2766_v10, 16 }
  0x2b   : > { %4366 = vst [vmem:[#allocation22_spill] sm:$0xff] %v2771_v14  ;;  %v2790_v31 = vld [vmem:[%s2586_s19 + $0x90] sm:$0xf]  ;;  %587 = vrot.lane.b32.xlu0 %v2762_v1, %s2534_s20  ;;  %v473_v35 = vor.u32 %v471_v56, %v469_v9  ;;  %v485_v41 = vrot.slane %v483_v13, 1  ;;  %v499_v49 = vshll.u32 %v2771_v14, 16  ;;  %v2800_v53 = vsel %vm378_vm0, %v449_v5, %v453_v34 }
  0x2c   : > { %4368 = vst [vmem:[#allocation24_spill] sm:$0xff] %v2784_v29  ;;  %v2797_v52 = vld [vmem:[%s2586_s19 + $0x94] sm:$0xf]  ;;  %4369 = vst [vmem:[#allocation25_spill] sm:$0xff] %v2800_v53  ;;  %v465_v37 = vor.u32 %v463_v58, %v461_v51  ;;  %v479_v19 = vshrl.u32 %v2723_v40, 16  ;;  %v503_v56 = vshrl.u32 %v2771_v14, 16  ;;  %v2810_v11 = vcombine.low %v2774_v20, %v2787_v30 }
  0x2d   : > { %v2804_v45 = vld [vmem:[%s2586_s19 + $0x98] sm:$0xf]  ;;  %v501_v50 = vrot.slane %v499_v49, 1  ;;  %v507_v13 = vshll.u32 %v2784_v29, 16  ;;  %v2813_v34 = vld [vmem:[%s2586_s19 + $0x9c] sm:$0xf]  ;;  %v2819_v51 = vcombine.low %v2790_v31, %v2797_v52  ;;  %v2824_v58 = vsel %vm378_vm0, %v473_v35, %v477_v26 }
  0x2e   : > { %4370 = vst [vmem:[#allocation26_spill] sm:$0xff] %v2810_v11  ;;  %593 = vrot.lane.b32.xlu1 %v2779_v25, %s2534_s20  ;;  %4372 = vst [vmem:[#allocation28_spill] sm:$0xff] %v2824_v58  ;;  %v489_v5 = vor.u32 %v487_v27, %v485_v41  ;;  %v493_v49 = vrot.slane %v491_v43, 1  ;;  %v515_v2 = vshll.u32 %v2810_v11, 16  ;;  %v2828_v55 = vld [vmem:[%s2586_s19 + $0xa8] sm:$0xf]  ;;  %v2834_v25 = vsel %vm378_vm0, %v465_v37, %v469_v9 }
  0x2f   : > { %4371 = vst [vmem:[#allocation27_spill] sm:$0xff] %v2819_v51  ;;  %591 = vrot.lane.b32.xlu0 %v2800_v53, %s2534_s20  ;;  %4373 = vst [vmem:[#allocation29_spill] sm:$0xff] %v2828_v55  ;;  %v2831_v60 = vld [vmem:[%s2586_s19 + $0xac] sm:$0xf]  ;;  %v481_v59 = vor.u32 %v479_v19, %v477_v26  ;;  %v495_v1 = vshrl.u32 %v2766_v10, 16  ;;  %v2845_v27 = vcombine.low %v2804_v45, %v2813_v34  ;;  %v509_v43 = vrot.slane %v507_v13, 1 }
  0x30   : > { %4374 = vst [vmem:[#allocation30_spill] sm:$0xff] %v2831_v60  ;;  %4375 = vst [vmem:[#allocation31_spill] sm:$0xff] %v2834_v25  ;;  %v2838_v21 = vld [vmem:[%s2586_s19 + $0xa0] sm:$0xf]  ;;  %v2841_v53 = vld [vmem:[%s2586_s19 + $0xa4] sm:$0xf]  ;;  %v505_v35 = vor.u32 %v503_v56, %v501_v50  ;;  %v2857_v26 = vcombine.low %v2828_v55, %v2831_v60  ;;  %v2862_v56 = vsel %vm378_vm0, %v489_v5, %v493_v49 }
  0x31   : > { %4376 = vst [vmem:[#allocation32_spill] sm:$0xff] %v2841_v53  ;;  %4377 = vst [vmem:[#allocation33_spill] sm:$0xff] %v2845_v27  ;;  %v2848_v24 = vld [vmem:[%s2586_s19 + $0xb0] sm:$0xf]  ;;  %v519_v19 = vshrl.u32 %v2810_v11, 16  ;;  %v523_v37 = vshll.u32 %v2819_v51, 16  ;;  %v2866_v57 = vcombine.low %v2838_v21, %v2841_v53  ;;  %v2870_v11 = vsel %vm378_vm0, %v481_v59, %v485_v41 }
  0x32   : > { %4378 = vst [vmem:[#allocation34_spill] sm:$0xff] %v2848_v24  ;;  %597 = vrot.lane.b32.xlu1 %v2824_v58, %s2534_s20  ;;  %v240_v9 = vld [vmem:[%s2586_s19 + $0xb4] sm:$0xf]  ;;  %4379 = vst [vmem:[#allocation35_spill] sm:$0xff] %v2857_v26  ;;  %v517_v13 = vrot.slane %v515_v2, 1  ;;  %v531_v58 = vshll.u32 %v2845_v27, 16  ;;  %v497_v14 = vor.u32 %v495_v1, %v493_v49 }
  0x33   : > { %595 = vrot.lane.b32.xlu0 %v2834_v25, %s2534_s20  ;;  %4380 = vst [vmem:[#allocation36_spill] sm:$0xff] %v2862_v56  ;;  %4381 = vst [vmem:[#allocation37_spill] sm:$0xff] %v2866_v57  ;;  %v511_v60 = vshrl.u32 %v2784_v29, 16  ;;  %v241_v55 = vld [vmem:[%s2586_s19 + $0xb8] sm:$0xf]  ;;  %v2876_v25 = vsel %vm378_vm0, %v505_v35, %v509_v43  ;;  %v527_v5 = vshrl.u32 %v2819_v51, 16  ;;  %v2883_v59 = vcombine.low %v2848_v24, %v240_v9 }
  0x34   : > { %4382 = vst [vmem:[#allocation38_spill] sm:$0xff] %v2870_v11  ;;  %v242_v39 = vld [vmem:[%s2586_s19 + $0xbc] sm:$0xf]  ;;  %v525_v2 = vrot.slane %v523_v37, 1  ;;  %v535_v53 = vshrl.u32 %v2845_v27, 16  ;;  %v547_v1 = vshll.u32 %v2857_v26, 16  ;;  %v521_v41 = vor.u32 %v519_v19, %v517_v13 }
  0x35   : > { %4383 = vst [vmem:[#allocation39_spill] sm:$0xff] %v2883_v59  ;;  %v533_v49 = vrot.slane %v531_v58, 1  ;;  %v539_v35 = vshll.u32 %v2866_v57, 16  ;;  %v2889_v51 = vcombine.low %v241_v55, %v242_v39  ;;  %v513_v37 = vor.u32 %v511_v60, %v509_v43 }
  0x36   : > { %601 = vrot.lane.b32.xlu1 %v2862_v56, %s2534_s20  ;;  %v2892_v56 = vsel %vm378_vm0, %v497_v14, %v501_v50  ;;  %v529_v9 = vor.u32 %v527_v5, %v525_v2  ;;  %v549_v24 = vrot.slane %v547_v1, 1  ;;  %v551_v27 = vshrl.u32 %v2857_v26, 16 }
  0x37   : > { %599 = vrot.lane.b32.xlu0 %v2870_v11, %s2534_s20  ;;  %4384 = vst [vmem:[#allocation40_spill] sm:$0xff] %v2889_v51  ;;  %4385 = vst [vmem:[#allocation41_spill] sm:$0xff] %v2892_v56  ;;  %v555_v29 = vshll.u32 %v2883_v59, 16  ;;  %v2462_v11 = vld [vmem:[%s2586_s19 + $0xc0] ss:$0 sps:$4 sm:$0x11]   ;;  %v2902_v39 = vsel %vm378_vm0, %v521_v41, %v525_v2  ;;  %v537_v55 = vor.u32 %v535_v53, %v533_v49 }
  0x38   : > { %v541_v50 = vrot.slane %v539_v35, 1  ;;  %v563_v60 = vshll.u32 %v2889_v51, 16  ;;  %v2906_v14 = vsel %vm378_vm0, %v513_v37, %v517_v13  ;;  %v543_v58 = vshrl.u32 %v2866_v57, 16 }
  0x39   : > { %v2912_v43 = vsel %vm378_vm0, %v529_v9, %v533_v49  ;;  %v553_v19 = vor.u32 %v551_v27, %v549_v24  ;;  %v557_v5 = vrot.slane %v555_v29, 1  ;;  %v571_v2 = vshll.u32 %v2462_v11, 16  ;;  %v244_v49 = vld [vmem:[%s2586_s19] sm:$0xe] }
  0x3a   : > { %605 = vrot.lane.b32.xlu1 %v2876_v25, %s2534_s20  ;;  %v2917_v53 = vsel %vm378_vm0, %v537_v55, %v541_v50  ;;  %v565_v1 = vrot.slane %v563_v60, 1  ;;  %v567_v13 = vshrl.u32 %v2889_v51, 16  ;;  %v808_v41 = vshll.u32 %v2627_v18, 16 }
  0x3b   : > { %603 = vrot.lane.b32.xlu0 %v2892_v56, %s2534_s20  ;;  %4386 = vst [vmem:[#allocation42_spill] sm:$0xff] %v2917_v53  ;;  %v545_v35 = vor.u32 %v543_v58, %v541_v50  ;;  %v559_v37 = vshrl.u32 %v2883_v59, 16  ;;  %v806_v27 = vshrl.u32 %v2627_v18, 16  ;;  %v813_v11 = vshll.u32 %v2603_v7, 16  ;;  %v249_v59 = vld [vmem:[%s2586_s19 + $0xc] sm:$0xe] }
  0x3c   : > { %v2928_v29 = vsel %vm378_vm0, %v553_v19, %v557_v5  ;;  %v573_v9 = vrot.slane %v571_v2, 1  ;;  %v810_v55 = vrot.slane %v808_v41, 1  ;;  %v2932_v50 = vor.u32 %v567_v13, %v565_v1 }
  0x3d   : > { %4387 = vst [vmem:[#allocation43_spill] sm:$0xff] %v2928_v29  ;;  %v815_v60 = vrot.slane %v813_v11, 1  ;;  %v2253_v58 = vcombine.low %v244_v49, %v2601_v6  ;;  %v2937_v56 = vcombine.low %v2594_v3, %v2614_v12  ;;  %v817_v51 = vshrl.u32 %v2603_v7, 16 }
  0x3e   : > { %609 = vrot.lane.b32.xlu1 %v2902_v39, %s2534_s20  ;;  %4388 = vst [vmem:[#allocation44_spill] sm:$0xff] %v2932_v50  ;;  %v2942_v19 = vsel %vm378_vm0, %v545_v35, %v549_v24  ;;  %v561_v2 = vor.u32 %v559_v37, %v557_v5  ;;  %v628_v41 = vrot.slane %v2618_v15, 1  ;;  %v811_v11 = vor.u32 %v810_v55, %v806_v27 }
  0x3f   : > { %607 = vrot.lane.b32.xlu0 %v2906_v14, %s2534_s20  ;;  %v630_v26 = vrot.slane %v2597_v4, 1  ;;  %v632_v13 = vrot.slane %v2606_v8, 1  ;;  %v821_v6 = vshll.u32 %v2937_v56, 16  ;;  %v2951_v12 = vrot.slane %v2634_v22, 1 }
  0x40   : > { %v2954_v24 = vsel %vm378_vm0, %v811_v11, %v815_v60  ;;  %v2279_v5 = vcombine.low %v249_v59, %v2589_v0  ;;  %v1053_v35 = vrot.slane %v2603_v7, 1  ;;  %v627_v37 = vrot.slane %v2253_v58, 1 }
  0x41   : > { %v823_v49 = vrot.slane %v821_v6, 1  ;;  %v2963_v27 = vsel %vm378_vm0, %v561_v2, %v565_v1  ;;  %v636_v11 = vrot.slane %v2651_v33, 1  ;;  %v635_v58 = vsel %vm626_vm1, %v632_v13, %v2951_v12 }
  0x42   : > { %613 = vrot.lane.b32.xlu1 %v2917_v53, %s2534_s20  ;;  %v819_v53 = vor.u32 %v817_v51, %v815_v60  ;;  %v574_v51 = vsel %vm378_vm0, %v2932_v50, %v573_v9  ;;  %4389 = vst [vmem:[#allocation45_spill] sm:$0xff] %v2963_v27  ;;  %v1052_v55 = vrot.slane %v2279_v5, 1  ;;  %v1055_v60 = vrot.slane %v2937_v56, 1 }
  0x43   : > { %611 = vrot.lane.b32.xlu0 %v2912_v43, %s2534_s20  ;;  %v631_v9 = vsel %vm626_vm1, %v628_v41, %v630_v26  ;;  %v629_v6 = vsel %vm626_vm1, %v627_v37, %v628_v41  ;;  %v2987_v5 = vcombine.low %v2759_v63, %v2774_v20  ;;  %v2997_v0 = vcombine.low %v2787_v30, %v2790_v31 }
  0x44   : > { %v2969_v59 = vsel %vm378_vm0, %v819_v53, %v823_v49  ;;  %v2976_v1 = vsel %vm626_vm1, %v1052_v55, %v1053_v35  ;;  %v2979_v2 = vsel %vm626_vm1, %v1053_v35, %v1055_v60  ;;  %v633_v53 = vsel %vm626_vm1, %v630_v26, %v632_v13 }
  0x45   : > { %v652_v55 = vrot.slane %v2753_v61, 1  ;;  %v825_v35 = vshrl.u32 %v2937_v56, 16  ;;  %v3001_v41 = vcombine.low %v2637_v23, %v2643_v28  ;;  %v925_v63 = vshll.u32 %v2987_v5, 16 }
  0x46   : > { %617 = vrot.lane.b32.xlu1 %v2928_v29, %s2534_s20  ;;  %v933_v30 = vshll.u32 %v2997_v0, 16 }
  0x47   : > { %615 = vrot.lane.b32.xlu0 %v2942_v19, %s2534_s20  ;;  %v827_v13 = vor.u32 %v825_v35, %v823_v49  ;;  %v3012_v23 = vrot.slane %v925_v63, 1  ;;  %v837_v37 = vshll.u32 %v3001_v41, 16  ;;  %v1059_v49 = vrot.slane %v3001_v41, 1 }
  0x48   : > { %v935_v50 = vrot.slane %v933_v30, 1  ;;  %v3021_v35 = vcombine.low %v2727_v42, %v2730_v46  ;;  %v3030_v30 = vcombine.low %v2733_v47, %v2736_v48  ;;  %v4392_v46 = vrot.slane %v2655_v36, 1 }
  0x49   : > { %v3048_v47 = vsel %vm626_vm1, %v2951_v12, %v636_v11 }
  0x4a   : > { %621 = vrot.lane.b32.xlu1 %v574_v51, %s2534_s20  ;;  %v2991_v51 = vcombine.low %v2621_v16, %v2624_v17  ;;  %v929_v16 = vshrl.u32 %v2987_v5, 16  ;;  %4390 = vst [vmem:[#allocation46_spill] sm:$0xff] %v3021_v35  ;;  %v839_v17 = vrot.slane %v837_v37, 1  ;;  %v3080_v37 = vcombine.low %v2647_v32, %v2659_v38 }
  0x4b   : > { %619 = vrot.lane.b32.xlu0 %v2963_v27, %s2534_s20  ;;  %v4391_v27 = vrot.slane %v2987_v5, 1  ;;  %v3094_v38 = vcombine.low %v2813_v34, %v2838_v21 }
  0x4c   : > { %v829_v20 = vshll.u32 %v2991_v51, 16  ;;  %v833_v31 = vshrl.u32 %v2991_v51, 16  ;;  %v1057_v4 = vrot.slane %v2991_v51, 1  ;;  %v931_v63 = vor.u32 %v929_v16, %v3012_v23 }
  0x4d   : > { %v3044_v16 = vsel %vm626_vm1, %v636_v11, %v4392_v46  ;;  %v3070_v11 = vcombine.low %v2797_v52, %v2804_v45  ;;  %v909_v45 = vshll.u32 %v3030_v30, 16  ;;  %v845_v32 = vshll.u32 %v3080_v37, 16 }
  0x4e   : > { %678 = vrot.lane.b32.xlu1 %v631_v9, %s2535_s21  ;;  %v831_v28 = vrot.slane %v829_v20, 1  ;;  %v1083_v9 = vrot.slane %v2997_v0, 1  ;;  %v3033_v26 = vsel %vm626_vm1, %v1055_v60, %v1057_v4  ;;  %v3051_v48 = vsel %vm378_vm0, %v931_v63, %v935_v50 }
  0x4f   : > { %676 = vrot.lane.b32.xlu0 %v629_v6, %s2535_s21  ;;  %v3054_v60 = vsel %vm626_vm1, %v1057_v4, %v1059_v49  ;;  %v941_v52 = vshll.u32 %v3070_v11, 16  ;;  %v849_v15 = vshrl.u32 %v3080_v37, 16  ;;  %v847_v61 = vrot.slane %v845_v32, 1 }
  0x50   : > { %v3024_v6 = vsel %vm378_vm0, %v827_v13, %v831_v28  ;;  %v835_v20 = vor.u32 %v833_v31, %v831_v28  ;;  %v3038_v42 = vsel %vm626_vm1, %v4391_v27, %v1083_v9  ;;  %v4393_v27 = vrot.slane %v2766_v10, 1 }
  0x51   : > { %v4395_v31 = vrot.slane %v2723_v40, 1  ;;  %v901_v28 = vshll.u32 %v3021_v35, 16  ;;  %v943_v46 = vrot.slane %v941_v52, 1  ;;  %v949_v40 = vshll.u32 %v3094_v38, 16 }
  0x52   : > { %682 = vrot.lane.b32.xlu1 %v635_v58, %s2535_s21  ;;  %v3059_v58 = vsel %vm626_vm1, %v652_v55, %v4393_v27  ;;  %v3066_v13 = vsel %vm378_vm0, %v835_v20, %v839_v17  ;;  %v945_v20 = vshrl.u32 %v3070_v11, 16  ;;  %v851_v32 = vor.u32 %v849_v15, %v847_v61 }
  0x53   : > { %680 = vrot.lane.b32.xlu0 %v633_v53, %s2535_s21  ;;  %4394 = vst [vmem:[#allocation47_spill] sm:$0xff] %v3059_v58  ;;  %v3063_v53 = vcombine.low %v2743_v54, %v2756_v62  ;;  %v3075_v4 = vsel %vm626_vm1, %v4395_v31, %v652_v55  ;;  %v937_v54 = vshrl.u32 %v2997_v0, 16  ;;  %v905_v62 = vshrl.u32 %v3021_v35, 16  ;;  %v4397_v31 = vld [vmem:[#allocation7_spill] sm:$0xff] }
  0x54   : > { %4396 = vst [vmem:[#allocation48_spill] sm:$0xff] %v3075_v4  ;;  %v841_v55 = vshrl.u32 %v3001_v41, 16  ;;  %v3099_v29 = vcombine.low %v4397_v31, %v2666_v44  ;;  %v3107_v21 = vrot.slane %v901_v28, 1 }
  0x55   : > { %v939_v63 = vor.u32 %v937_v54, %v935_v50  ;;  %v1085_v50 = vrot.slane %v3070_v11, 1  ;;  %v1061_v54 = vrot.slane %v3080_v37, 1 }
  0x56   : > { %686 = vrot.lane.b32.xlu1 %v3044_v16, %s2535_s21  ;;  %v843_v27 = vor.u32 %v841_v55, %v839_v17  ;;  %4398 = vst [vmem:[#allocation7_spill] sm:$0xff] %v3107_v21  ;;  %v947_v17 = vor.u32 %v945_v20, %v943_v46  ;;  %v853_v44 = vshll.u32 %v3099_v29, 16  ;;  %v3118_v55 = vrot.slane %v949_v40, 1 }
  0x57   : > { %684 = vrot.lane.b32.xlu0 %v3048_v47, %s2535_s21  ;;  %v3110_v34 = vsel %vm378_vm0, %v939_v63, %v943_v46  ;;  %v3121_v31 = vsel %vm626_vm1, %v1083_v9, %v1085_v50  ;;  %v3126_v63 = vsel %vm626_vm1, %v1059_v49, %v1061_v54  ;;  %v4331_v20 = vrot.slane %v3094_v38, 1 }
  0x58   : > { %v3116_v52 = vsel %vm378_vm0, %v843_v27, %v847_v61  ;;  %v3123_v28 = vrot.slane %v853_v44, 1  ;;  %v4330_v46 = vrot.slane %v3099_v29, 1  ;;  %v907_v9 = vor.u32 %v905_v62, %v3107_v21 }
  0x59   : > { %v3143_v40 = vsel %vm626_vm1, %v1085_v50, %v4331_v20  ;;  %v911_v49 = vrot.slane %v909_v45, 1  ;;  %v913_v27 = vshrl.u32 %v3030_v30, 16  ;;  %v4329_v62 = vrot.slane %v3021_v35, 1 }
  0x5a   : > { %702 = vrot.lane.b32.xlu1 %v3059_v58, %s2535_s21  ;;  %v3132_v58 = vsel %vm378_vm0, %v947_v17, %v3118_v55  ;;  %v3138_v15 = vsel %vm378_vm0, %v851_v32, %v3123_v28  ;;  %v3148_v61 = vsel %vm626_vm1, %v1061_v54, %v4330_v46  ;;  %v917_v17 = vshll.u32 %v3063_v53, 16  ;;  %v4422_v46 = vld [vmem:[#allocation11_spill] sm:$0xff] }
  0x5b   : > { %700 = vrot.lane.b32.xlu0 %v3075_v4, %s2535_s21  ;;  %v912_v50 = vsel %vm378_vm0, %v907_v9, %v911_v49  ;;  %v915_v54 = vor.u32 %v913_v27, %v911_v49  ;;  %v1077_v45 = vrot.slane %v3030_v30, 1  ;;  %v1079_v32 = vrot.slane %v3063_v53, 1  ;;  %v254_v9 = vld [vmem:[%s2586_s19 + $0x18] sm:$0xe]  ;;  %v4400_v49 = vld [vmem:[#allocation24_spill] sm:$0xff] }
  0x5c   : > { %v3160_v44 = vrot.slane %v917_v17, 1  ;;  %v2284_v17 = vcombine.low %v254_v9, %v2594_v3  ;;  %v4402_v3 = vld [vmem:[#allocation16_spill] sm:$0xff] }
  0x5e   : > { %778 = vrot.lane.b32.xlu1 %v3021_v35, %s2536_s22 }
  0x5f   : > { %754 = vrot.lane.b32.xlu0 %v2627_v18, %s2536_s22  ;;  %v920_v18 = vsel %vm378_vm0, %v915_v54, %v3160_v44 }
  0x62   : > { %780 = vrot.lane.b32.xlu1 %v3030_v30, %s2536_s22  ;;  %v4399_v30 = vld [vmem:[#allocation22_spill] sm:$0xff] }
  0x63   : > { %756 = vrot.lane.b32.xlu0 %v2603_v7, %s2536_s22  ;;  %v1078_v7 = vsel %vm626_vm1, %v4329_v62, %v1077_v45  ;;  %v656_v54 = vrot.slane %v4399_v30, 1 }
  0x66   : > { %1025 = vrot.lane.b32.xlu1 %v912_v50, %s2537_s23  ;;  %v4401_v50 = vld [vmem:[#allocation10_spill] sm:$0xff] }
  0x67   : > { %1001 = vrot.lane.b32.xlu0 %v2954_v24, %s2537_s23  ;;  %v1080_v24 = vsel %vm626_vm1, %v1077_v45, %v1079_v32  ;;  %v1289_v45 = vrot.slane %v2284_v17, 1 }
  0x6a   : > { %1027 = vrot.lane.b32.xlu1 %v920_v18, %s2537_s23  ;;  %v658_v18 = vrot.slane %v4400_v49, 1 }
  0x6b   : > { %1003 = vrot.lane.b32.xlu0 %v2969_v59, %s2537_s23  ;;  %v2480_v59 = vld [vmem:[%s4269_s1] sm:$0xff]  }
  0x6c   : > { %2342 = vmatprep.subr.bf16.mxu0 %v2480_v59  ;;  %2396 = vmatprep.subr.bf16.mxu1 %v2480_v59 }
  0x6d   : > { %2343 = vmatpush3.bf16.msra.mxu0 %v2480_v59  ;;  %2399 = vmatpush3.bf16.msra.mxu1 %v2480_v59 }
  0x6e   : > { %1125 = vrot.lane.b32.xlu1 %v1078_v7, %s2538_s24  ;;  %v659_v7 = vsel %vm626_vm1, %v656_v54, %v658_v18 }
  0x6f   : > { %1101 = vrot.lane.b32.xlu0 %v2976_v1, %s2538_s24  ;;  %v2481_v1 = vld [vmem:[%s4269_s1 + $0x8] sm:$0xff]  }
  0x70   : > { %2344 = vmatprep.subr.bf16.mxu0 %v2481_v1  ;;  %2397 = vmatprep.subr.bf16.mxu1 %v2481_v1 }
  0x71   : > { %2345 = vmatpush3.bf16.msra.mxu0 %v2481_v1  ;;  %2400 = vmatpush3.bf16.msra.mxu1 %v2481_v1 }
  0x72   : > { %1127 = vrot.lane.b32.xlu1 %v1080_v24, %s2538_s24  ;;  %v4403_v24 = vld [vmem:[#allocation26_spill] sm:$0xff] }
  0x73   : > { %1103 = vrot.lane.b32.xlu0 %v2979_v2, %s2538_s24  ;;  %v2482_v2 = vld [vmem:[%s4269_s1 + $0x10] ss:$0 sps:$4 sm:$0x33]   ;;  %v660_v59 = vrot.slane %v4403_v24, 1 }
  0x74   : > { %2402 = vmatprep.subr.msk.bf16.mxu0 %vm1815_vm2, %v2482_v2  ;;  %v1817_v27 = vsel %vm1815_vm2, %v2482_v2, 0  ;;  %2403 = vmatprep.subr.msk.bf16.mxu1 %vm1815_vm2, %v2482_v2 }
  0x75   : > { %2347 = vmatpush3.bf16.msra.mxu0 %v1817_v27  ;;  %2401 = vmatpush3.bf16.msra.mxu1 %v1817_v27  ;;  %v3221_v1 = vsel %vm626_vm1, %v658_v18, %v660_v59 }
  0x76   : > { %1182 = vrot.lane.b32.xlu1 %v4399_v30, %s2539_s29 }
  0x77   : > { %1158 = vrot.lane.b32.xlu0 %v2606_v8, %s2539_s29 }
  0x7a   : > { %1184 = vrot.lane.b32.xlu1 %v4400_v49, %s2539_s29 }
  0x7b   : > { %1160 = vrot.lane.b32.xlu0 %v2634_v22, %s2539_s29 }
  0x7e   : > { %1262 = vrot.lane.b32.xlu1 %v2876_v25, %s2540_s5  ;;  %v1290_v25 = vsel %vm626_vm1, %v1289_v45, %v2951_v12  ;;  %v921_v12 = vshrl.u32 %v3063_v53, 16 }
  0x7f   : > { %1238 = vrot.lane.b32.xlu0 %v4401_v50, %s2540_s5 }
  0x82   : > { %1264 = vrot.lane.b32.xlu1 %v2906_v14, %s2540_s5  ;;  %v4404_v14 = vrot.slane %v2766_v10, 1 }
  0x83   : > { %1240 = vrot.lane.b32.xlu0 %v4402_v3, %s2540_s5 }
  0x84   : > { %v3230_v9 = vsel %vm626_vm1, %v4404_v14, %v656_v54 }
  0x85   : > { %4405 = vst [vmem:[#allocation22_spill] sm:$0xff] %v3230_v9 }
  0x86   : > { %1323 = vrot.lane.b32.xlu1 %v659_v7, %s2541_s6 }
  0x87   : > { %1299 = vrot.lane.b32.xlu0 %v1290_v25, %s2541_s6  ;;  %v4416_v25 = vld [vmem:[#allocation15_spill] sm:$0xff] }
  0x8a   : > { %1325 = vrot.lane.b32.xlu1 %v3221_v1, %s2541_s6 }
  0x8b   : > { %1301 = vrot.lane.b32.xlu0 %v3048_v47, %s2541_s6  ;;  %v923_v47 = vor.u32 %v921_v12, %v3160_v44 }
  0x8d   : > { %v928_v54 = vsel %vm378_vm0, %v923_v47, %v3012_v23 }
  0x8e   : > { %706 = vrot.lane.b32.xlu1 %v659_v7, %s2535_s21 }
  0x8f   : > { %704 = vrot.lane.b32.xlu0 %v3230_v9, %s2535_s21  ;;  %v666_v9 = vrot.slane %v2866_v57, 1 }
  0x90   : > { %v3236_v2 = vpop.permute.xlu1 %579 }
  0x91   : > { %v3238_v27 = vpop.permute.xlu0 %575 }
  0x92   : > { %782 = vrot.lane.b32.xlu1 %v3063_v53, %s2536_s22 }
  0x93   : > { %758 = vrot.lane.b32.xlu0 %v2937_v56, %s2536_s22 }
  0x94   : > { %v3245_v17 = vpop.permute.xlu1 %581 }
  0x95   : > { %v3247_v50 = vpop.permute.xlu0 %577 }
  0x96   : > { %784 = vrot.lane.b32.xlu1 %v2987_v5, %s2536_s22 }
  0x97   : > { %760 = vrot.lane.b32.xlu0 %v2991_v51, %s2536_s22  ;;  %v4409_v51 = vrot.slane %v2987_v5, 1 }
  0x98   : > { %v3255_v18 = vpop.permute.xlu1 %585 }
  0x99   : > { %4406 = vst [vmem:[#allocation24_spill] sm:$0xff] %v3255_v18  ;;  %v3257_v45 = vpop.permute.xlu0 %583  ;;  %v1082_v23 = vsel %vm626_vm1, %v1079_v32, %v4409_v51  ;;  %v4414_v32 = vld [vmem:[#allocation27_spill] sm:$0xff] }
  0x9a   : > { %1029 = vrot.lane.b32.xlu1 %v928_v54, %s2537_s23  ;;  %v662_v14 = vrot.slane %v4414_v32, 1  ;;  %v4419_v54 = vld [vmem:[#allocation21_spill] sm:$0xff] }
  0x9b   : > { %1005 = vrot.lane.b32.xlu0 %v3024_v6, %s2537_s23 }
  0x9c   : > { %v3262_v56 = vpop.permute.xlu1 %589  ;;  %v663_v51 = vsel %vm626_vm1, %v660_v59, %v662_v14  ;;  %v4425_v59 = vrot.slane %v2655_v36, 1 }
  0x9d   : > { %4407 = vst [vmem:[#allocation10_spill] sm:$0xff] %v3262_v56  ;;  %v3264_v44 = vpop.permute.xlu0 %587  ;;  %v4431_v56 = vld [vmem:[#allocation25_spill] sm:$0xff] }
  0x9e   : > { %4408 = vst [vmem:[#allocation16_spill] sm:$0xff] %v3264_v44  ;;  %1031 = vrot.lane.b32.xlu1 %v3051_v48, %s2537_s23  ;;  %v4432_v44 = vld [vmem:[#allocation35_spill] sm:$0xff] }
  0x9f   : > { %1007 = vrot.lane.b32.xlu0 %v3066_v13, %s2537_s23 }
  0xa0   : > { %v3275_v3 = vpop.permute.xlu1 %593 }
  0xa1   : > { %4410 = vst [vmem:[#allocation49_spill] sm:$0xff] %v3275_v3  ;;  %v3277_v7 = vpop.permute.xlu0 %591 }
  0xa2   : > { %4411 = vst [vmem:[#allocation50_spill] sm:$0xff] %v3277_v7  ;;  %1129 = vrot.lane.b32.xlu1 %v1082_v23, %s2538_s24  ;;  %v4420_v23 = vld [vmem:[#allocation33_spill] sm:$0xff]  ;;  %v4429_v7 = vld [vmem:[#allocation42_spill] sm:$0xff] }
  0xa3   : > { %1105 = vrot.lane.b32.xlu0 %v3033_v26, %s2538_s24  ;;  %v664_v62 = vrot.slane %v4420_v23, 1 }
  0xa4   : > { %v3282_v6 = vpop.permute.xlu1 %597 }
  0xa5   : > { %4412 = vst [vmem:[#allocation51_spill] sm:$0xff] %v3282_v6  ;;  %v3284_v48 = vpop.permute.xlu0 %595 }
  0xa6   : > { %4413 = vst [vmem:[#allocation52_spill] sm:$0xff] %v3284_v48  ;;  %1131 = vrot.lane.b32.xlu1 %v3038_v42, %s2538_s24 }
  0xa7   : > { %1107 = vrot.lane.b32.xlu0 %v3054_v60, %s2538_s24 }
  0xa8   : > { %v3290_v5 = vpop.permute.xlu1 %601 }
  0xa9   : > { %v3292_v53 = vpop.permute.xlu0 %599 }
  0xaa   : > { %1186 = vrot.lane.b32.xlu1 %v4403_v24, %s2539_s29 }
  0xab   : > { %1162 = vrot.lane.b32.xlu0 %v2651_v33, %s2539_s29  ;;  %v4439_v33 = vld [vmem:[#allocation8_spill] sm:$0xff] }
  0xac   : > { %v3298_v26 = vpop.permute.xlu1 %605 }
  0xad   : > { %v3300_v13 = vpop.permute.xlu0 %603 }
  0xae   : > { %1188 = vrot.lane.b32.xlu1 %v4414_v32, %s2539_s29  ;;  %v4341_v32 = vrot.slane %v4432_v44, 1 }
  0xaf   : > { %1164 = vrot.lane.b32.xlu0 %v2655_v36, %s2539_s29  ;;  %v667_v36 = vsel %vm626_vm1, %v664_v62, %v666_v9 }
  0xb0   : > { %v3306_v42 = vpop.permute.xlu1 %609 }
  0xb1   : > { %4415 = vst [vmem:[#allocation53_spill] sm:$0xff] %v3306_v42  ;;  %v3308_v60 = vpop.permute.xlu0 %607  ;;  %v4438_v42 = vld [vmem:[#allocation9_spill] sm:$0xff] }
  0xb2   : > { %1266 = vrot.lane.b32.xlu1 %v2902_v39, %s2540_s5  ;;  %v3458_v18 = vcombine.low %v4439_v33, %v4438_v42 }
  0xb3   : > { %1242 = vrot.lane.b32.xlu0 %v4416_v25, %s2540_s5  ;;  %v640_v25 = vrot.slane %v4422_v46, 1 }
  0xb4   : > { %v3315_v12 = vpop.permute.xlu1 %613 }
  0xb5   : > { %4417 = vst [vmem:[#allocation15_spill] sm:$0xff] %v3315_v12  ;;  %v3317_v47 = vpop.permute.xlu0 %611 }
  0xb6   : > { %4418 = vst [vmem:[#allocation54_spill] sm:$0xff] %v3317_v47  ;;  %1268 = vrot.lane.b32.xlu1 %v2912_v43, %s2540_s5  ;;  %v3334_v43 = vsel %vm626_vm1, %v662_v14, %v664_v62 }
  0xb7   : > { %1244 = vrot.lane.b32.xlu0 %v4419_v54, %s2540_s5  ;;  %v3341_v54 = vsel %vm626_vm1, %v4425_v59, %v640_v25 }
  0xb8   : > { %v3325_v39 = vpop.permute.xlu1 %617 }
  0xb9   : > { %4421 = vst [vmem:[#allocation21_spill] sm:$0xff] %v3325_v39  ;;  %v3328_v20 = vpop.permute.xlu0 %615 }
  0xba   : > { %4423 = vst [vmem:[#allocation55_spill] sm:$0xff] %v3328_v20  ;;  %1327 = vrot.lane.b32.xlu1 %v663_v51, %s2541_s6  ;;  %v4430_v20 = vld [vmem:[#allocation19_spill] sm:$0xff] }
  0xbb   : > { %1303 = vrot.lane.b32.xlu0 %v3044_v16, %s2541_s6 }
  0xbc   : > { %v3336_v6 = vpop.permute.xlu1 %621 }
  0xbd   : > { %4424 = vst [vmem:[#allocation56_spill] sm:$0xff] %v3336_v6  ;;  %v3343_v48 = vpop.permute.xlu0 %619 }
  0xbe   : > { %4426 = vst [vmem:[#allocation57_spill] sm:$0xff] %v3343_v48  ;;  %1329 = vrot.lane.b32.xlu1 %v3334_v43, %s2541_s6 }
  0xbf   : > { %1305 = vrot.lane.b32.xlu0 %v3341_v54, %s2541_s6 }
  0xc0   : > { %v3349_v3 = vpop.permute.xlu1 %678 }
  0xc1   : > { %v3351_v16 = vpop.permute.xlu0 %676 }
  0xc2   : > { %710 = vrot.lane.b32.xlu1 %v663_v51, %s2535_s21 }
  0xc3   : > { %708 = vrot.lane.b32.xlu0 %v3221_v1, %s2535_s21 }
  0xc4   : > { %v3356_v14 = vpop.permute.xlu1 %682 }
  0xc5   : > { %v3358_v59 = vpop.permute.xlu0 %680 }
  0xc6   : > { %786 = vrot.lane.b32.xlu1 %v2997_v0, %s2536_s22 }
  0xc7   : > { %762 = vrot.lane.b32.xlu0 %v3001_v41, %s2536_s22 }
  0xc8   : > { %v3364_v48 = vpop.permute.xlu1 %686 }
  0xc9   : > { %4427 = vst [vmem:[#allocation58_spill] sm:$0xff] %v3364_v48  ;;  %v3366_v6 = vpop.permute.xlu0 %684 }
  0xca   : > { %788 = vrot.lane.b32.xlu1 %v3070_v11, %s2536_s22 }
  0xcb   : > { %764 = vrot.lane.b32.xlu0 %v3080_v37, %s2536_s22 }
  0xcc   : > { %v3372_v1 = vpop.permute.xlu1 %702 }
  0xcd   : > { %v701_v51 = vpop.permute.xlu0 %700 }
  0xce   : > { %1033 = vrot.lane.b32.xlu1 %v3110_v34, %s2537_s23 }
  0xcf   : > { %1009 = vrot.lane.b32.xlu0 %v3116_v52, %s2537_s23 }
  0xd0   : > { %v779_v0 = vpop.permute.xlu1 %778 }
  0xd1   : > { %v755_v41 = vpop.permute.xlu0 %754 }
  0xd2   : > { %1035 = vrot.lane.b32.xlu1 %v3132_v58, %s2537_s23 }
  0xd3   : > { %1011 = vrot.lane.b32.xlu0 %v3138_v15, %s2537_s23 }
  0xd4   : > { %v3382_v11 = vpop.permute.xlu1 %780 }
  0xd5   : > { %v3384_v37 = vpop.permute.xlu0 %756 }
  0xd6   : > { %1133 = vrot.lane.b32.xlu1 %v3121_v31, %s2538_s24 }
  0xd7   : > { %1109 = vrot.lane.b32.xlu0 %v3126_v63, %s2538_s24 }
  0xd8   : > { %v1026_v34 = vpop.permute.xlu1 %1025 }
  0xd9   : > { %v1002_v52 = vpop.permute.xlu0 %1001 }
  0xda   : > { %1135 = vrot.lane.b32.xlu1 %v3143_v40, %s2538_s24  ;;  %v4428_v40 = vld [vmem:[#allocation12_spill] sm:$0xff] }
  0xdb   : > { %1111 = vrot.lane.b32.xlu0 %v3148_v61, %s2538_s24  ;;  %v642_v12 = vrot.slane %v4428_v40, 1 }
  0xdc   : > { %v3394_v58 = vpop.permute.xlu1 %1027 }
  0xdd   : > { %v3396_v15 = vpop.permute.xlu0 %1003  ;;  %v643_v47 = vsel %vm626_vm1, %v640_v25, %v642_v12 }
  0xde   : > { %1190 = vrot.lane.b32.xlu1 %v4420_v23, %s2539_s29 }
  0xdf   : > { %1166 = vrot.lane.b32.xlu0 %v4422_v46, %s2539_s29 }
  0xe0   : > { %v1126_v31 = vpop.permute.xlu1 %1125 }
  0xe1   : > { %v1102_v63 = vpop.permute.xlu0 %1101 }
  0xe2   : > { %1192 = vrot.lane.b32.xlu1 %v2866_v57, %s2539_s29 }
  0xe3   : > { %1168 = vrot.lane.b32.xlu0 %v4428_v40, %s2539_s29  ;;  %v4434_v40 = vld [vmem:[#allocation18_spill] sm:$0xff] }
  0xe4   : > { %v3406_v39 = vpop.permute.xlu1 %1127  ;;  %v1373_v21 = vsel %vm1347_vm3, %v4434_v40, %v3292_v53 }
  0xe5   : > { %v3408_v61 = vpop.permute.xlu0 %1103  ;;  %v1422_v4 = vsel %vm1396_vm4, %v1373_v21, %v701_v51  ;;  %v4437_v21 = vld [vmem:[#allocation32_spill] sm:$0xff] }
  0xe6   : > { %1270 = vrot.lane.b32.xlu1 %v4429_v7, %s2540_s5  ;;  %v1471_v53 = vsel %vm1445_vm5, %v1422_v4, %v779_v0 }
  0xe7   : > { %1246 = vrot.lane.b32.xlu0 %v4430_v20, %s2540_s5  ;;  %v4433_v20 = vld [vmem:[#allocation13_spill] sm:$0xff]  ;;  %v1520_v24 = vsel %vm1494_vm6, %v1471_v53, %v1026_v34  ;;  %v4441_v34 = vld [vmem:[#allocation4_spill] sm:$0xff] }
  0xe8   : > { %v1183_v23 = vpop.permute.xlu1 %1182  ;;  %v4343_v35 = vrot.slane %v4433_v20, 1  ;;  %v1569_v0 = vsel %vm1543_vm7, %v1520_v24, %v1126_v31 }
  0xe9   : > { %v1159_v46 = vpop.permute.xlu0 %1158 }
  0xea   : > { %1272 = vrot.lane.b32.xlu1 %v2942_v19, %s2540_s5  ;;  %v3429_v19 = vsel %vm626_vm1, %v666_v9, %v4341_v32  ;;  %v3434_v62 = vsel %vm626_vm1, %v642_v12, %v4343_v35  ;;  %v4435_v9 = vld [vmem:[#allocation3_spill] sm:$0xff] }
  0xeb   : > { %1248 = vrot.lane.b32.xlu0 %v4431_v56, %s2540_s5  ;;  %v1349_v32 = vsel %vm1347_vm3, %v4435_v9, %v3238_v27  ;;  %v4436_v9 = vld [vmem:[#allocation29_spill] sm:$0xff] }
  0xec   : > { %v1185_v7 = vpop.permute.xlu1 %1184  ;;  %v1398_v12 = vsel %vm1396_vm4, %v1349_v32, %v3351_v16  ;;  %v3454_v51 = vcombine.low %v4437_v21, %v4436_v9  ;;  %v4440_v32 = vld [vmem:[#allocation20_spill] sm:$0xff] }
  0xed   : > { %v1161_v57 = vpop.permute.xlu0 %1160  ;;  %v1447_v48 = vsel %vm1445_vm5, %v1398_v12, %v755_v41  ;;  %v1375_v4 = vsel %vm1347_vm3, %v4440_v32, %v3290_v5  ;;  %v953_v41 = vshrl.u32 %v3094_v38, 16  ;;  %v1351_v12 = vsel %vm1347_vm3, %v4441_v34, %v3247_v50 }
  0xee   : > { %1331 = vrot.lane.b32.xlu1 %v667_v36, %s2541_s6  ;;  %v1496_v16 = vsel %vm1494_vm6, %v1447_v48, %v1002_v52  ;;  %v1424_v33 = vsel %vm1396_vm4, %v1375_v4, %v3372_v1  ;;  %v1618_v5 = vsel %vm1592_vm8, %v1569_v0, %v1183_v23  ;;  %v1400_v24 = vsel %vm1396_vm4, %v1351_v12, %v3349_v3 }
  0xef   : > { %1307 = vrot.lane.b32.xlu0 %v643_v47, %s2541_s6  ;;  %v1545_v42 = vsel %vm1543_vm7, %v1496_v16, %v1102_v63  ;;  %v1473_v48 = vsel %vm1445_vm5, %v1424_v33, %v3382_v11  ;;  %v1449_v1 = vsel %vm1445_vm5, %v1400_v24, %v3384_v37  ;;  %v957_v37 = vshll.u32 %v3454_v51, 16  ;;  %v2499_v16 = vld [vmem:[%s2586_s19 + $0x50] sm:$0xf] }
  0xf0   : > { %v1263_v56 = vpop.permute.xlu1 %1262  ;;  %v1522_v23 = vsel %vm1494_vm6, %v1473_v48, %v3394_v58  ;;  %v1498_v3 = vsel %vm1494_vm6, %v1449_v1, %v3396_v15  ;;  %v4442_v15 = vld [vmem:[#allocation34_spill] sm:$0xff]  ;;  %v861_v4 = vshll.u32 %v3458_v18, 16  ;;  %v865_v48 = vshrl.u32 %v3458_v18, 16 }
  0xf1   : > { %v1239_v25 = vpop.permute.xlu0 %1238  ;;  %v1667_v50 = vsel %vm1641_vm9, %v1618_v5, %v1263_v56  ;;  %v1547_v58 = vsel %vm1543_vm7, %v1498_v3, %v3408_v61  ;;  %v2498_v61 = vld [vmem:[%s2586_s19 + $0x4c] sm:$0xf]  ;;  %v1089_v3 = vrot.slane %v3454_v51, 1 }
  0xf2   : > { %1333 = vrot.lane.b32.xlu1 %v3429_v19, %s2541_s6  ;;  %v1596_v53 = vsel %vm1592_vm8, %v1547_v58, %v1161_v57  ;;  %v955_v57 = vor.u32 %v953_v41, %v3118_v55  ;;  %v863_v24 = vrot.slane %v861_v4, 1 }
  0xf3   : > { %1309 = vrot.lane.b32.xlu0 %v3434_v62, %s2541_s6 }
  0xf4   : > { %v1265_v35 = vpop.permute.xlu1 %1264 }
  0xf5   : > { %v1241_v27 = vpop.permute.xlu0 %1240 }
  0xf6   : > { %712 = vrot.lane.b32.xlu1 %v3334_v43, %s2535_s21  ;;  %v1594_v43 = vsel %vm1592_vm8, %v1545_v42, %v1159_v46  ;;  %v1571_v46 = vsel %vm1543_vm7, %v1522_v23, %v3406_v39  ;;  %v857_v39 = vshrl.u32 %v3099_v29, 16  ;;  %v867_v23 = vor.u32 %v865_v48, %v863_v24 }
  0xf7   : > { %688 = vrot.lane.b32.xlu0 %v3341_v54, %s2535_s21  ;;  %v1643_v31 = vsel %vm1641_vm9, %v1594_v43, %v1239_v25  ;;  %v1620_v56 = vsel %vm1592_vm8, %v1571_v46, %v1185_v7  ;;  %v4443_v25 = vld [vmem:[#allocation30_spill] sm:$0xff]  ;;  %v3512_v7 = vcombine.low %v2498_v61, %v2499_v16 }
  0xf8   : > { %v1324_v52 = vpop.permute.xlu1 %1323  ;;  %v1669_v9 = vsel %vm1641_vm9, %v1620_v56, %v1265_v35  ;;  %v959_v35 = vrot.slane %v957_v37, 1  ;;  %v859_v5 = vor.u32 %v857_v39, %v3123_v28  ;;  %v1065_v37 = vrot.slane %v3458_v18, 1 }
  0xf9   : > { %v1300_v54 = vpop.permute.xlu0 %1299  ;;  %v1716_v63 = vsel %vm1690_vm10, %v1667_v50, %v1324_v52  ;;  %v869_v43 = vshll.u32 %v3512_v7, 16  ;;  %v4444_v56 = vrot.slane %v3094_v38, 1 }
  0xfa   : > { %714 = vrot.lane.b32.xlu1 %v667_v36, %s2535_s21  ;;  %v1692_v11 = vsel %vm1690_vm10, %v1643_v31, %v1300_v54  ;;  %2372 = vmatprep.mubr.msk.bf16.mxu1 %vm1766_vm11, %v1716_v63  ;;  %v3505_v36 = vcombine.low %v4443_v25, %v4442_v15  ;;  %v960_v55 = vsel %vm378_vm0, %v955_v57, %v959_v35  ;;  %v4445_v25 = vrot.slane %v3099_v29, 1 }
  0xfb   : > { %690 = vrot.lane.b32.xlu0 %v643_v47, %s2535_s21  ;;  %2348 = vmatprep.mubr.msk.bf16.mxu0 %vm1766_vm11, %v1692_v11  ;;  %v1645_v47 = vsel %vm1641_vm9, %v1596_v53, %v1241_v27  ;;  %v961_v27 = vshrl.u32 %v3454_v51, 16  ;;  %v864_v28 = vsel %vm378_vm0, %v859_v5, %v863_v24  ;;  %v3541_v31 = vrot.slane %v869_v43, 1 }
  0xfc   : > { %v1326_v21 = vpop.permute.xlu1 %1325  ;;  %v965_v33 = vshll.u32 %v3505_v36, 16  ;;  %v1090_v39 = vsel %vm626_vm1, %v4444_v56, %v1089_v3  ;;  %v1091_v15 = vrot.slane %v3505_v36, 1  ;;  %v1066_v53 = vsel %vm626_vm1, %v4445_v25, %v1065_v37 }
  0xfd   : > { %v1718_v0 = vsel %vm1690_vm10, %v1669_v9, %v1326_v21  ;;  %v1302_v34 = vpop.permute.xlu0 %1301  ;;  %v963_v41 = vor.u32 %v961_v27, %v959_v35  ;;  %v872_v11 = vsel %vm378_vm0, %v867_v23, %v3541_v31  ;;  %v1067_v9 = vrot.slane %v3512_v7, 1  ;;  %v4448_v27 = vld [vmem:[#allocation43_spill] sm:$0xff] }
  0xfe   : > { %v1694_v12 = vsel %vm1690_vm10, %v1645_v47, %v1302_v34  ;;  %790 = vrot.lane.b32.xlu1 %v3094_v38, %s2536_s22  ;;  %2373 = vmatmul.mubr.msk.bf16.vlgmr.msra.gmra.mrb[0].mxu1 %vm1766_vm11, %v1718_v0  ;;  %v3538_v52 = vrot.slane %v965_v33, 1  ;;  %v1092_v38 = vsel %vm626_vm1, %v1089_v3, %v1091_v15  ;;  %v4446_v34 = vld [vmem:[#allocation39_spill] sm:$0xff] }
  0xff   : > { %766 = vrot.lane.b32.xlu0 %v3099_v29, %s2536_s22  ;;  %2349 = vmatmul.mubr.msk.bf16.vlgmr.msra.gmra.mrb[0].mxu0 %vm1766_vm11, %v1694_v12  ;;  %v1068_v4 = vsel %vm626_vm1, %v1065_v37, %v1067_v9  ;;  %v4447_v12 = vld [vmem:[#allocation14_spill] sm:$0xff]  ;;  %v4449_v33 = vld [vmem:[#allocation23_spill] sm:$0xff]  ;;  %v670_v5 = vrot.slane %v4446_v34, 1  ;;  %v4454_v37 = vrot.slane %v4433_v20, 1 }
 0x100   : > { %v3526_v42 = vpop.permute.xlu1 %706  ;;  %v968_v63 = vsel %vm378_vm0, %v963_v41, %v3538_v52  ;;  %v646_v48 = vrot.slane %v4447_v12, 1  ;;  %v4451_v41 = vld [vmem:[#allocation31_spill] sm:$0xff] }
 0x101   : > { %v3531_v50 = vpop.permute.xlu0 %704 }
 0x102   : > { %792 = vrot.lane.b32.xlu1 %v3454_v51, %s2536_s22  ;;  %v647_v56 = vsel %vm626_vm1, %v4454_v37, %v646_v48 }
 0x103   : > { %768 = vrot.lane.b32.xlu0 %v3458_v18, %s2536_s22 }
 0x104   : > { %v783_v1 = vpop.permute.xlu1 %782 }
 0x105   : > { %v759_v54 = vpop.permute.xlu0 %758 }
 0x106   : > { %1037 = vrot.lane.b32.xlu1 %v960_v55, %s2537_s23  ;;  %v4450_v55 = vld [vmem:[#allocation45_spill] sm:$0xff] }
 0x107   : > { %1013 = vrot.lane.b32.xlu0 %v864_v28, %s2537_s23  ;;  %v4452_v28 = vrot.slane %v4432_v44, 1 }
 0x108   : > { %v3548_v46 = vpop.permute.xlu1 %784 }
 0x109   : > { %v3553_v58 = vpop.permute.xlu0 %760  ;;  %v671_v23 = vsel %vm626_vm1, %v4452_v28, %v670_v5 }
 0x10a   : > { %1039 = vrot.lane.b32.xlu1 %v968_v63, %s2537_s23  ;;  %v4453_v63 = vld [vmem:[#allocation40_spill] sm:$0xff] }
 0x10b   : > { %1015 = vrot.lane.b32.xlu0 %v872_v11, %s2537_s23  ;;  %v3597_v3 = vrot.slane %v4453_v63, 1 }
 0x10c   : > { %v1030_v51 = vpop.permute.xlu1 %1029 }
 0x10d   : > { %v1006_v18 = vpop.permute.xlu0 %1005 }
 0x10e   : > { %1137 = vrot.lane.b32.xlu1 %v1090_v39, %s2538_s24  ;;  %v4455_v39 = vld [vmem:[#allocation17_spill] sm:$0xff] }
 0x10f   : > { %1113 = vrot.lane.b32.xlu0 %v1066_v53, %s2538_s24  ;;  %v648_v25 = vrot.slane %v4455_v39, 1 }
 0x110   : > { %v1032_v21 = vpop.permute.xlu1 %1031 }
 0x111   : > { %v1008_v61 = vpop.permute.xlu0 %1007  ;;  %v3623_v37 = vsel %vm626_vm1, %v646_v48, %v648_v25 }
 0x112   : > { %1139 = vrot.lane.b32.xlu1 %v1092_v38, %s2538_s24  ;;  %v1377_v38 = vsel %vm1347_vm3, %v2766_v10, %v3300_v13 }
 0x113   : > { %1115 = vrot.lane.b32.xlu0 %v1068_v4, %s2538_s24  ;;  %v4456_v4 = vld [vmem:[#allocation2_spill] sm:$0xff] }
 0x114   : > { %v1130_v29 = vpop.permute.xlu1 %1129 }
 0x115   : > { %v1106_v16 = vpop.permute.xlu0 %1105 }
 0x116   : > { %1194 = vrot.lane.b32.xlu1 %v4432_v44, %s2539_s29 }
 0x117   : > { %1170 = vrot.lane.b32.xlu0 %v4433_v20, %s2539_s29 }
 0x118   : > { %v1132_v47 = vpop.permute.xlu1 %1131 }
 0x119   : > { %v1108_v0 = vpop.permute.xlu0 %1107 }
 0x11a   : > { %1196 = vrot.lane.b32.xlu1 %v4446_v34, %s2539_s29 }
 0x11b   : > { %1172 = vrot.lane.b32.xlu0 %v4447_v12, %s2539_s29 }
 0x11c   : > { %v1187_v57 = vpop.permute.xlu1 %1186 }
 0x11d   : > { %v1163_v35 = vpop.permute.xlu0 %1162 }
 0x11e   : > { %1274 = vrot.lane.b32.xlu1 %v4448_v27, %s2540_s5  ;;  %v1353_v27 = vsel %vm1347_vm3, %v4456_v4, %v3236_v2 }
 0x11f   : > { %1250 = vrot.lane.b32.xlu0 %v4449_v33, %s2540_s5  ;;  %v1426_v33 = vsel %vm1396_vm4, %v1377_v38, %v3531_v50 }
 0x120   : > { %v1189_v24 = vpop.permute.xlu1 %1188  ;;  %v1475_v13 = vsel %vm1445_vm5, %v1426_v33, %v783_v1  ;;  %v1355_v1 = vsel %vm1347_vm3, %v2606_v8, %v3245_v17 }
 0x121   : > { %v1165_v43 = vpop.permute.xlu0 %1164  ;;  %v1524_v50 = vsel %vm1494_vm6, %v1475_v13, %v1030_v51  ;;  %v2503_v13 = vld [vmem:[%s2586_s19 + $0x58] sm:$0xf] }
 0x122   : > { %1276 = vrot.lane.b32.xlu1 %v4450_v55, %s2540_s5  ;;  %v3615_v55 = vsel %vm626_vm1, %v670_v5, %v3597_v3  ;;  %v1379_v5 = vsel %vm1347_vm3, %v4399_v30, %v3298_v26  ;;  %v1404_v30 = vsel %vm1396_vm4, %v1355_v1, %v3356_v14  ;;  %v873_v1 = vshrl.u32 %v3512_v7, 16 }
 0x123   : > { %1252 = vrot.lane.b32.xlu0 %v4451_v41, %s2540_s5  ;;  %v1402_v41 = vsel %vm1396_vm4, %v1353_v27, %v3358_v59  ;;  %v1573_v59 = vsel %vm1543_vm7, %v1524_v50, %v1130_v29 }
 0x124   : > { %v1267_v11 = vpop.permute.xlu1 %1266  ;;  %v1451_v2 = vsel %vm1445_vm5, %v1402_v41, %v759_v54  ;;  %v1428_v54 = vsel %vm1396_vm4, %v1379_v5, %v3526_v42  ;;  %v1622_v48 = vsel %vm1592_vm8, %v1573_v59, %v1187_v57  ;;  %v1453_v42 = vsel %vm1445_vm5, %v1404_v30, %v3553_v58  ;;  %v2502_v41 = vld [vmem:[%s2586_s19 + $0x54] sm:$0xf] }
 0x125   : > { %v1243_v53 = vpop.permute.xlu0 %1242  ;;  %v1500_v4 = vsel %vm1494_vm6, %v1451_v2, %v1006_v18  ;;  %v1477_v26 = vsel %vm1445_vm5, %v1428_v54, %v3548_v46  ;;  %v1671_v8 = vsel %vm1641_vm9, %v1622_v48, %v1267_v11  ;;  %v1502_v46 = vsel %vm1494_vm6, %v1453_v42, %v1008_v61  ;;  %v2500_v61 = vld [vmem:[%s2586_s19 + $0xb4] sm:$0xf]  ;;  %v2505_v54 = vld [vmem:[%s2586_s19 + $0x5c] sm:$0xf] }
 0x126   : > { %1335 = vrot.lane.b32.xlu1 %v671_v23, %s2541_s6  ;;  %v1549_v51 = vsel %vm1543_vm7, %v1500_v4, %v1106_v16  ;;  %v1526_v29 = vsel %vm1494_vm6, %v1477_v26, %v1032_v21  ;;  %v1551_v58 = vsel %vm1543_vm7, %v1502_v46, %v1108_v0  ;;  %v3673_v0 = vcombine.low %v2502_v41, %v2503_v13  ;;  %v2504_v4 = vld [vmem:[%s2586_s19 + $0xbc] sm:$0xf] }
 0x127   : > { %1311 = vrot.lane.b32.xlu0 %v647_v56, %s2541_s6  ;;  %v1598_v18 = vsel %vm1592_vm8, %v1549_v51, %v1163_v35  ;;  %v1575_v35 = vsel %vm1543_vm7, %v1526_v29, %v1132_v47  ;;  %v1600_v27 = vsel %vm1592_vm8, %v1551_v58, %v1165_v43  ;;  %v969_v43 = vshrl.u32 %v3505_v36, 16  ;;  %v2506_v51 = vld [vmem:[%s2586_s19 + $0x60] sm:$0xf] }
 0x128   : > { %v1269_v28 = vpop.permute.xlu1 %1268  ;;  %v1647_v16 = vsel %vm1641_vm9, %v1598_v18, %v1243_v53  ;;  %v1624_v21 = vsel %vm1592_vm8, %v1575_v35, %v1189_v24  ;;  %v2501_v53 = vld [vmem:[%s2586_s19 + $0xb8] sm:$0xf]  ;;  %v3676_v24 = vld [vmem:[%s2586_s19 + $0xc0] sm:$0xf]  ;;  %v3697_v48 = vcombine.low %v2505_v54, %v2506_v51  ;;  %v875_v42 = vor.u32 %v873_v1, %v3541_v31 }
 0x129   : > { %v1245_v38 = vpop.permute.xlu0 %1244  ;;  %v3667_v47 = vcombine.low %v2500_v61, %v2501_v53  ;;  %v1673_v33 = vsel %vm1641_vm9, %v1624_v21, %v1269_v28  ;;  %v971_v30 = vor.u32 %v969_v43, %v3538_v52  ;;  %v1069_v41 = vrot.slane %v3673_v0, 1 }
 0x12a   : > { %1337 = vrot.lane.b32.xlu1 %v3615_v55, %s2541_s6 }
 0x12b   : > { %1313 = vrot.lane.b32.xlu0 %v3623_v37, %s2541_s6  ;;  %v973_v28 = vshll.u32 %v3667_v47, 16  ;;  %v977_v18 = vshrl.u32 %v3667_v47, 16 }
 0x12c   : > { %v1328_v17 = vpop.permute.xlu1 %1327 }
 0x12d   : > { %v1720_v57 = vsel %vm1690_vm10, %v1671_v8, %v1328_v17  ;;  %v1304_v14 = vpop.permute.xlu0 %1303  ;;  %v975_v26 = vrot.slane %v973_v28, 1  ;;  %v3765_v28 = vld [vmem:[%s2586_s19 + $0xc8] sm:$0xf] }
 0x12e   : > { %v1696_v11 = vsel %vm1690_vm10, %v1647_v16, %v1304_v14  ;;  %716 = vrot.lane.b32.xlu1 %v3429_v19, %s2535_s21  ;;  %2376 = vmatprep.mubr.msk.bf16.mxu1 %vm1766_vm11, %v1720_v57  ;;  %v881_v16 = vshrl.u32 %v3673_v0, 16  ;;  %v885_v57 = vshll.u32 %v3697_v48, 16 }
 0x12f   : > { %692 = vrot.lane.b32.xlu0 %v3434_v62, %s2535_s21  ;;  %2352 = vmatprep.mubr.msk.bf16.mxu0 %vm1766_vm11, %v1696_v11  ;;  %v1649_v62 = vsel %vm1641_vm9, %v1600_v27, %v1245_v38  ;;  %v3689_v38 = vcombine.low %v2504_v4, %v3676_v24  ;;  %v976_v52 = vsel %vm378_vm0, %v971_v30, %v975_v26  ;;  %v1093_v27 = vrot.slane %v3667_v47, 1  ;;  %v250_v4 = vld [vmem:[%s2586_s19 + $0xcc] sm:$0xf] }
 0x130   : > { %v1330_v19 = vpop.permute.xlu1 %1329  ;;  %v979_v46 = vor.u32 %v977_v18, %v975_v26  ;;  %v3725_v21 = vrot.slane %v885_v57, 1  ;;  %v3771_v54 = vcombine.low %v3765_v28, %v250_v4 }
 0x131   : > { %v1722_v2 = vsel %vm1690_vm10, %v1673_v33, %v1330_v19  ;;  %v1306_v50 = vpop.permute.xlu0 %1305  ;;  %v981_v8 = vshll.u32 %v3689_v38, 16 }
 0x132   : > { %v1698_v5 = vsel %vm1690_vm10, %v1649_v62, %v1306_v50  ;;  %718 = vrot.lane.b32.xlu1 %v671_v23, %s2535_s21  ;;  %2377 = vmatmul.mubr.msk.bf16.gmra.mrb[4].mxu1 %vm1766_vm11, %v1722_v2  ;;  %v877_v23 = vshll.u32 %v3673_v0, 16  ;;  %v1094_v62 = vsel %vm626_vm1, %v1091_v15, %v1093_v27  ;;  %v1095_v2 = vrot.slane %v3689_v38, 1 }
 0x133   : > { %694 = vrot.lane.b32.xlu0 %v647_v56, %s2535_s21  ;;  %2353 = vmatmul.mubr.msk.bf16.gmra.mrb[4].mxu0 %vm1766_vm11, %v1698_v5  ;;  %v3720_v35 = vrot.slane %v981_v8, 1  ;;  %v1070_v50 = vsel %vm626_vm1, %v1067_v9, %v1069_v41  ;;  %v3750_v5 = vld [vmem:[%s2586_s19 + $0xc4] sm:$0xf]  ;;  %v1218_v18 = vshll.u32 %v3771_v54, 16  ;;  %v1293_v4 = vrot.slane %v3771_v54, 1 }
 0x134   : > { %v3691_v59 = vpop.permute.xlu1 %710  ;;  %v879_v29 = vrot.slane %v877_v23, 1  ;;  %v2280_v15 = vcombine.low %v3676_v24, %v3750_v5 }
 0x135   : > { %v3699_v56 = vpop.permute.xlu0 %708  ;;  %v984_v53 = vsel %vm378_vm0, %v979_v46, %v3720_v35 }
 0x136   : > { %794 = vrot.lane.b32.xlu1 %v3505_v36, %s2536_s22  ;;  %v880_v31 = vsel %vm378_vm0, %v875_v42, %v879_v29  ;;  %v883_v58 = vor.u32 %v881_v16, %v879_v29  ;;  %v1096_v36 = vsel %vm626_vm1, %v1093_v27, %v1095_v2  ;;  %v1210_v23 = vshll.u32 %v2280_v15, 16  ;;  %v4457_v29 = vld [vmem:[#allocation44_spill] sm:$0xff] }
 0x137   : > { %770 = vrot.lane.b32.xlu0 %v3512_v7, %s2536_s22  ;;  %v1214_v26 = vshrl.u32 %v2280_v15, 16  ;;  %v1291_v27 = vrot.slane %v2280_v15, 1 }
 0x138   : > { %v3708_v17 = vpop.permute.xlu1 %786  ;;  %v888_v19 = vsel %vm378_vm0, %v883_v58, %v3725_v21  ;;  %v1212_v24 = vrot.slane %v1210_v23, 1  ;;  %v4458_v58 = vld [vmem:[#allocation28_spill] sm:$0xff] }
 0x139   : > { %v3713_v14 = vpop.permute.xlu0 %762 }
 0x13a   : > { %796 = vrot.lane.b32.xlu1 %v3667_v47, %s2536_s22  ;;  %v1213_v16 = vsel %vm378_vm0, %v4457_v29, %v1212_v24  ;;  %v1216_v57 = vor.u32 %v1214_v26, %v1212_v24  ;;  %v4462_v29 = vld [vmem:[#allocation5_spill] sm:$0xff] }
 0x13b   : > { %772 = vrot.lane.b32.xlu0 %v3673_v0, %s2536_s22  ;;  %v1071_v0 = vrot.slane %v3697_v48, 1 }
 0x13c   : > { %v3722_v11 = vpop.permute.xlu1 %788 }
 0x13d   : > { %v3727_v61 = vpop.permute.xlu0 %764  ;;  %v1072_v9 = vsel %vm626_vm1, %v1069_v41, %v1071_v0 }
 0x13e   : > { %1041 = vrot.lane.b32.xlu1 %v976_v52, %s2537_s23  ;;  %v3783_v52 = vrot.slane %v1218_v18, 1  ;;  %v4461_v18 = vld [vmem:[#allocation24_spill] sm:$0xff] }
 0x13f   : > { %1017 = vrot.lane.b32.xlu0 %v880_v31, %s2537_s23 }
 0x140   : > { %v1034_v33 = vpop.permute.xlu1 %1033 }
 0x141   : > { %v1010_v13 = vpop.permute.xlu0 %1009 }
 0x142   : > { %1043 = vrot.lane.b32.xlu1 %v984_v53, %s2537_s23  ;;  %v1221_v53 = vsel %vm378_vm0, %v1216_v57, %v3783_v52  ;;  %v4464_v57 = vld [vmem:[#allocation26_spill] sm:$0xff] }
 0x143   : > { %1019 = vrot.lane.b32.xlu0 %v888_v19, %s2537_s23 }
 0x144   : > { %v3743_v47 = vpop.permute.xlu1 %1035 }
 0x145   : > { %v3752_v43 = vpop.permute.xlu0 %1011 }
 0x146   : > { %1141 = vrot.lane.b32.xlu1 %v1094_v62, %s2538_s24  ;;  %v1381_v62 = vsel %vm1347_vm3, %v4400_v49, %v3308_v60 }
 0x147   : > { %1117 = vrot.lane.b32.xlu0 %v1070_v50, %s2538_s24  ;;  %v1357_v50 = vsel %vm1347_vm3, %v2634_v22, %v3257_v45  ;;  %v4460_v22 = vrot.slane %v4434_v40, 1 }
 0x148   : > { %v1134_v7 = vpop.permute.xlu1 %1133  ;;  %v1406_v49 = vsel %vm1396_vm4, %v1357_v50, %v3366_v6  ;;  %v1359_v6 = vsel %vm1347_vm3, %v4462_v29, %v4461_v18  ;;  %v2508_v18 = vld [vmem:[%s2586_s19 + $0x64] sm:$0xf]  ;;  %v2509_v29 = vld [vmem:[%s2586_s19 + $0x68] sm:$0xf] }
 0x149   : > { %v1110_v1 = vpop.permute.xlu0 %1109  ;;  %v651_v45 = vsel %vm626_vm1, %v648_v25, %v4460_v22 }
 0x14a   : > { %1143 = vrot.lane.b32.xlu1 %v1096_v36, %s2538_s24  ;;  %v1430_v36 = vsel %vm1396_vm4, %v1381_v62, %v3699_v56  ;;  %v1455_v56 = vsel %vm1445_vm5, %v1406_v49, %v3713_v14  ;;  %v4465_v62 = vld [vmem:[#allocation58_spill] sm:$0xff] }
 0x14b   : > { %1119 = vrot.lane.b32.xlu0 %v1072_v9, %s2538_s24  ;;  %v4459_v9 = vld [vmem:[#allocation38_spill] sm:$0xff]  ;;  %v1479_v60 = vsel %vm1445_vm5, %v1430_v36, %v3708_v17 }
 0x14c   : > { %v1136_v51 = vpop.permute.xlu1 %1135  ;;  %v1528_v24 = vsel %vm1494_vm6, %v1479_v60, %v1034_v33  ;;  %v2507_v49 = vld [vmem:[%s2586_s19 + $0xc0] ss:$0 sps:$4 sm:$0x11]  }
 0x14d   : > { %v1112_v30 = vpop.permute.xlu0 %1111 }
 0x14e   : > { %1198 = vrot.lane.b32.xlu1 %v4453_v63, %s2539_s29 }
 0x14f   : > { %1174 = vrot.lane.b32.xlu0 %v4455_v39, %s2539_s29 }
 0x150   : > { %v1191_v8 = vpop.permute.xlu1 %1190 }
 0x151   : > { %v1167_v42 = vpop.permute.xlu0 %1166 }
 0x152   : > { %1200 = vrot.lane.b32.xlu1 %v2280_v15, %s2539_s29  ;;  %v1292_v15 = vsel %vm626_vm1, %v3597_v3, %v1291_v27 }
 0x153   : > { %1176 = vrot.lane.b32.xlu0 %v4434_v40, %s2539_s29  ;;  %v1504_v40 = vsel %vm1494_vm6, %v1455_v56, %v1010_v13  ;;  %v1408_v13 = vsel %vm1396_vm4, %v1359_v6, %v4465_v62  ;;  %v2265_v6 = vcombine.low %v2508_v18, %v2509_v29 }
 0x154   : > { %v1193_v46 = vpop.permute.xlu1 %1192  ;;  %v1553_v14 = vsel %vm1543_vm7, %v1504_v40, %v1110_v1 }
 0x155   : > { %v1169_v31 = vpop.permute.xlu0 %1168  ;;  %v1602_v50 = vsel %vm1592_vm8, %v1553_v14, %v1167_v42  ;;  %v897_v62 = vshrl.u32 %v2265_v6, 16 }
 0x156   : > { %1278 = vrot.lane.b32.xlu1 %v1213_v16, %s2540_s5  ;;  %v4463_v16 = vld [vmem:[#allocation53_spill] sm:$0xff] }
 0x157   : > { %1254 = vrot.lane.b32.xlu0 %v4458_v58, %s2540_s5  ;;  %v1383_v17 = vsel %vm1347_vm3, %v4464_v57, %v4463_v16  ;;  %v1577_v58 = vsel %vm1543_vm7, %v1528_v24, %v1134_v7  ;;  %v2495_v57 = vld [vmem:[%s2586_s19 + $0xcc] ss:$0 sps:$4 sm:$0x11]  }
 0x158   : > { %v1271_v19 = vpop.permute.xlu1 %1270  ;;  %v1432_v25 = vsel %vm1396_vm4, %v1383_v17, %v3691_v59  ;;  %v1626_v33 = vsel %vm1592_vm8, %v1577_v58, %v1191_v8  ;;  %v1457_v8 = vsel %vm1445_vm5, %v1408_v13, %v3727_v61 }
 0x159   : > { %v1247_v41 = vpop.permute.xlu0 %1246  ;;  %v1481_v7 = vsel %vm1445_vm5, %v1432_v25, %v3722_v11  ;;  %v1675_v59 = vsel %vm1641_vm9, %v1626_v33, %v1271_v19  ;;  %v1506_v11 = vsel %vm1494_vm6, %v1457_v8, %v3752_v43  ;;  %v674_v43 = vrot.slane %v2507_v49, 1 }
 0x15a   : > { %1280 = vrot.lane.b32.xlu1 %v1221_v53, %s2540_s5  ;;  %v1294_v53 = vsel %vm626_vm1, %v1291_v27, %v1293_v4  ;;  %v1530_v36 = vsel %vm1494_vm6, %v1481_v7, %v3743_v47  ;;  %v1651_v27 = vsel %vm1641_vm9, %v1602_v50, %v1247_v41  ;;  %v1555_v61 = vsel %vm1543_vm7, %v1506_v11, %v1112_v30  ;;  %v4466_v41 = vld [vmem:[#allocation48_spill] sm:$0xff] }
 0x15b   : > { %1256 = vrot.lane.b32.xlu0 %v4459_v9, %s2540_s5  ;;  %v1579_v42 = vsel %vm1543_vm7, %v1530_v36, %v1136_v51  ;;  %v1604_v51 = vsel %vm1592_vm8, %v1555_v61, %v1169_v31  ;;  %v675_v31 = vsel %vm626_vm1, %v3597_v3, %v674_v43  ;;  %v889_v3 = vshrl.u32 %v3697_v48, 16 }
 0x15c   : > { %v1273_v23 = vpop.permute.xlu1 %1272  ;;  %v1628_v47 = vsel %vm1592_vm8, %v1579_v42, %v1193_v46  ;;  %v997_v25 = vshll.u32 %v2495_v57, 16  ;;  %v1073_v42 = vrot.slane %v2265_v6, 1 }
 0x15d   : > { %v1249_v26 = vpop.permute.xlu0 %1248  ;;  %v1677_v60 = vsel %vm1641_vm9, %v1628_v47, %v1273_v23  ;;  %v2277_v23 = vcombine.low %v3750_v5, %v3765_v28  ;;  %v893_v5 = vshll.u32 %v2265_v6, 16  ;;  %v891_v33 = vor.u32 %v889_v3, %v3725_v21 }
 0x15e   : > { %1339 = vrot.lane.b32.xlu1 %v1292_v15, %s2541_s6  ;;  %v1653_v56 = vsel %vm1641_vm9, %v1604_v51, %v1249_v26  ;;  %v1099_v47 = vrot.slane %v2495_v57, 1  ;;  %v1074_v49 = vsel %vm626_vm1, %v1071_v0, %v1073_v42 }
 0x15f   : > { %1315 = vrot.lane.b32.xlu0 %v651_v45, %s2541_s6  ;;  %v993_v58 = vshrl.u32 %v2277_v23, 16 }
 0x160   : > { %v1332_v1 = vpop.permute.xlu1 %1331 }
 0x161   : > { %v1724_v9 = vsel %vm1690_vm10, %v1675_v59, %v1332_v1  ;;  %v1308_v15 = vpop.permute.xlu0 %1307  ;;  %v999_v59 = vrot.slane %v997_v25, 1 }
 0x162   : > { %v1700_v19 = vsel %vm1690_vm10, %v1651_v27, %v1308_v15  ;;  %1341 = vrot.lane.b32.xlu1 %v1294_v53, %s2541_s6  ;;  %2380 = vmatprep.mubr.msk.bf16.mxu1 %vm1766_vm11, %v1724_v9  ;;  %v895_v53 = vrot.slane %v893_v5, 1  ;;  %v1097_v27 = vrot.slane %v2277_v23, 1  ;;  %v4467_v15 = vld [vmem:[#allocation7_spill] sm:$0xff] }
 0x163   : > { %1317 = vrot.lane.b32.xlu0 %v4466_v41, %s2541_s6  ;;  %2356 = vmatprep.mubr.msk.bf16.mxu0 %vm1766_vm11, %v1700_v19 }
 0x164   : > { %v1334_v22 = vpop.permute.xlu1 %1333  ;;  %v896_v1 = vsel %vm378_vm0, %v891_v33, %v895_v53  ;;  %v899_v8 = vor.u32 %v897_v62, %v895_v53  ;;  %v1098_v61 = vsel %vm626_vm1, %v1095_v2, %v1097_v27  ;;  %v1100_v51 = vsel %vm626_vm1, %v1097_v27, %v1099_v47  ;;  %v4471_v53 = vld [vmem:[#allocation54_spill] sm:$0xff]  ;;  %v4472_v62 = vld [vmem:[#allocation27_spill] sm:$0xff] }
 0x165   : > { %v1726_v30 = vsel %vm1690_vm10, %v1677_v60, %v1334_v22  ;;  %v1310_v24 = vpop.permute.xlu0 %1309  ;;  %v2496_v60 = vld [vmem:[%s2586_s19 + $0xd0] sm:$0xff]   ;;  %v4468_v22 = vld [vmem:[#allocation46_spill] sm:$0xff] }
 0x166   : > { %v1702_v46 = vsel %vm1690_vm10, %v1653_v56, %v1310_v24  ;;  %720 = vrot.lane.b32.xlu1 %v3615_v55, %s2535_s21  ;;  %2381 = vmatmul.mubr.msk.bf16.gmra.mrb[8].mxu1 %vm1766_vm11, %v1726_v30  ;;  %v985_v55 = vshrl.u32 %v3689_v38, 16  ;;  %v904_v11 = vsel %vm378_vm0, %v899_v8, %v4467_v15  ;;  %v4469_v2 = vrot.slane %v4468_v22, 1  ;;  %v2497_v24 = vld [vmem:[%s2586_s19 + $0xd8] ss:$0 sps:$4 sm:$0x11]  }
 0x167   : > { %696 = vrot.lane.b32.xlu0 %v3623_v37, %s2535_s21  ;;  %2357 = vmatmul.mubr.msk.bf16.gmra.mrb[8].mxu0 %vm1766_vm11, %v1702_v46  ;;  %v989_v37 = vshll.u32 %v2277_v23, 16  ;;  %v1226_v0 = vshll.u32 %v2496_v60, 16  ;;  %v1230_v29 = vshrl.u32 %v2496_v60, 16  ;;  %v4475_v8 = vld [vmem:[#allocation41_spill] sm:$0xff]  ;;  %v1297_v27 = vrot.slane %v2497_v24, 1 }
 0x168   : > { %v3872_v26 = vpop.permute.xlu1 %712  ;;  %v987_v40 = vor.u32 %v985_v55, %v3720_v35  ;;  %v1076_v56 = vsel %vm626_vm1, %v1073_v42, %v4469_v2 }
 0x169   : > { %v3876_v16 = vpop.permute.xlu0 %688  ;;  %v1228_v18 = vrot.slane %v1226_v0, 1 }
 0x16a   : > { %722 = vrot.lane.b32.xlu1 %v675_v31, %s2535_s21 }
 0x16b   : > { %698 = vrot.lane.b32.xlu0 %v651_v45, %s2535_s21  ;;  %v991_v45 = vrot.slane %v989_v37, 1  ;;  %v1232_v3 = vor.u32 %v1230_v29, %v1228_v18 }
 0x16c   : > { %v3882_v17 = vpop.permute.xlu1 %714 }
 0x16d   : > { %v3885_v28 = vpop.permute.xlu0 %690  ;;  %v992_v7 = vsel %vm378_vm0, %v987_v40, %v991_v45  ;;  %v995_v50 = vor.u32 %v993_v58, %v991_v45  ;;  %v1295_v58 = vrot.slane %v2496_v60, 1 }
 0x16e   : > { %798 = vrot.lane.b32.xlu1 %v3689_v38, %s2536_s22 }
 0x16f   : > { %774 = vrot.lane.b32.xlu0 %v3697_v48, %s2536_s22  ;;  %v1000_v21 = vsel %vm378_vm0, %v995_v50, %v999_v59  ;;  %v1222_v48 = vshrl.u32 %v3771_v54, 16  ;;  %v4474_v50 = vld [vmem:[#allocation6_spill] sm:$0xff] }
 0x170   : > { %v3892_v14 = vpop.permute.xlu1 %790 }
 0x171   : > { %v3895_v13 = vpop.permute.xlu0 %766 }
 0x172   : > { %800 = vrot.lane.b32.xlu1 %v2277_v23, %s2536_s22  ;;  %v1224_v23 = vor.u32 %v1222_v48, %v3783_v52  ;;  %v1298_v48 = vsel %vm626_vm1, %v1295_v58, %v1297_v27 }
 0x173   : > { %776 = vrot.lane.b32.xlu0 %v2265_v6, %s2536_s22  ;;  %v1234_v6 = vshll.u32 %v2497_v24, 16 }
 0x174   : > { %v3900_v35 = vpop.permute.xlu1 %792  ;;  %v1229_v57 = vsel %vm378_vm0, %v1224_v23, %v1228_v18 }
 0x175   : > { %v3903_v36 = vpop.permute.xlu0 %768  ;;  %v1236_v5 = vrot.slane %v1234_v6, 1 }
 0x176   : > { %1045 = vrot.lane.b32.xlu1 %v992_v7, %s2537_s23  ;;  %v4473_v7 = vld [vmem:[#allocation16_spill] sm:$0xff] }
 0x177   : > { %1021 = vrot.lane.b32.xlu0 %v896_v1, %s2537_s23  ;;  %v1237_v52 = vsel %vm378_vm0, %v1232_v3, %v1236_v5  ;;  %v1361_v59 = vsel %vm1347_vm3, %v4474_v50, %v4473_v7 }
 0x178   : > { %v1038_v9 = vpop.permute.xlu1 %1037  ;;  %v1410_v15 = vsel %vm1396_vm4, %v1361_v59, %v3876_v16 }
 0x179   : > { %v1014_v19 = vpop.permute.xlu0 %1013 }
 0x17a   : > { %1047 = vrot.lane.b32.xlu1 %v1000_v21, %s2537_s23  ;;  %v1296_v21 = vsel %vm626_vm1, %v1293_v4, %v1295_v58  ;;  %v4479_v4 = vld [vmem:[#allocation33_spill] sm:$0xff] }
 0x17b   : > { %1023 = vrot.lane.b32.xlu0 %v904_v11, %s2537_s23 }
 0x17c   : > { %v3915_v41 = vpop.permute.xlu1 %1039 }
 0x17d   : > { %v3920_v43 = vpop.permute.xlu0 %1015 }
 0x17e   : > { %1145 = vrot.lane.b32.xlu1 %v1098_v61, %s2538_s24  ;;  %v1459_v61 = vsel %vm1445_vm5, %v1410_v15, %v3895_v13 }
 0x17f   : > { %1121 = vrot.lane.b32.xlu0 %v1074_v49, %s2538_s24  ;;  %v4476_v49 = vld [vmem:[#allocation10_spill] sm:$0xff]  ;;  %v1508_v16 = vsel %vm1494_vm6, %v1459_v61, %v1014_v19 }
 0x180   : > { %v1138_v38 = vpop.permute.xlu1 %1137 }
 0x181   : > { %v1114_v30 = vpop.permute.xlu0 %1113 }
 0x182   : > { %1147 = vrot.lane.b32.xlu1 %v1100_v51, %s2538_s24  ;;  %v4477_v51 = vld [vmem:[#allocation11_spill] sm:$0xff]  ;;  %v1557_v13 = vsel %vm1543_vm7, %v1508_v16, %v1114_v30 }
 0x183   : > { %1123 = vrot.lane.b32.xlu0 %v1076_v56, %s2538_s24  ;;  %v4480_v56 = vld [vmem:[#allocation47_spill] sm:$0xff] }
 0x184   : > { %v1140_v46 = vpop.permute.xlu1 %1139 }
 0x185   : > { %v1116_v31 = vpop.permute.xlu0 %1115 }
 0x186   : > { %1202 = vrot.lane.b32.xlu1 %v3771_v54, %s2539_s29  ;;  %v1363_v54 = vsel %vm1347_vm3, %v4477_v51, %v4476_v49  ;;  %v4482_v49 = vld [vmem:[#allocation55_spill] sm:$0xff]  ;;  %v4483_v51 = vld [vmem:[#allocation37_spill] sm:$0xff] }
 0x187   : > { %1178 = vrot.lane.b32.xlu0 %v4440_v32, %s2539_s29  ;;  %v4470_v32 = vld [vmem:[#allocation36_spill] sm:$0xff]  ;;  %v1412_v0 = vsel %vm1396_vm4, %v1363_v54, %v3885_v28  ;;  %v1389_v54 = vsel %vm1347_vm3, %v4483_v51, %v4482_v49 }
 0x188   : > { %v1195_v55 = vpop.permute.xlu1 %1194  ;;  %v1461_v30 = vsel %vm1445_vm5, %v1412_v0, %v3903_v36 }
 0x189   : > { %v1171_v37 = vpop.permute.xlu0 %1170  ;;  %v1510_v28 = vsel %vm1494_vm6, %v1461_v30, %v3920_v43 }
 0x18a   : > { %1204 = vrot.lane.b32.xlu1 %v2496_v60, %s2539_s29  ;;  %v4478_v60 = vld [vmem:[#allocation15_spill] sm:$0xff]  ;;  %v1559_v36 = vsel %vm1543_vm7, %v1510_v28, %v1116_v31  ;;  %v4041_v28 = vld [vmem:[%s4270_s2] ss:$0 sm:$0xff] }
 0x18b   : > { %1180 = vrot.lane.b32.xlu0 %v2766_v10, %s2539_s29  ;;  %v1385_v10 = vsel %vm1347_vm3, %v4472_v62, %v4471_v53  ;;  %v1387_v22 = vsel %vm1347_vm3, %v4479_v4, %v4478_v60  ;;  %v4484_v60 = vld [vmem:[#allocation50_spill] sm:$0xff]  ;;  %v4485_v4 = vld [vmem:[#allocation12_spill] sm:$0xff] }
 0x18c   : > { %v1197_v40 = vpop.permute.xlu1 %1196  ;;  %v1434_v1 = vsel %vm1396_vm4, %v1385_v10, %v3872_v26 }
 0x18d   : > { %v1173_v45 = vpop.permute.xlu0 %1172  ;;  %v1483_v11 = vsel %vm1445_vm5, %v1434_v1, %v3892_v14  ;;  %v1436_v14 = vsel %vm1396_vm4, %v1387_v22, %v3882_v17  ;;  %v1365_v22 = vsel %vm1347_vm3, %v4485_v4, %v4484_v60 }
 0x18e   : > { %1282 = vrot.lane.b32.xlu1 %v1229_v57, %s2540_s5  ;;  %v1532_v26 = vsel %vm1494_vm6, %v1483_v11, %v1038_v9  ;;  %v1485_v19 = vsel %vm1445_vm5, %v1436_v14, %v3900_v35  ;;  %v1608_v57 = vsel %vm1592_vm8, %v1559_v36, %v1173_v45 }
 0x18f   : > { %1258 = vrot.lane.b32.xlu0 %v4470_v32, %s2540_s5  ;;  %v1581_v2 = vsel %vm1543_vm7, %v1532_v26, %v1138_v38  ;;  %v1606_v38 = vsel %vm1592_vm8, %v1557_v13, %v1171_v37  ;;  %v1534_v23 = vsel %vm1494_vm6, %v1485_v19, %v3915_v41  ;;  %v4481_v37 = vld [vmem:[#allocation22_spill] sm:$0xff] }
 0x190   : > { %v1275_v25 = vpop.permute.xlu1 %1274  ;;  %v1630_v9 = vsel %vm1592_vm8, %v1581_v2, %v1195_v55  ;;  %v1583_v35 = vsel %vm1543_vm7, %v1534_v23, %v1140_v46 }
 0x191   : > { %v1251_v33 = vpop.permute.xlu0 %1250  ;;  %v1679_v24 = vsel %vm1641_vm9, %v1630_v9, %v1275_v25  ;;  %v1632_v41 = vsel %vm1592_vm8, %v1583_v35, %v1197_v40  ;;  %v4486_v9 = vld [vmem:[#allocation21_spill] sm:$0xff] }
 0x192   : > { %1284 = vrot.lane.b32.xlu1 %v1237_v52, %s2540_s5  ;;  %v1655_v18 = vsel %vm1641_vm9, %v1606_v38, %v1251_v33  ;;  %v4487_v38 = vld [vmem:[#allocation49_spill] sm:$0xff] }
 0x193   : > { %1260 = vrot.lane.b32.xlu0 %v4475_v8, %s2540_s5 }
 0x194   : > { %v1277_v42 = vpop.permute.xlu1 %1276 }
 0x195   : > { %v1253_v47 = vpop.permute.xlu0 %1252  ;;  %v1681_v43 = vsel %vm1641_vm9, %v1632_v41, %v1277_v42 }
 0x196   : > { %1343 = vrot.lane.b32.xlu1 %v1296_v21, %s2541_s6  ;;  %v1657_v3 = vsel %vm1641_vm9, %v1608_v57, %v1253_v47 }
 0x197   : > { %1319 = vrot.lane.b32.xlu0 %v4480_v56, %s2541_s6  ;;  %v1391_v56 = vsel %vm1347_vm3, %v4432_v44, %v4486_v9 }
 0x198   : > { %v1336_v17 = vpop.permute.xlu1 %1335 }
 0x199   : > { %v1728_v29 = vsel %vm1690_vm10, %v1679_v24, %v1336_v17  ;;  %v1312_v6 = vpop.permute.xlu0 %1311  ;;  %v1367_v24 = vsel %vm1347_vm3, %v4433_v20, %v4487_v38 }
 0x19a   : > { %v1704_v55 = vsel %vm1690_vm10, %v1655_v18, %v1312_v6  ;;  %1345 = vrot.lane.b32.xlu1 %v1298_v48, %s2541_s6  ;;  %2384 = vmatprep.mubr.msk.bf16.mxu1 %vm1766_vm11, %v1728_v29 }
 0x19b   : > { %1321 = vrot.lane.b32.xlu0 %v4481_v37, %s2541_s6  ;;  %2360 = vmatprep.mubr.msk.bf16.mxu0 %vm1766_vm11, %v1704_v55 }
 0x19c   : > { %v1338_v46 = vpop.permute.xlu1 %1337 }
 0x19d   : > { %v1730_v5 = vsel %vm1690_vm10, %v1681_v43, %v1338_v46  ;;  %v1314_v32 = vpop.permute.xlu0 %1313 }
 0x19e   : > { %v1706_v52 = vsel %vm1690_vm10, %v1657_v3, %v1314_v32  ;;  %2385 = vmatmul.mubr.msk.bf16.gmra.mrb[12].mxu1 %vm1766_vm11, %v1730_v5 }
 0x19f   : > { %2361 = vmatmul.mubr.msk.bf16.gmra.mrb[12].mxu0 %vm1766_vm11, %v1706_v52 }
 0x1a0   : > { %v717_v31 = vpop.permute.xlu1 %716 }
 0x1a1   : > { %v693_v40 = vpop.permute.xlu0 %692  ;;  %v1438_v16 = vsel %vm1396_vm4, %v1389_v54, %v717_v31 }
 0x1a2   : > { %v1414_v2 = vsel %vm1396_vm4, %v1365_v22, %v693_v40 }
 0x1a4   : > { %v719_v58 = vpop.permute.xlu1 %718 }
 0x1a5   : > { %v695_v25 = vpop.permute.xlu0 %694  ;;  %v1440_v17 = vsel %vm1396_vm4, %v1391_v56, %v719_v58 }
 0x1a6   : > { %v1416_v18 = vsel %vm1396_vm4, %v1367_v24, %v695_v25 }
 0x1a8   : > { %v795_v33 = vpop.permute.xlu1 %794 }
 0x1a9   : > { %v771_v45 = vpop.permute.xlu0 %770  ;;  %v1487_v14 = vsel %vm1445_vm5, %v1438_v16, %v795_v33 }
 0x1aa   : > { %v1463_v48 = vsel %vm1445_vm5, %v1414_v2, %v771_v45 }
 0x1ac   : > { %v797_v53 = vpop.permute.xlu1 %796 }
 0x1ad   : > { %v773_v62 = vpop.permute.xlu0 %772  ;;  %v1489_v29 = vsel %vm1445_vm5, %v1440_v17, %v797_v53 }
 0x1ae   : > { %v1465_v20 = vsel %vm1445_vm5, %v1416_v18, %v773_v62 }
 0x1b0   : > { %v1042_v10 = vpop.permute.xlu1 %1041 }
 0x1b1   : > { %v1018_v7 = vpop.permute.xlu0 %1017  ;;  %v1536_v0 = vsel %vm1494_vm6, %v1487_v14, %v1042_v10 }
 0x1b2   : > { %v1512_v30 = vsel %vm1494_vm6, %v1463_v48, %v1018_v7 }
 0x1b4   : > { %v1044_v50 = vpop.permute.xlu1 %1043 }
 0x1b5   : > { %v1020_v59 = vpop.permute.xlu0 %1019  ;;  %v1538_v35 = vsel %vm1494_vm6, %v1489_v29, %v1044_v50 }
 0x1b6   : > { %v1514_v37 = vsel %vm1494_vm6, %v1465_v20, %v1020_v59 }
 0x1b8   : > { %v1142_v1 = vpop.permute.xlu1 %1141 }
 0x1b9   : > { %v1118_v8 = vpop.permute.xlu0 %1117  ;;  %v1585_v23 = vsel %vm1543_vm7, %v1536_v0, %v1142_v1 }
 0x1ba   : > { %v1561_v44 = vsel %vm1543_vm7, %v1512_v30, %v1118_v8 }
 0x1bc   : > { %v1144_v21 = vpop.permute.xlu1 %1143 }
 0x1bd   : > { %v1120_v27 = vpop.permute.xlu0 %1119  ;;  %v1587_v57 = vsel %vm1543_vm7, %v1538_v35, %v1144_v21 }
 0x1be   : > { %v1563_v32 = vsel %vm1543_vm7, %v1514_v37, %v1120_v27 }
 0x1c0   : > { %v1199_v15 = vpop.permute.xlu1 %1198 }
 0x1c1   : > { %v1175_v11 = vpop.permute.xlu0 %1174  ;;  %v1634_v6 = vsel %vm1592_vm8, %v1585_v23, %v1199_v15 }
 0x1c2   : > { %v1610_v55 = vsel %vm1592_vm8, %v1561_v44, %v1175_v11 }
 0x1c4   : > { %v1201_v42 = vpop.permute.xlu1 %1200 }
 0x1c5   : > { %v1177_v61 = vpop.permute.xlu0 %1176  ;;  %v1636_v52 = vsel %vm1592_vm8, %v1587_v57, %v1201_v42  ;;  %v4488_v57 = vld [vmem:[#allocation52_spill] sm:$0xff] }
 0x1c6   : > { %v1612_v33 = vsel %vm1592_vm8, %v1563_v32, %v1177_v61 }
 0x1c8   : > { %v1279_v26 = vpop.permute.xlu1 %1278 }
 0x1c9   : > { %v1255_v47 = vpop.permute.xlu0 %1254  ;;  %v1683_v36 = vsel %vm1641_vm9, %v1634_v6, %v1279_v26 }
 0x1ca   : > { %v1659_v43 = vsel %vm1641_vm9, %v1610_v55, %v1255_v47 }
 0x1cc   : > { %v1281_v13 = vpop.permute.xlu1 %1280 }
 0x1cd   : > { %v1257_v19 = vpop.permute.xlu0 %1256  ;;  %v1685_v45 = vsel %vm1641_vm9, %v1636_v52, %v1281_v13 }
 0x1ce   : > { %v1661_v50 = vsel %vm1641_vm9, %v1612_v33, %v1257_v19 }
 0x1d0   : > { %v1340_v41 = vpop.permute.xlu1 %1339 }
 0x1d1   : > { %v1732_v46 = vsel %vm1690_vm10, %v1683_v36, %v1340_v41  ;;  %v1316_v3 = vpop.permute.xlu0 %1315  ;;  %v2374_v5 = vpop.f32.mrb[0].mxu1 }
 0x1d2   : > { %v1708_v31 = vsel %vm1690_vm10, %v1659_v43, %v1316_v3  ;;  %v2350_v40 = vpop.f32.mrb[0].mxu0  ;;  %v1958_v58 = vadd.f32 %v2374_v5, %v4041_v28  ;;  %v1949_v25 = vpop.f32.mrb[1].mxu1  ;;  %2388 = vmatprep.mubr.msk.bf16.mxu1 %vm1766_vm11, %v1732_v46  ;;  %v1369_v43 = vsel %vm1347_vm3, %v4447_v12, %v4488_v57  ;;  %v4489_v46 = vld [vmem:[#allocation56_spill] sm:$0xff]  ;;  %v4490_v5 = vld [vmem:[#allocation57_spill] sm:$0xff] }
 0x1d3   : > { %v1862_v53 = vadd.f32 %v2350_v40, %v4041_v28  ;;  %v1853_v62 = vpop.f32.mrb[1].mxu0  ;;  %2364 = vmatprep.mubr.msk.bf16.mxu0 %vm1766_vm11, %v1708_v31  ;;  %v1950_v10 = vadd.f32 %v4041_v28, %v1949_v25  ;;  %v2375_v7 = vpop.f32.mrb[2].mxu1  ;;  %v1395_v3 = vsel %vm1347_vm3, %v4453_v63, %v4489_v46  ;;  %v1393_v32 = vsel %vm1347_vm3, %v4446_v34, %v4490_v5  ;;  %v4491_v31 = vld [vmem:[#allocation51_spill] sm:$0xff] }
 0x1d4   : > { %v2070_v59 = vmax.f32 %v1958_v58, 0.0  ;;  %v1854_v1 = vadd.f32 %v4041_v28, %v1853_v62  ;;  %v2351_v8 = vpop.f32.mrb[2].mxu0  ;;  %v1961_v21 = vadd.f32 %v2375_v7, %v4041_v28  ;;  %v1342_v27 = vpop.permute.xlu1 %1341  ;;  %v1371_v40 = vsel %vm1347_vm3, %v4455_v39, %v4491_v31 }
 0x1d5   : > { %v2046_v15 = vmax.f32 %v1862_v53, 0.0  ;;  %v2068_v11 = vmax.f32 %v1950_v10, 0.0  ;;  %v1865_v42 = vadd.f32 %v2351_v8, %v4041_v28  ;;  %v1734_v61 = vsel %vm1690_vm10, %v1685_v45, %v1342_v27  ;;  %v1856_v26 = vpop.f32.mrb[3].mxu0  ;;  %v1952_v47 = vpop.f32.mrb[3].mxu1 }
 0x1d6   : > { %2118 = vst.msk [vmem:[%s4061_s12 + $0xd0] sm:$0xff] %vm1396_vm4, %v2070_v59  ;;  %v2044_v49 = vmax.f32 %v1854_v1, 0.0  ;;  %v2071_v51 = vmax.f32 %v1961_v21, 0.0  ;;  %v1857_v54 = vadd.f32 %v4041_v28, %v1856_v26  ;;  %v1953_v60 = vadd.f32 %v4041_v28, %v1952_v47  ;;  %v1318_v4 = vpop.permute.xlu0 %1317  ;;  %2389 = vmatmul.mubr.msk.bf16.gmra.mrb[16].mxu1 %vm1766_vm11, %v1734_v61 }
 0x1d7   : > { %2094 = vst.msk [vmem:[%s4061_s12 + $0x10] sm:$0xff] %vm1396_vm4, %v2046_v15  ;;  %2116 = vst.msk [vmem:[%s4061_s12 + $0xc0] sm:$0xff] %vm1396_vm4, %v2068_v11  ;;  %v2047_v22 = vmax.f32 %v1865_v42, 0.0  ;;  %v1710_v16 = vsel %vm1690_vm10, %v1661_v50, %v1318_v4 }
 0x1d8   : > { %2092 = vst.msk [vmem:[%s4061_s12] sm:$0xff] %vm1396_vm4, %v2044_v49  ;;  %2119 = vst.msk [vmem:[%s4061_s12 + $0xd8] sm:$0xff] %vm1396_vm4, %v2071_v51  ;;  %v2045_v2 = vmax.f32 %v1857_v54, 0.0  ;;  %v2069_v14 = vmax.f32 %v1953_v60, 0.0  ;;  %2365 = vmatmul.mubr.msk.bf16.gmra.mrb[16].mxu0 %vm1766_vm11, %v1710_v16  ;;  %v721_v13 = vpop.permute.xlu1 %720 }
 0x1d9   : > { %2095 = vst.msk [vmem:[%s4061_s12 + $0x18] sm:$0xff] %vm1396_vm4, %v2047_v22  ;;  %v1442_v58 = vsel %vm1396_vm4, %v1393_v32, %v721_v13 }
 0x1da   : > { %2093 = vst.msk [vmem:[%s4061_s12 + $0x8] sm:$0xff] %vm1396_vm4, %v2045_v2  ;;  %2117 = vst.msk [vmem:[%s4061_s12 + $0xc8] sm:$0xff] %vm1396_vm4, %v2069_v14  ;;  %v697_v9 = vpop.permute.xlu0 %696 }
 0x1db   : > { %v1418_v25 = vsel %vm1396_vm4, %v1369_v43, %v697_v9 }
 0x1dc   : > { %v723_v56 = vpop.permute.xlu1 %722 }
 0x1dd   : > { %v1444_v33 = vsel %vm1396_vm4, %v1395_v3, %v723_v56 }
 0x1de   : > { %v699_v48 = vpop.permute.xlu0 %698 }
 0x1df   : > { %v1420_v12 = vsel %vm1396_vm4, %v1371_v40, %v699_v48 }
 0x1e0   : > { %v799_v0 = vpop.permute.xlu1 %798 }
 0x1e1   : > { %v1491_v45 = vsel %vm1445_vm5, %v1442_v58, %v799_v0 }
 0x1e2   : > { %v775_v19 = vpop.permute.xlu0 %774 }
 0x1e3   : > { %v1467_v63 = vsel %vm1445_vm5, %v1418_v25, %v775_v19 }
 0x1e4   : > { %v801_v38 = vpop.permute.xlu1 %800 }
 0x1e5   : > { %v1493_v53 = vsel %vm1445_vm5, %v1444_v33, %v801_v38 }
 0x1e6   : > { %v777_v24 = vpop.permute.xlu0 %776 }
 0x1e7   : > { %v1469_v62 = vsel %vm1445_vm5, %v1420_v12, %v777_v24 }
 0x1e8   : > { %v1046_v17 = vpop.permute.xlu1 %1045 }
 0x1e9   : > { %v1540_v10 = vsel %vm1494_vm6, %v1491_v45, %v1046_v17 }
 0x1ea   : > { %v1022_v30 = vpop.permute.xlu0 %1021 }
 0x1eb   : > { %v1516_v39 = vsel %vm1494_vm6, %v1467_v63, %v1022_v30 }
 0x1ec   : > { %v1048_v23 = vpop.permute.xlu1 %1047 }
 0x1ed   : > { %v1542_v7 = vsel %vm1494_vm6, %v1493_v53, %v1048_v23 }
 0x1ee   : > { %v1024_v18 = vpop.permute.xlu0 %1023 }
 0x1ef   : > { %v1518_v59 = vsel %vm1494_vm6, %v1469_v62, %v1024_v18 }
 0x1f0   : > { %v1146_v29 = vpop.permute.xlu1 %1145 }
 0x1f1   : > { %v1589_v1 = vsel %vm1543_vm7, %v1540_v10, %v1146_v29 }
 0x1f2   : > { %v1122_v44 = vpop.permute.xlu0 %1121 }
 0x1f3   : > { %v1565_v8 = vsel %vm1543_vm7, %v1516_v39, %v1122_v44 }
 0x1f4   : > { %v1148_v6 = vpop.permute.xlu1 %1147 }
 0x1f5   : > { %v1591_v11 = vsel %vm1543_vm7, %v1542_v7, %v1148_v6 }
 0x1f6   : > { %v1124_v20 = vpop.permute.xlu0 %1123 }
 0x1f7   : > { %v1567_v6 = vsel %vm1543_vm7, %v1518_v59, %v1124_v20 }
 0x1f8   : > { %v1203_v35 = vpop.permute.xlu1 %1202 }
 0x1f9   : > { %v1638_v42 = vsel %vm1592_vm8, %v1589_v1, %v1203_v35 }
 0x1fa   : > { %v1179_v55 = vpop.permute.xlu0 %1178 }
 0x1fb   : > { %v1614_v61 = vsel %vm1592_vm8, %v1565_v8, %v1179_v55 }
 0x1fc   : > { %v1205_v36 = vpop.permute.xlu1 %1204 }
 0x1fd   : > { %v1640_v35 = vsel %vm1592_vm8, %v1591_v11, %v1205_v36 }
 0x1fe   : > { %v4092_v41 = vpop.permute.xlu0 %1180 }
 0x200   : > { %v1283_v37 = vpop.permute.xlu1 %1282 }
 0x201   : > { %v1687_v51 = vsel %vm1641_vm9, %v1638_v42, %v1283_v37  ;;  %v1616_v37 = vsel %vm1592_vm8, %v1567_v6, %v4092_v41 }
 0x202   : > { %v1259_v52 = vpop.permute.xlu0 %1258 }
 0x203   : > { %v1663_v2 = vsel %vm1641_vm9, %v1614_v61, %v1259_v52 }
 0x204   : > { %v1285_v34 = vpop.permute.xlu1 %1284 }
 0x205   : > { %v2378_v50 = vpop.f32.mrb[4].mxu1  ;;  %v1689_v57 = vsel %vm1641_vm9, %v1640_v35, %v1285_v34 }
 0x206   : > { %v1261_v21 = vpop.permute.xlu0 %1260  ;;  %v2354_v27 = vpop.f32.mrb[4].mxu0  ;;  %v1974_v15 = vadd.f32 %v2378_v50, %v4041_v28 }
 0x207   : > { %v1878_v26 = vadd.f32 %v2354_v27, %v4041_v28  ;;  %v1869_v47 = vpop.f32.mrb[5].mxu0  ;;  %v1965_v49 = vpop.f32.mrb[5].mxu1  ;;  %v1665_v36 = vsel %vm1641_vm9, %v1616_v37, %v1261_v21 }
 0x208   : > { %v2074_v54 = vmax.f32 %v1974_v15, 0.0  ;;  %v1870_v60 = vadd.f32 %v4041_v28, %v1869_v47  ;;  %v1966_v4 = vadd.f32 %v4041_v28, %v1965_v49  ;;  %v2355_v22 = vpop.f32.mrb[6].mxu0  ;;  %v2379_v16 = vpop.f32.mrb[6].mxu1 }
 0x209   : > { %v2050_v14 = vmax.f32 %v1878_v26, 0.0  ;;  %v1881_v13 = vadd.f32 %v2355_v22, %v4041_v28  ;;  %v1977_v9 = vadd.f32 %v2379_v16, %v4041_v28  ;;  %v1344_v56 = vpop.permute.xlu1 %1343  ;;  %v1872_v48 = vpop.f32.mrb[7].mxu0 }
 0x20a   : > { %2122 = vst.msk [vmem:[%s4061_s12 + $0xf0] sm:$0xff] %vm1396_vm4, %v2074_v54  ;;  %v2048_v0 = vmax.f32 %v1870_v60, 0.0  ;;  %v2072_v19 = vmax.f32 %v1966_v4, 0.0  ;;  %v1736_v38 = vsel %vm1690_vm10, %v1687_v51, %v1344_v56  ;;  %v1873_v24 = vadd.f32 %v4041_v28, %v1872_v48  ;;  %v1968_v17 = vpop.f32.mrb[7].mxu1  ;;  %v1320_v30 = vpop.permute.xlu0 %1319 }
 0x20b   : > { %2098 = vst.msk [vmem:[%s4061_s12 + $0x30] sm:$0xff] %vm1396_vm4, %v2050_v14  ;;  %v2051_v23 = vmax.f32 %v1881_v13, 0.0  ;;  %v2075_v18 = vmax.f32 %v1977_v9, 0.0  ;;  %v1969_v29 = vadd.f32 %v4041_v28, %v1968_v17  ;;  %v1712_v44 = vsel %vm1690_vm10, %v1663_v2, %v1320_v30  ;;  %2392 = vmatprep.mubr.msk.bf16.mxu1 %vm1766_vm11, %v1736_v38 }
 0x20c   : > { %2096 = vst.msk [vmem:[%s4061_s12 + $0x20] sm:$0xff] %vm1396_vm4, %v2048_v0  ;;  %2120 = vst.msk [vmem:[%s4061_s12 + $0xe0] sm:$0xff] %vm1396_vm4, %v2072_v19  ;;  %v2049_v55 = vmax.f32 %v1873_v24, 0.0  ;;  %2368 = vmatprep.mubr.msk.bf16.mxu0 %vm1766_vm11, %v1712_v44 }
 0x20d   : > { %2099 = vst.msk [vmem:[%s4061_s12 + $0x38] sm:$0xff] %vm1396_vm4, %v2051_v23  ;;  %2123 = vst.msk [vmem:[%s4061_s12 + $0xf8] sm:$0xff] %vm1396_vm4, %v2075_v18  ;;  %v2073_v20 = vmax.f32 %v1969_v29, 0.0  ;;  %v1346_v43 = vpop.permute.xlu1 %1345 }
 0x20e   : > { %2097 = vst.msk [vmem:[%s4061_s12 + $0x28] sm:$0xff] %vm1396_vm4, %v2049_v55  ;;  %v1738_v46 = vsel %vm1690_vm10, %v1689_v57, %v1346_v43  ;;  %v1322_v3 = vpop.permute.xlu0 %1321 }
 0x20f   : > { %2121 = vst.msk [vmem:[%s4061_s12 + $0xe8] sm:$0xff] %vm1396_vm4, %v2073_v20  ;;  %v1714_v5 = vsel %vm1690_vm10, %v1665_v36, %v1322_v3  ;;  %2393 = vmatmul.mubr.msk.bf16.gmra.mrb[20].mxu1 %vm1766_vm11, %v1738_v46 }
 0x210   : > { %2369 = vmatmul.mubr.msk.bf16.gmra.mrb[20].mxu0 %vm1766_vm11, %v1714_v5 }
 0x239   : > { %v2382_v41 = vpop.f32.mrb[8].mxu1 }
 0x23a   : > { %v2358_v32 = vpop.f32.mrb[8].mxu0  ;;  %v1990_v52 = vadd.f32 %v2382_v41, %v4041_v28  ;;  %v1981_v31 = vpop.f32.mrb[9].mxu1 }
 0x23b   : > { %v1894_v40 = vadd.f32 %v2358_v32, %v4041_v28  ;;  %v1885_v58 = vpop.f32.mrb[9].mxu0  ;;  %v1982_v25 = vadd.f32 %v4041_v28, %v1981_v31  ;;  %v2383_v33 = vpop.f32.mrb[10].mxu1 }
 0x23c   : > { %v2078_v12 = vmax.f32 %v1990_v52, 0.0  ;;  %v1886_v45 = vadd.f32 %v4041_v28, %v1885_v58  ;;  %v2359_v63 = vpop.f32.mrb[10].mxu0  ;;  %v1993_v53 = vadd.f32 %v2383_v33, %v4041_v28  ;;  %v1984_v34 = vpop.f32.mrb[11].mxu1 }
 0x23d   : > { %v2054_v62 = vmax.f32 %v1894_v40, 0.0  ;;  %v2076_v10 = vmax.f32 %v1982_v25, 0.0  ;;  %v1897_v39 = vadd.f32 %v2359_v63, %v4041_v28  ;;  %v1888_v7 = vpop.f32.mrb[11].mxu0  ;;  %v1985_v50 = vadd.f32 %v4041_v28, %v1984_v34 }
 0x23e   : > { %2126 = vst.msk [vmem:[%s4061_s12 + $0x110] sm:$0xff] %vm1396_vm4, %v2078_v12  ;;  %v2052_v59 = vmax.f32 %v1886_v45, 0.0  ;;  %v2079_v1 = vmax.f32 %v1993_v53, 0.0  ;;  %v1889_v8 = vadd.f32 %v4041_v28, %v1888_v7 }
 0x23f   : > { %2102 = vst.msk [vmem:[%s4061_s12 + $0x50] sm:$0xff] %vm1396_vm4, %v2054_v62  ;;  %2124 = vst.msk [vmem:[%s4061_s12 + $0x100] sm:$0xff] %vm1396_vm4, %v2076_v10  ;;  %v2055_v21 = vmax.f32 %v1897_v39, 0.0  ;;  %v2077_v27 = vmax.f32 %v1985_v50, 0.0 }
 0x240   : > { %2100 = vst.msk [vmem:[%s4061_s12 + $0x40] sm:$0xff] %vm1396_vm4, %v2052_v59  ;;  %2127 = vst.msk [vmem:[%s4061_s12 + $0x118] sm:$0xff] %vm1396_vm4, %v2079_v1  ;;  %v2053_v15 = vmax.f32 %v1889_v8, 0.0 }
 0x241   : > { %2103 = vst.msk [vmem:[%s4061_s12 + $0x58] sm:$0xff] %vm1396_vm4, %v2055_v21  ;;  %2125 = vst.msk [vmem:[%s4061_s12 + $0x108] sm:$0xff] %vm1396_vm4, %v2077_v27 }
 0x242   : > { %2101 = vst.msk [vmem:[%s4061_s12 + $0x48] sm:$0xff] %vm1396_vm4, %v2053_v15 }
 0x271   : > { %v2386_v11 = vpop.f32.mrb[12].mxu1 }
 0x272   : > { %v2362_v42 = vpop.f32.mrb[12].mxu0  ;;  %v2006_v61 = vadd.f32 %v2386_v11, %v4041_v28  ;;  %v1997_v26 = vpop.f32.mrb[13].mxu1 }
 0x273   : > { %v1910_v47 = vadd.f32 %v2362_v42, %v4041_v28  ;;  %v1901_v49 = vpop.f32.mrb[13].mxu0  ;;  %v1998_v51 = vadd.f32 %v4041_v28, %v1997_v26  ;;  %v2387_v54 = vpop.f32.mrb[14].mxu1 }
 0x274   : > { %v2082_v60 = vmax.f32 %v2006_v61, 0.0  ;;  %v1902_v4 = vadd.f32 %v4041_v28, %v1901_v49  ;;  %v2363_v22 = vpop.f32.mrb[14].mxu0  ;;  %v2009_v16 = vadd.f32 %v2387_v54, %v4041_v28  ;;  %v2000_v2 = vpop.f32.mrb[15].mxu1 }
 0x275   : > { %v2058_v14 = vmax.f32 %v1910_v47, 0.0  ;;  %v2080_v13 = vmax.f32 %v1998_v51, 0.0  ;;  %v1913_v9 = vadd.f32 %v2363_v22, %v4041_v28  ;;  %v1904_v56 = vpop.f32.mrb[15].mxu0  ;;  %v2001_v48 = vadd.f32 %v4041_v28, %v2000_v2 }
 0x276   : > { %2130 = vst.msk [vmem:[%s4061_s12 + $0x130] sm:$0xff] %vm1396_vm4, %v2082_v60  ;;  %v2056_v0 = vmax.f32 %v1902_v4, 0.0  ;;  %v2083_v19 = vmax.f32 %v2009_v16, 0.0  ;;  %v1905_v38 = vadd.f32 %v4041_v28, %v1904_v56 }
 0x277   : > { %2106 = vst.msk [vmem:[%s4061_s12 + $0x70] sm:$0xff] %vm1396_vm4, %v2058_v14  ;;  %2128 = vst.msk [vmem:[%s4061_s12 + $0x120] sm:$0xff] %vm1396_vm4, %v2080_v13  ;;  %v2059_v24 = vmax.f32 %v1913_v9, 0.0  ;;  %v2081_v17 = vmax.f32 %v2001_v48, 0.0 }
 0x278   : > { %2104 = vst.msk [vmem:[%s4061_s12 + $0x60] sm:$0xff] %vm1396_vm4, %v2056_v0  ;;  %2131 = vst.msk [vmem:[%s4061_s12 + $0x138] sm:$0xff] %vm1396_vm4, %v2083_v19  ;;  %v2057_v30 = vmax.f32 %v1905_v38, 0.0 }
 0x279   : > { %2107 = vst.msk [vmem:[%s4061_s12 + $0x78] sm:$0xff] %vm1396_vm4, %v2059_v24  ;;  %2129 = vst.msk [vmem:[%s4061_s12 + $0x128] sm:$0xff] %vm1396_vm4, %v2081_v17 }
 0x27a   : > { %2105 = vst.msk [vmem:[%s4061_s12 + $0x68] sm:$0xff] %vm1396_vm4, %v2057_v30 }
 0x2a9   : > { %v2390_v23 = vpop.f32.mrb[16].mxu1 }
 0x2aa   : > { %v2022_v18 = vadd.f32 %v2390_v23, %v4041_v28  ;;  %v2013_v29 = vpop.f32.mrb[17].mxu1 }
 0x2ab   : > { %v2366_v44 = vpop.f32.mrb[16].mxu0  ;;  %v2014_v6 = vadd.f32 %v4041_v28, %v2013_v29  ;;  %v2391_v35 = vpop.f32.mrb[18].mxu1 }
 0x2ac   : > { %v1926_v55 = vadd.f32 %v2366_v44, %v4041_v28  ;;  %v2086_v37 = vmax.f32 %v2022_v18, 0.0  ;;  %v1917_v57 = vpop.f32.mrb[17].mxu0  ;;  %v2025_v20 = vadd.f32 %v2391_v35, %v4041_v28  ;;  %v2016_v43 = vpop.f32.mrb[19].mxu1 }
 0x2ad   : > { %v1918_v36 = vadd.f32 %v4041_v28, %v1917_v57  ;;  %v2084_v46 = vmax.f32 %v2014_v6, 0.0  ;;  %v2367_v3 = vpop.f32.mrb[18].mxu0  ;;  %v2017_v5 = vadd.f32 %v4041_v28, %v2016_v43 }
 0x2ae   : > { %v2062_v41 = vmax.f32 %v1926_v55, 0.0  ;;  %2134 = vst.msk [vmem:[%s4061_s12 + $0x150] sm:$0xff] %vm1396_vm4, %v2086_v37  ;;  %v1929_v32 = vadd.f32 %v2367_v3, %v4041_v28  ;;  %v2087_v52 = vmax.f32 %v2025_v20, 0.0  ;;  %v1920_v31 = vpop.f32.mrb[19].mxu0 }
 0x2af   : > { %v2060_v40 = vmax.f32 %v1918_v36, 0.0  ;;  %2132 = vst.msk [vmem:[%s4061_s12 + $0x140] sm:$0xff] %vm1396_vm4, %v2084_v46  ;;  %v1921_v58 = vadd.f32 %v4041_v28, %v1920_v31  ;;  %v2085_v25 = vmax.f32 %v2017_v5, 0.0 }
 0x2b0   : > { %2110 = vst.msk [vmem:[%s4061_s12 + $0x90] sm:$0xff] %vm1396_vm4, %v2062_v41  ;;  %v2063_v33 = vmax.f32 %v1929_v32, 0.0  ;;  %2135 = vst.msk [vmem:[%s4061_s12 + $0x158] sm:$0xff] %vm1396_vm4, %v2087_v52 }
 0x2b1   : > { %2108 = vst.msk [vmem:[%s4061_s12 + $0x80] sm:$0xff] %vm1396_vm4, %v2060_v40  ;;  %v2061_v12 = vmax.f32 %v1921_v58, 0.0  ;;  %2133 = vst.msk [vmem:[%s4061_s12 + $0x148] sm:$0xff] %vm1396_vm4, %v2085_v25 }
 0x2b2   : > { %2111 = vst.msk [vmem:[%s4061_s12 + $0x98] sm:$0xff] %vm1396_vm4, %v2063_v33 }
 0x2b3   : > { %2109 = vst.msk [vmem:[%s4061_s12 + $0x88] sm:$0xff] %vm1396_vm4, %v2061_v12 }
 0x2e2   : > { %v2394_v45 = vpop.f32.mrb[20].mxu1 }
 0x2e3   : > { %v2370_v63 = vpop.f32.mrb[20].mxu0  ;;  %v2038_v53 = vadd.f32 %v2394_v45, %v4041_v28  ;;  %v2029_v34 = vpop.f32.mrb[21].mxu1 }
 0x2e4   : > { %v1942_v62 = vadd.f32 %v2370_v63, %v4041_v28  ;;  %v1933_v10 = vpop.f32.mrb[21].mxu0  ;;  %v2030_v39 = vadd.f32 %v4041_v28, %v2029_v34  ;;  %v2395_v7 = vpop.f32.mrb[22].mxu1 }
 0x2e5   : > { %v2090_v50 = vmax.f32 %v2038_v53, 0.0  ;;  %v1934_v59 = vadd.f32 %v4041_v28, %v1933_v10  ;;  %v2371_v1 = vpop.f32.mrb[22].mxu0  ;;  %v2041_v8 = vadd.f32 %v2395_v7, %v4041_v28  ;;  %v2032_v21 = vpop.f32.mrb[23].mxu1 }
 0x2e6   : > { %v2066_v27 = vmax.f32 %v1942_v62, 0.0  ;;  %v2088_v15 = vmax.f32 %v2030_v39, 0.0  ;;  %v1945_v11 = vadd.f32 %v2371_v1, %v4041_v28  ;;  %v1936_v42 = vpop.f32.mrb[23].mxu0  ;;  %v2033_v61 = vadd.f32 %v4041_v28, %v2032_v21 }
 0x2e7   : > { %2138 = vst.msk [vmem:[%s4061_s12 + $0x170] sm:$0xff] %vm1396_vm4, %v2090_v50  ;;  %v2064_v26 = vmax.f32 %v1934_v59, 0.0  ;;  %v2091_v47 = vmax.f32 %v2041_v8, 0.0  ;;  %v1937_v49 = vadd.f32 %v4041_v28, %v1936_v42 }
 0x2e8   : > { %2114 = vst.msk [vmem:[%s4061_s12 + $0xb0] sm:$0xff] %vm1396_vm4, %v2066_v27  ;;  %2136 = vst.msk [vmem:[%s4061_s12 + $0x160] sm:$0xff] %vm1396_vm4, %v2088_v15  ;;  %v2067_v51 = vmax.f32 %v1945_v11, 0.0  ;;  %v2089_v54 = vmax.f32 %v2033_v61, 0.0 }
 0x2e9   : > { %2112 = vst.msk [vmem:[%s4061_s12 + $0xa0] sm:$0xff] %vm1396_vm4, %v2064_v26  ;;  %2139 = vst.msk [vmem:[%s4061_s12 + $0x178] sm:$0xff] %vm1396_vm4, %v2091_v47  ;;  %v2065_v60 = vmax.f32 %v1937_v49, 0.0 }
 0x2ea   : > { %2115 = vst.msk [vmem:[%s4061_s12 + $0xb8] sm:$0xff] %vm1396_vm4, %v2067_v51  ;;  %2137 = vst.msk [vmem:[%s4061_s12 + $0x168] sm:$0xff] %vm1396_vm4, %v2089_v54 }
 0x2eb   : > { %2113 = vst.msk [vmem:[%s4061_s12 + $0xa8] sm:$0xff] %vm1396_vm4, %v2065_v60 }
 0x2ec PF: > { %s13_s14 = sadd.s32 1, %s2532_s14   ;;  %s4492_s12 = smov %s2528_s13 }
 0x2ed   : > { %p10_p5 = scmp.ge.s32.totalorder %s13_s14, 4   ;;  %s4493_s13 = smov %s4495_s15 }
 0x2ef   :  { %12 = sbr.rel (!%p10_p5) target bundleno = 2 (0x2), region = 62 }

</bundles_post_ra>
